<compile_context>
chip_gen: v7x
topology: tpu7x:2x2x1
jax: 0.10.0
libtpu: 0.0.40
codegen_flags: <defaults>
</compile_context>

<pallas_src>
import math

import jax
import jax.numpy as jnp
from jax.experimental import pallas as pl
from jax.experimental.pallas import tpu as pltpu

# Conservative, generation-portable VMEM numbers:
#   - tile working set (incl. default double buffering) kept under ~36 MiB
#   - scoped VMEM limit raised to 48 MiB (>> v5e's 16 MiB default, and still
#     safe under v7x's 64 MiB per-TensorCore physical VMEM).
_TILE_BUDGET_BYTES = 36 * 1024 * 1024
_VMEM_LIMIT_BYTES = 48 * 1024 * 1024


def _round_up(x, m):
    return ((x + m - 1) // m) * m


def _pad_axis(a, axis, target):
    cur = a.shape[axis]
    if cur == target:
        return a
    pads = [(0, 0)] * a.ndim
    pads[axis] = (0, target - cur)
    return jnp.pad(a, pads)


# ----------------------------- kernel bodies ------------------------------ #

def _fc_bias_kernel(x_ref, w_ref, b_ref, o_ref):
    # x:(tm,Din)  w:(Din,tn)  b:(1,tn)  o:(tm,tn)
    acc = jnp.dot(x_ref[...], w_ref[...], preferred_element_type=jnp.float32)
    o_ref[...] = (acc + b_ref[...].astype(jnp.float32)).astype(o_ref.dtype)


def _fc_nobias_kernel(x_ref, w_ref, o_ref):
    o_ref[...] = jnp.dot(
        x_ref[...], w_ref[...], preferred_element_type=jnp.float32
    ).astype(o_ref.dtype)


def _fc_bias_ktiled_kernel(x_ref, w_ref, b_ref, o_ref, acc_ref):
    k = pl.program_id(3)

    @pl.when(k == 0)
    def _():
        acc_ref[...] = jnp.zeros_like(acc_ref)

    acc_ref[...] += jnp.dot(x_ref[...], w_ref[...],
                            preferred_element_type=jnp.float32)

    @pl.when(k == pl.num_programs(3) - 1)
    def _():
        o_ref[...] = (acc_ref[...] + b_ref[...].astype(jnp.float32)
                      ).astype(o_ref.dtype)


def _fc_nobias_ktiled_kernel(x_ref, w_ref, o_ref, acc_ref):
    k = pl.program_id(3)

    @pl.when(k == 0)
    def _():
        acc_ref[...] = jnp.zeros_like(acc_ref)

    acc_ref[...] += jnp.dot(x_ref[...], w_ref[...],
                            preferred_element_type=jnp.float32)

    @pl.when(k == pl.num_programs(3) - 1)
    def _():
        o_ref[...] = acc_ref[...].astype(o_ref.dtype)


# ----------------------------- tile selection ----------------------------- #

def _select_tiles(M, Din, Dout, itemsize, budget, tm_pref, m_align, max_tk):
    """Return (tm, tk, tn).  tk == Din  <=>  no K grid axis / no accumulator.

    Preference order (per review): full-Dout tn first (collapses the n axis so
    activations stream once), full-Din tk first (no K axis), then the largest
    tm that fits the VMEM budget (amortizes the per-grid-step overhead).
    """
    Dout_p = _round_up(Dout, 128)
    Din_p = _round_up(Din, 128)
    M_al = _round_up(M, m_align)
    tm_top = min(_round_up(tm_pref, m_align), M_al)

    def footprint(tm, tk, tn, ktiled):
        # Default double-buffering on x, w, bias and the output tile,
        # plus the f32 accumulator scratch when K-tiled.
        b = 2 * (tm * tk + tk * tn + tm * tn + tn) * itemsize
        if ktiled:
            b += tm * tn * 4
        return b

    def best_tm(tk, tn, ktiled):
        tm = tm_top
        while tm > m_align and footprint(tm, tk, tn, ktiled) > budget:
            tm = max(m_align, _round_up(tm // 2, m_align))
        return tm if footprint(tm, tk, tn, ktiled) <= budget else None

    tk_opts = [Din] + [t for t in (2048, 1024, 512) if t < Din_p]
    if max_tk is not None:
        tk_opts = [t for t in tk_opts if t <= max_tk] or [min(tk_opts)]
    tn_opts = [Dout_p] + [t for t in (2048, 1024, 512, 256, 128) if t < Dout_p]

    fallback = None
    for tn in tn_opts:
        for tk in tk_opts:
            tm = best_tm(tk, tn, tk != Din)
            if tm is None:
                continue
            if fallback is None:
                fallback = (tm, tk, tn)
            if tm >= min(tm_top, 512):
                return tm, tk, tn
    if fallback is not None:
        return fallback
    # Degenerate: nothing fits the model -> minimal tiles (correctness first).
    return m_align, Din, min(Dout_p, 128)


# --------------------------------- wrapper -------------------------------- #

def ensemble_fc(x, weight, bias=None, *, tm_pref=2048, compute_dtype=None,
                max_tk=None):
    """EnsembleFC forward: out[e] = x[e] @ weight[e] (+ bias[e]).

    x: [E, ..., Din], weight: [E, Din, Dout], bias: [E, Dout] or None.
    compute_dtype: optional (e.g. jnp.bfloat16) cast of MXU inputs on v6e/v7x;
                   accumulation stays f32, output keeps x's original dtype.
    max_tk: optional cap on the Din tile (forces K-tiling when < Din).
    """
    E = x.shape[0]
    Din = x.shape[-1]
    Dout = weight.shape[-1]
    mid_shape = x.shape[1:-1]
    M = math.prod(mid_shape) if mid_shape else 1
    out_dtype = x.dtype
    has_bias = bias is not None

    if compute_dtype is not None:
        x = x.astype(compute_dtype)
        weight = weight.astype(compute_dtype)
        if has_bias:
            bias = bias.astype(compute_dtype)

    itemsize = jnp.dtype(x.dtype).itemsize
    m_align = {4: 8, 2: 16, 1: 32}.get(itemsize, 8)

    tm, tk, tn = _select_tiles(M, Din, Dout, itemsize, _TILE_BUDGET_BYTES,
                               tm_pref, m_align, max_tk)
    k_tiled = (tk != Din)

    # Pad to tile multiples (zero rows/cols contribute nothing to the GEMM).
    M_pad = _round_up(M, tm)
    Dout_pad = _round_up(Dout, tn)
    Din_pad = _round_up(Din, tk) if k_tiled else Din

    x2 = x.reshape(E, M, Din)
    x2 = _pad_axis(_pad_axis(x2, 1, M_pad), 2, Din_pad)
    w = _pad_axis(_pad_axis(weight, 1, Din_pad), 2, Dout_pad)
    if has_bias:
        b3 = _pad_axis(bias.reshape(E, 1, Dout), 2, Dout_pad)

    grid_n = Dout_pad // tn
    grid_m = M_pad // tm

    if k_tiled:
        grid = (E, grid_n, grid_m, Din_pad // tk)
        x_spec = pl.BlockSpec((None, tm, tk), lambda e, n, m, k: (e, m, k))
        w_spec = pl.BlockSpec((None, tk, tn), lambda e, n, m, k: (e, k, n))
        b_spec = pl.BlockSpec((None, 1, tn), lambda e, n, m, k: (e, 0, n))
        o_spec = pl.BlockSpec((None, tm, tn), lambda e, n, m, k: (e, m, n))
        scratch = (pltpu.VMEM((tm, tn), jnp.float32),)
        semantics = ("parallel", "parallel", "parallel", "arbitrary")
        kernel = _fc_bias_ktiled_kernel if has_bias else _fc_nobias_ktiled_kernel
    else:
        grid = (E, grid_n, grid_m)
        x_spec = pl.BlockSpec((None, tm, Din), lambda e, n, m: (e, m, 0))
        w_spec = pl.BlockSpec((None, Din, tn), lambda e, n, m: (e, 0, n))
        b_spec = pl.BlockSpec((None, 1, tn), lambda e, n, m: (e, 0, n))
        o_spec = pl.BlockSpec((None, tm, tn), lambda e, n, m: (e, m, n))
        scratch = ()
        semantics = ("parallel", "parallel", "parallel")
        kernel = _fc_bias_kernel if has_bias else _fc_nobias_kernel

    in_specs = [x_spec, w_spec] + ([b_spec] if has_bias else [])
    args = (x2, w) + ((b3,) if has_bias else ())

    bytes_accessed = (
        x2.size * x2.dtype.itemsize
        + w.size * w.dtype.itemsize
        + (b3.size * b3.dtype.itemsize if has_bias else 0)
        + E * M_pad * Dout_pad * jnp.dtype(out_dtype).itemsize
    )

    out = pl.pallas_call(
        kernel,
        out_shape=jax.ShapeDtypeStruct((E, M_pad, Dout_pad), out_dtype),
        grid_spec=pltpu.PrefetchScalarGridSpec(
            num_scalar_prefetch=0,
            grid=grid,
            in_specs=in_specs,
            out_specs=o_spec,
            scratch_shapes=scratch,
        ),
        compiler_params=pltpu.CompilerParams(
            dimension_semantics=semantics,
            vmem_limit_bytes=_VMEM_LIMIT_BYTES,
        ),
        cost_estimate=pl.CostEstimate(
            flops=2 * E * M * Din * Dout,
            transcendentals=0,
            bytes_accessed=int(bytes_accessed),
        ),
    )(*args)

    out = out[:, :M, :Dout]
    return out.reshape((E,) + mid_shape + (Dout,))


# -------------------------------- reference -------------------------------- #

def _reference(x, weight, bias=None):
    E, Din = x.shape[0], x.shape[-1]
    Dout = weight.shape[-1]
    mid = x.shape[1:-1]
    x2 = x.reshape(E, -1, Din)
    out = jnp.einsum("emk,ekn->emn", x2, weight,
                     preferred_element_type=jnp.float32).astype(x.dtype)
    if bias is not None:
        out = out + bias[:, None, :]
    return out.reshape((E,) + mid + (Dout,))


if __name__ == "__main__":
    key = jax.random.PRNGKey(0)

    # Test 1: main path — tn = full Dout (n axis collapses), large tm,
    # weight resident across M tiles.  grid = (E, 1, 1).
    E, M, Din, Dout = 4, 1024, 128, 512
    k1, k2, k3, key = jax.random.split(key, 4)
    x = jax.random.normal(k1, (E, M, Din), dtype=jnp.float32)
    w = jax.random.normal(k2, (E, Din, Dout), dtype=jnp.float32) * 0.05
    b = jax.random.normal(k3, (E, Dout), dtype=jnp.float32) * 0.1
    out = jax.block_until_ready(ensemble_fc(x, w, b))
    ref = _reference(x, w, b)
    assert out.shape == ref.shape
    assert jnp.allclose(out, ref, atol=1e-3, rtol=1e-3)

    # Test 2: awkward shapes (padding path) + extra middle dims + bias=False
    # (bias-free kernel variant).
    E2, mid, Din2, Dout2 = 3, (5, 7), 96, 200
    k1, k2, key = jax.random.split(key, 3)
    x2_in = jax.random.normal(k1, (E2,) + mid + (Din2,), dtype=jnp.float32)
    w2 = jax.random.normal(k2, (E2, Din2, Dout2), dtype=jnp.float32) * 0.05
    out2 = jax.block_until_ready(ensemble_fc(x2_in, w2, None))
    ref2 = _reference(x2_in, w2, None)
    assert out2.shape == ref2.shape
    assert jnp.allclose(out2, ref2, atol=1e-3, rtol=1e-3)

    # Test 3: forced K (Din) tiling with the f32 accumulator scratch.
    E3, M3, Din3, Dout3 = 2, 256, 1024, 256
    k1, k2, k3, key = jax.random.split(key, 4)
    x3 = jax.random.normal(k1, (E3, M3, Din3), dtype=jnp.float32)
    w3 = jax.random.normal(k2, (E3, Din3, Dout3), dtype=jnp.float32) * 0.02
    b3 = jax.random.normal(k3, (E3, Dout3), dtype=jnp.float32) * 0.1
    out3 = jax.block_until_ready(ensemble_fc(x3, w3, b3, max_tk=512))
    ref3 = _reference(x3, w3, b3)
    assert out3.shape == ref3.shape
    assert jnp.allclose(out3, ref3, atol=1e-3, rtol=1e-3)

    print("KERNEL_OK")
</pallas_src>

<mosaic_0001>
module attributes {stable_mosaic.version = 11 : i64} {
  func.func @_fc_bias_kernel(%arg0: i32, %arg1: i32, %arg2: i32, %arg3: memref<1x1024x128xf32, #tpu.memory_space<vmem>>, %arg4: memref<1x128x512xf32, #tpu.memory_space<vmem>>, %arg5: memref<1x1x512xf32, #tpu.memory_space<vmem>>, %arg6: memref<1x1024x512xf32, #tpu.memory_space<vmem>>) attributes {dimension_semantics = [#tpu.dimension_semantics<parallel>, #tpu.dimension_semantics<parallel>, #tpu.dimension_semantics<parallel>], iteration_bounds = array<i64: 4, 1, 1>, scalar_prefetch = 0 : i64, scratch_operands = 0 : i64, tpu.core_type = #tpu.core_type<tc>, window_params = [{transform_indices = @transform_0, window_bounds = array<i64: 1, 1024, 128>}, {transform_indices = @transform_1, window_bounds = array<i64: 1, 128, 512>}, {transform_indices = @transform_2, window_bounds = array<i64: 1, 1, 512>}, {transform_indices = @transform_3, window_bounds = array<i64: 1, 1024, 512>}]} {
    %c0 = arith.constant 0 : index
    %c0_0 = arith.constant 0 : index
    %c0_1 = arith.constant 0 : index
    %0 = vector.load %arg3[%c0, %c0_0, %c0_1] : memref<1x1024x128xf32, #tpu.memory_space<vmem>>, vector<1x1024x128xf32>
    %1 = vector.shape_cast %0 : vector<1x1024x128xf32> to vector<1024x128xf32>
    %c0_2 = arith.constant 0 : index
    %c0_3 = arith.constant 0 : index
    %c0_4 = arith.constant 0 : index
    %2 = vector.load %arg4[%c0_2, %c0_3, %c0_4] : memref<1x128x512xf32, #tpu.memory_space<vmem>>, vector<1x128x512xf32>
    %3 = vector.shape_cast %2 : vector<1x128x512xf32> to vector<128x512xf32>
    %cst = arith.constant dense<0.000000e+00> : vector<1024x512xf32>
    %4 = tpu.matmul %1, %3, %cst {dimension_numbers = #tpu.dot_dimension_numbers<[1], [0], [0], [1], [0, 0, 1, 1], [], []>} : vector<1024x128xf32>, vector<128x512xf32>, vector<1024x512xf32> -> vector<1024x512xf32>
    %c0_5 = arith.constant 0 : index
    %c0_6 = arith.constant 0 : index
    %c0_7 = arith.constant 0 : index
    %5 = vector.load %arg5[%c0_5, %c0_6, %c0_7] : memref<1x1x512xf32, #tpu.memory_space<vmem>>, vector<1x1x512xf32>
    %6 = vector.shape_cast %5 : vector<1x1x512xf32> to vector<1x512xf32>
    %7 = vector.broadcast %6 : vector<1x512xf32> to vector<1024x512xf32>
    %8 = arith.addf %4, %7 : vector<1024x512xf32>
    %c0_8 = arith.constant 0 : index
    %c0_9 = arith.constant 0 : index
    %c0_10 = arith.constant 0 : index
    %9 = vector.load %arg6[%c0_8, %c0_9, %c0_10] : memref<1x1024x512xf32, #tpu.memory_space<vmem>>, vector<1x1024x512xf32>
    %10 = vector.shape_cast %9 : vector<1x1024x512xf32> to vector<1024x512xf32>
    %11 = vector.shape_cast %8 : vector<1024x512xf32> to vector<1x1024x512xf32>
    tpu.vector_store %arg6[%c0_8, %c0_9, %c0_10], %11 {strides = array<i32>} : memref<1x1024x512xf32, #tpu.memory_space<vmem>>, vector<1x1024x512xf32>,
    return
  }
  func.func @transform_0(%arg0: i32, %arg1: i32, %arg2: i32) -> (i32, i32, i32) {
    %c0_i32 = arith.constant 0 : i32
    %c0_i32_0 = arith.constant 0 : i32
    return %arg0, %arg2, %c0_i32 : i32, i32, i32
  }
  func.func @transform_1(%arg0: i32, %arg1: i32, %arg2: i32) -> (i32, i32, i32) {
    %c0_i32 = arith.constant 0 : i32
    %c0_i32_0 = arith.constant 0 : i32
    return %arg0, %c0_i32, %arg1 : i32, i32, i32
  }
  func.func @transform_2(%arg0: i32, %arg1: i32, %arg2: i32) -> (i32, i32, i32) {
    %c0_i32 = arith.constant 0 : i32
    %c0_i32_0 = arith.constant 0 : i32
    return %arg0, %c0_i32, %arg1 : i32, i32, i32
  }
  func.func @transform_3(%arg0: i32, %arg1: i32, %arg2: i32) -> (i32, i32, i32) {
    %c0_i32 = arith.constant 0 : i32
    return %arg0, %arg2, %arg1 : i32, i32, i32
  }
}

</mosaic_0001>

<bundles_post_ra>
// kernel: tpu_custom_call.1
= control target key start
LH: loop header
LB: loop body
LE: loop exit
PB: predicated region body
PF: predicated region fallthrough
CT: control target
= control target key end

     0   :  { %s4975_s0 = inlined_call_operand.hbm [shape: f32[4,1024,128], index: 0, kind: input, shape index: {}]   ;;  %s4976_s1 = inlined_call_operand.hbm [shape: f32[4,128,512], index: 1, kind: input, shape index: {}]   ;;  %s4977_s2 = inlined_call_operand.hbm [shape: f32[4,1,512], index: 2, kind: input, shape index: {}]   ;;  %s4978_s3 = inlined_call_operand.hbm [shape: f32[4,1024,512], index: 3, kind: output, shape index: {}]  }
   0x1   :  { %4983 = sst [smem:[#allocation13_spill]] %s4975_s0 }
   0x2   :  { %4984 = sst [smem:[#allocation14_spill]] %s4976_s1 }
   0x3   :  { %8 = vsyncpa [#allocation3], 0 }
   0x4   :  { %10 = vsyncpa [#allocation3 + $0x1], 0 }
   0x5   :  { %11 = vsyncpa [#allocation6], 0 }
   0x6   :  { %13 = vsyncpa [#allocation6 + $0x1], 0 }
   0x7   :  { %14 = vsyncpa [#allocation4], 0 }
   0x8   :  { %16 = vsyncpa [#allocation4 + $0x1], 0  ;;  %s3235_s12 = smov 0   ;;  %s3237_s13 = smov 0  }
   0x9   :  { %s3239_s14 = smov 0   ;;  %s3241_s15 = smov 0  }
   0xa   :  { %s3243_s16 = smov 0   ;;  %s3245_s17 = smov 0  }
   0xb LB: > { %s3266_s18 = sadd.s32 4294967295, %s3202_s17   ;;  %s2857_s19 = sadd.s32 4294967294, %s3202_s17   ;;  %s3202_s17 = sphi %s3245_s17, %s22_s17   ;;  %s3198_s16 = sphi %s3243_s16, %s5005_s16   ;;  %s3194_s15 = sphi %s3241_s15, %s5004_s15   ;;  %s3190_s14 = sphi %s3239_s14, %s5003_s14   ;;  %s3186_s13 = sphi %s3237_s13, %s5002_s13   ;;  %s3182_s12 = sphi %s3235_s12, %s5001_s12  }
   0xc   : > { %s41_s20 = sadd.s32 1, %s3198_s16  ;;  %s50_s21 = sadd.s32 1, %s3190_s14 }
   0xd   : > { %p43_p0 = scmp.ge.s32.totalorder %s41_s20, 4  ;;  %p57_p1 = scmp.ne.s32.totalorder %s3190_s14, %s3186_s13 }
   0xe   : > { %p58_p2 = scmp.eq.s32.totalorder %s3202_s17, 0  ;;  %p63_p3 = scmp.ne.s32.totalorder %s3186_s13, %s3182_s12 }
   0xf   : > { %s5007_s20 = smov (%p43_p0, %s41_s20), 0  ;;  %p64_p5 = scmp.eq.s32.totalorder %s3266_s18, 0 }
  0x10   : > { %4985 = sst [smem:[#allocation12_spill]] %s5007_s20  ;;  %p3278_p4 = por %p58_p2, %p57_p1 }
  0x11   : > { %s45_s23 = ssub.s32 %s3198_s16, %s5007_s20  ;;  %p147_p6 = scmp.eq.s32.totalorder %s3266_s18, 3 }
  0x12   : > { %p48_p7 = scmp.eq.s32.totalorder %s45_s23, 0  ;;  %p3286_p8 = por %p64_p5, %p63_p3 }
  0x13   : > { %p3290_p9 = por %p147_p6, %p57_p1  ;;  %p153_p10 = scmp.eq.s32.totalorder %s2857_s19, 3 }
  0x14   : > { %s4987_s24 = scalar_select %p3286_p8, 1, 0 }
  0x15   : > { %s4988_s25 = scalar_select %p3290_p9, 1, 0 }
  0x16   : > { %s3295_s26 = scalar_select %p48_p7, %s3190_s14, %s50_s21  }
  0x17   : > { %p3297_p11 = por %p153_p10, %p63_p3  ;;  %p2969_p12 = scmp.lt.s32.totalorder %s3202_s17, 4 }
  0x18   : > { %s3303_s28 = sand.u32 1, %s3190_s14   ;;  %s196_s29 = sand.u32 1, %s3202_s17  }
  0x19   : > { %s4989_s27 = scalar_select %p3297_p11, 1, 0 }
  0x1a   : > { %s2863_s30 = sshll.u32 %s3303_s28, 9  ;;  %p3309_p13 = pnand %p2969_p12, %p3278_p4 }
  0x1b   : > { %s2880_s5 = sshll.u32 %s3198_s16, 13  ;;  %s4991_s1 = sld [smem:[#allocation14_spill]] }
  0x1c   : > { %s4990_s4 = scalar_select %p3309_p13, 1, 0 }
  0x1d   : > { %s200_s9 = scalar_lea.vmem [#allocation5], %s2863_s30  ;;  %s3321_s11 = scalar_lea.sflag [#allocation6], %s196_s29 }
  0x1e   : > { %s209_s10 = sshll.u32 %s200_s9, 4  ;;  %p3327_p1 = pneg %p3309_p13  ;;  %s3319_s10 = int_to_ptr.vmem [resolvable:$true] %s209_s10 }
  0x21   : > { %s3317_s8 = scalar_lea.hbm %s4991_s1, %s2880_s5  ;;  %s3031_s30 = scalar_lea.hbm %s4991_s1, 32768 }
  0x22   : > { %s3026_s19 = scalar_lea.hbm %s3317_s8, 8192  ;;  %p3032_p4 = scmp.lt.u32.totalorder %s3317_s8, %s4991_s1 }
  0x23   : > { %p3027_p0 = scmp.ne.s32.totalorder %s3317_s8, %s3026_s19  ;;  %p3033_p5 = scmp.lt.u32.totalorder %s3031_s30, %s3026_s19 }
  0x24   : > { %p3035_p7 = scmp.lt.u32.totalorder %s3026_s19, %s3317_s8 }
  0x25   : > { %p3029_p2 = pnand %p3327_p1, %p3027_p0  ;;  %p3034_p6 = por %p3033_p5, %p3032_p4 }
  0x27   : > { %p3030_p3 = pneg %p3029_p2  ;;  %p3036_p10 = por %p3035_p7, %p3034_p6 }
  0x29   : > { %p3037_p12 = pnand %p3036_p10, %p3030_p3 }
  0x2b   : > { %3040 = shalt.err (!%p3037_p12)
}
  0x2c   : > { %s3041_s29 = scalar_lea.vmem %s3319_s10, 8192  ;;  %s3204_s7 = smov [#allocation5]  }
  0x2d   : > { %p3042_p0 = scmp.ne.s32.totalorder %s3319_s10, %s3041_s29  ;;  %s3046_s9 = sshll.u32 %s3204_s7, 4  ;;  %s3047_s9 = int_to_ptr.vmem [resolvable:$false] %s3046_s9 }
  0x2e   : > { %s3048_s22 = scalar_lea.vmem %s3047_s9, 16384  ;;  %p3049_p9 = scmp.lt.s32.totalorder %s3319_s10, %s3047_s9 }
  0x2f   : > { %p3044_p2 = pnand %p3042_p0, %p3327_p1  ;;  %p3050_p8 = scmp.lt.s32.totalorder %s3048_s22, %s3041_s29 }
  0x31   : > { %p3045_p11 = pneg %p3044_p2  ;;  %p3051_p4 = por %p3050_p8, %p3049_p9 }
  0x33   : > { %p3052_p5 = pnand %p3051_p4, %p3045_p11 }
  0x35   : > { %3055 = shalt.err (!%p3052_p5)
}
  0x36   : > { %s3205_s19 = smov 512   ;;  %s3206_s23 = smov 32  }
  0x37   : > { %2961 = dma.hbm_to_vmem [thread:$0]  (!%p3309_p13), %s3317_s8, 8192, %s3319_s10, %s3321_s11, %s3205_s19, %s3205_s19, %s3206_s23  }
  0x38   : > { %p2869_p3 = scmp.ge.s32.totalorder %s3202_s17, 1  ;;  %p238_p6 = scmp.lt.s32.totalorder %s3202_s17, 5 }
  0x39   : > { %s2860_s5 = sshll.u32 %s3303_s28, 10  ;;  %s2879_s6 = sshll.u32 %s3198_s16, 14 }
  0x3a   : > { %p3353_p7 = pnand %p2869_p3, %p238_p6  ;;  %s4994_s0 = sld [smem:[#allocation13_spill]] }
  0x3b   : > { %s177_s22 = scalar_lea.vmem [#allocation2], %s2860_s5  ;;  %s174_s8 = scalar_lea.sflag [#allocation3], %s3303_s28 }
  0x3c   : > { %s4993_s30 = scalar_select %p3353_p7, 1, 0 }
  0x3d   : > { %s186_s1 = sshll.u32 %s177_s22, 4  ;;  %s3364_s1 = int_to_ptr.vmem [resolvable:$true] %s186_s1 }
  0x40   : > { %s3362_s9 = scalar_lea.hbm %s4994_s0, %s2879_s6  ;;  %s3061_s29 = scalar_lea.hbm %s4994_s0, 65536 }
  0x41   : > { %s3056_s10 = scalar_lea.hbm %s3362_s9, 16384  ;;  %p3062_p10 = scmp.lt.u32.totalorder %s3362_s9, %s4994_s0 }
  0x42   : > { %p3057_p8 = scmp.ne.s32.totalorder %s3362_s9, %s3056_s10  ;;  %p3063_p12 = scmp.lt.u32.totalorder %s3061_s29, %s3056_s10 }
  0x43   : > { %p3065_p2 = scmp.lt.u32.totalorder %s3056_s10, %s3362_s9 }
  0x44   : > { %p3059_p9 = pnand %p3057_p8, %p3327_p1  ;;  %p3064_p0 = por %p3063_p12, %p3062_p10 }
  0x46   : > { %p3060_p11 = pneg %p3059_p9  ;;  %p3066_p4 = por %p3065_p2, %p3064_p0 }
  0x48   : > { %p3067_p5 = pnand %p3066_p4, %p3060_p11 }
  0x4a   : > { %3070 = shalt.err (!%p3067_p5)
}
  0x4b   : > { %s3071_s5 = scalar_lea.vmem %s3364_s1, 16384  ;;  %s3207_s22 = smov [#allocation2]  }
  0x4c   : > { %p3072_p3 = scmp.ne.s32.totalorder %s3364_s1, %s3071_s5  ;;  %s3076_s19 = sshll.u32 %s3207_s22, 4  ;;  %s3077_s19 = int_to_ptr.vmem [resolvable:$false] %s3076_s19 }
  0x4d   : > { %s3078_s23 = scalar_lea.vmem %s3077_s19, 32768  ;;  %p3079_p9 = scmp.lt.s32.totalorder %s3364_s1, %s3077_s19 }
  0x4e   : > { %p3074_p6 = pnand %p3072_p3, %p3327_p1  ;;  %p3080_p7 = scmp.lt.s32.totalorder %s3078_s23, %s3071_s5 }
  0x50   : > { %p3075_p8 = pneg %p3074_p6  ;;  %p3081_p10 = por %p3080_p7, %p3079_p9 }
  0x52   : > { %p3082_p12 = pnand %p3081_p10, %p3075_p8 }
  0x54   : > { %3085 = shalt.err (!%p3082_p12)
}
  0x55   : > { %s3208_s10 = smov 128   ;;  %s3209_s29 = smov 8  }
  0x56   : > { %2958 = dma.hbm_to_vmem [thread:$0]  (!%p3309_p13), %s3362_s9, 16384, %s3364_s1, %s174_s8, %s3208_s10, %s3208_s10, %s3209_s29  }
  0x57   : > { %s2866_s6 = sshll.u32 %s3303_s28, 2  ;;  %s2881_s7 = sshll.u32 %s3198_s16, 6 }
  0x58   : > { %s3395_s5 = scalar_lea.hbm %s4977_s2, %s2881_s7  ;;  %s223_s23 = scalar_lea.vmem [#allocation7], %s2866_s6 }
  0x59   : > { %s233_s0 = sshll.u32 %s223_s23, 4  ;;  %s3086_s20 = scalar_lea.hbm %s3395_s5, 64  ;;  %s234_s0 = int_to_ptr.vmem [resolvable:$true] %s233_s0 }
  0x5a   : > { %p3087_p7 = scmp.ne.s32.totalorder %s3395_s5, %s3086_s20  ;;  %s3091_s9 = scalar_lea.hbm %s4977_s2, 256 }
  0x5b   : > { %p3092_p2 = scmp.lt.u32.totalorder %s3395_s5, %s4977_s2  ;;  %p3093_p4 = scmp.lt.u32.totalorder %s3091_s9, %s3086_s20 }
  0x5c   : > { %p3089_p11 = pnand %p3087_p7, %p3327_p1  ;;  %p3095_p3 = scmp.lt.u32.totalorder %s3086_s20, %s3395_s5 }
  0x5d   : > { %p3094_p5 = por %p3093_p4, %p3092_p2 }
  0x5e   : > { %p3090_p0 = pneg %p3089_p11 }
  0x5f   : > { %p3096_p6 = por %p3095_p3, %p3094_p5 }
  0x61   : > { %p3097_p8 = pnand %p3096_p6, %p3090_p0 }
  0x63   : > { %3100 = shalt.err (!%p3097_p8)
}
  0x64   : > { %s3101_s29 = scalar_lea.vmem %s234_s0, 64  ;;  %s3210_s6 = smov [#allocation7]  }
  0x65   : > { %p3102_p9 = scmp.ne.s32.totalorder %s234_s0, %s3101_s29  ;;  %s3106_s7 = sshll.u32 %s3210_s6, 4  ;;  %s3107_s7 = int_to_ptr.vmem [resolvable:$false] %s3106_s7 }
  0x66   : > { %s3108_s22 = scalar_lea.vmem %s3107_s7, 128  ;;  %p3109_p7 = scmp.lt.s32.totalorder %s234_s0, %s3107_s7 }
  0x67   : > { %p3104_p10 = pnand %p3102_p9, %p3327_p1  ;;  %p3110_p11 = scmp.lt.s32.totalorder %s3108_s22, %s3101_s29 }
  0x69   : > { %p3105_p12 = pneg %p3104_p10  ;;  %p3111_p13 = por %p3110_p11, %p3109_p7 }
  0x6b   : > { %p3112_p2 = pnand %p3111_p13, %p3105_p12 }
  0x6d   : > { %3115 = shalt.err (!%p3112_p2)
}
  0x6e   : > { %p4995_p4 = scmp.ne.s32.totalorder %s4990_s4, 0  ;;  %p4996_p0 = scmp.ne.s32.totalorder %s4993_s30, 0 }
  0x6f   : > { %s3418_s20 = sand.u32 (!%p4996_p0), 1, %s3186_s13   ;;  %p4997_p13 = scmp.ne.s32.totalorder (!%p4996_p0), %s4987_s24, 0 }
  0x70   : > { %2964 = dma.hbm_to_vmem [thread:$0]  (!%p4995_p4), %s3395_s5, 64, %s234_s0, %s3321_s11  }
  0x71   : > { %242 = sbr.rel (%p4996_p0) target bundleno = 899 (0x383), region = 32  ;;  %s2870_s21 = sshll.u32 (!%p4996_p0), %s3418_s20, 10 }
  0x72   : > { %s245_s19 = scalar_lea.sflag (!%p4996_p0), [#allocation3], %s3418_s20  ;;  %s3422_s23 = scalar_lea.vmem (!%p4996_p0), [#allocation2], %s2870_s21 }
  0x78   : > { %3169 = dma.done.wait (%p4997_p13), %s245_s19, 16384  }
  0x79   : > { %3171 = vsyncadd (%p4997_p13), %s245_s19, 4294950912  ;;  %s253_s0 = sand.u32 1, %s3266_s18   ;;  %s2871_s4 = sshll.u32 %s3418_s20, 9 }
  0x7a   : > { %s254_s11 = scalar_lea.sflag [#allocation6], %s253_s0  ;;  %s3430_s30 = scalar_lea.vmem [#allocation5], %s2871_s4 }
  0x7b   : > { %3173 = dma.done.wait (%p4997_p13), %s254_s11, 8256  }
  0x7c   : > { %3175 = vsyncadd (%p4997_p13), %s254_s11, 4294959040  ;;  %v3211_v0 = vmov 0.0   ;;  %v433_v1 = vld [vmem:[%s3430_s30 + $0x8] sm:$0xff]  ;;  %v435_v3 = vld [vmem:[%s3430_s30 + $0x18] sm:$0xff]  ;;  %s2872_s18 = sshll.u32 %s3418_s20, 2  ;;  %s2873_s5 = sshll.u32 %s3418_s20, 12 }
  0x7d   : > { %582 = vmatprep.mubr.f32.mxu0 %v3211_v0  ;;  %1415 = vmatprep.mubr.f32.mxu1 %v3211_v0  ;;  %v437_v2 = vld [vmem:[%s3430_s30 + $0x28] sm:$0xff]  ;;  %v439_v5 = vld [vmem:[%s3430_s30 + $0x38] sm:$0xff]  ;;  %v432_v6 = vld [vmem:[%s3430_s30] sm:$0xff]  ;;  %s266_s24 = scalar_lea.vmem [#allocation7], %s2872_s18  ;;  %s3677_s1 = scalar_lea.vmem [#allocation8], %s2873_s5 }
  0x7e   : > { %v2883_v4 = vpack.c.bf16 %v437_v2, %v433_v1  ;;  %v436_v7 = vld [vmem:[%s3430_s30 + $0x20] sm:$0xff]  ;;  %v2915_v8 = vpack.c.bf16 %v439_v5, %v435_v3  ;;  %v434_v10 = vld [vmem:[%s3430_s30 + $0x10] sm:$0xff]  ;;  %v441_v12 = vld [vmem:[%s3430_s30 + $0x48] sm:$0xff]  ;;  %s2882_s28 = sshll.u32 %s3194_s15, 16  ;;  %s2715_s9 = sshll.u32 %s3677_s1, 4  ;;  %s4922_s9 = int_to_ptr.vmem [resolvable:$true] %s2715_s9 }
  0x7f   : > { %v2885_v9 = vpack.c.bf16 %v436_v7, %v432_v6  ;;  %v438_v11 = vld [vmem:[%s3430_s30 + $0x30] sm:$0xff]  ;;  %v445_v14 = vld [vmem:[%s3430_s30 + $0x68] sm:$0xff]  ;;  %v443_v15 = vld [vmem:[%s3430_s30 + $0x58] sm:$0xff]  ;;  %s4920_s10 = scalar_lea.hbm %s4978_s3, %s2882_s28  ;;  %s2697_s29 = scalar_lea.sflag [#allocation4], %s3418_s20 }
  0x80   : > { %2884 = vmatprep.subr.bf16.mxu0 %v2883_v4  ;;  %v2917_v13 = vpack.c.bf16 %v438_v11, %v434_v10  ;;  %v447_v16 = vld [vmem:[%s3430_s30 + $0x78] sm:$0xff]  ;;  %2916 = vmatprep.subr.bf16.mxu1 %v2915_v8  ;;  %v2887_v17 = vpack.c.bf16 %v445_v14, %v441_v12  ;;  %v440_v19 = vld [vmem:[%s3430_s30 + $0x40] sm:$0xff]  ;;  %v442_v21 = vld [vmem:[%s3430_s30 + $0x50] sm:$0xff]  ;;  %s3116_s6 = scalar_lea.vmem %s4922_s9, 65536  ;;  %p4998_p5 = scmp.ne.s32.totalorder %s4988_s25, 0 }
  0x81   : > { %2886 = vmatpush1.bf16.msra.mxu0 %v2885_v9  ;;  %v2919_v18 = vpack.c.bf16 %v447_v16, %v443_v15  ;;  %v444_v20 = vld [vmem:[%s3430_s30 + $0x60] sm:$0xff]  ;;  %v446_v23 = vld [vmem:[%s3430_s30 + $0x70] sm:$0xff]  ;;  %v449_v24 = vld [vmem:[%s3430_s30 + $0x88] sm:$0xff]  ;;  %p3117_p1 = scmp.ne.s32.totalorder %s4922_s9, %s3116_s6  ;;  %s3212_s7 = smov [#allocation8]  }
  0x82   : > { %2918 = vmatpush1.bf16.msra.mxu1 %v2917_v13  ;;  %v2889_v22 = vpack.c.bf16 %v444_v20, %v440_v19  ;;  %v453_v25 = vld [vmem:[%s3430_s30 + $0xa8] sm:$0xff]  ;;  %2888 = vmatprep.subr.bf16.mxu0 %v2887_v17  ;;  %v2921_v26 = vpack.c.bf16 %v446_v23, %v442_v21  ;;  %v451_v28 = vld [vmem:[%s3430_s30 + $0x98] sm:$0xff]  ;;  %v448_v30 = vld [vmem:[%s3430_s30 + $0x80] sm:$0xff]  ;;  %s3120_s22 = sshll.u32 %s3212_s7, 4  ;;  %s3121_s22 = int_to_ptr.vmem [resolvable:$false] %s3120_s22 }
  0x83   : > { %2920 = vmatprep.subr.bf16.mxu1 %v2919_v18  ;;  %v2891_v27 = vpack.c.bf16 %v453_v25, %v449_v24  ;;  %v455_v29 = vld [vmem:[%s3430_s30 + $0xb8] sm:$0xff]  ;;  %v452_v32 = vld [vmem:[%s3430_s30 + $0xa0] sm:$0xff]  ;;  %v450_v33 = vld [vmem:[%s3430_s30 + $0x90] sm:$0xff]  ;;  %p3118_p3 = pnand %p3117_p1, %p4998_p5  ;;  %s3122_s21 = scalar_lea.vmem %s3121_s22, 131072 }
  0x84   : > { %v2923_v31 = vpack.c.bf16 %v455_v29, %v451_v28  ;;  %v454_v34 = vld [vmem:[%s3430_s30 + $0xb0] sm:$0xff]  ;;  %v2893_v35 = vpack.c.bf16 %v452_v32, %v448_v30  ;;  %v457_v36 = vld [vmem:[%s3430_s30 + $0xc8] sm:$0xff]  ;;  %v459_v38 = vld [vmem:[%s3430_s30 + $0xd8] sm:$0xff]  ;;  %p3123_p8 = scmp.lt.s32.totalorder %s4922_s9, %s3121_s22  ;;  %p3124_p9 = scmp.lt.s32.totalorder %s3122_s21, %s3116_s6 }
  0x85   : > { %2890 = vmatpush1.bf16.msra.mxu0 %v2889_v22  ;;  %v461_v37 = vld [vmem:[%s3430_s30 + $0xe8] sm:$0xff]  ;;  %v2925_v39 = vpack.c.bf16 %v454_v34, %v450_v33  ;;  %v463_v41 = vld [vmem:[%s3430_s30 + $0xf8] sm:$0xff]  ;;  %v456_v42 = vld [vmem:[%s3430_s30 + $0xc0] sm:$0xff]  ;;  %p3119_p6 = pneg %p3118_p3 }
  0x86   : > { %2922 = vmatpush1.bf16.msra.mxu1 %v2921_v26  ;;  %2892 = vmatprep.subr.bf16.mxu0 %v2891_v27  ;;  %v2895_v40 = vpack.c.bf16 %v461_v37, %v457_v36  ;;  %v460_v43 = vld [vmem:[%s3430_s30 + $0xe0] sm:$0xff]  ;;  %v2927_v44 = vpack.c.bf16 %v463_v41, %v459_v38  ;;  %v458_v45 = vld [vmem:[%s3430_s30 + $0xd0] sm:$0xff]  ;;  %v465_v47 = vld [vmem:[%s3430_s30 + $0x108] sm:$0xff]  ;;  %p3125_p10 = por %p3124_p9, %p3123_p8 }
  0x87   : > { %2924 = vmatprep.subr.bf16.mxu1 %v2923_v31  ;;  %v462_v46 = vld [vmem:[%s3430_s30 + $0xf0] sm:$0xff]  ;;  %v469_v48 = vld [vmem:[%s3430_s30 + $0x128] sm:$0xff]  ;;  %v467_v49 = vld [vmem:[%s3430_s30 + $0x118] sm:$0xff]  ;;  %v2897_v51 = vpack.c.bf16 %v460_v43, %v456_v42 }
  0x88   : > { %v471_v50 = vld [vmem:[%s3430_s30 + $0x138] sm:$0xff]  ;;  %v2929_v52 = vpack.c.bf16 %v462_v46, %v458_v45  ;;  %v2899_v53 = vpack.c.bf16 %v469_v48, %v465_v47  ;;  %v464_v54 = vld [vmem:[%s3430_s30 + $0x100] sm:$0xff]  ;;  %v466_v56 = vld [vmem:[%s3430_s30 + $0x110] sm:$0xff]  ;;  %p3126_p12 = pnand %p3125_p10, %p3119_p6 }
  0x89   : > { %2894 = vmatpush1.bf16.msra.mxu0 %v2893_v35  ;;  %v468_v55 = vld [vmem:[%s3430_s30 + $0x120] sm:$0xff]  ;;  %v2931_v57 = vpack.c.bf16 %v471_v50, %v467_v49  ;;  %v470_v58 = vld [vmem:[%s3430_s30 + $0x130] sm:$0xff]  ;;  %v473_v59 = vld [vmem:[%s3430_s30 + $0x148] sm:$0xff] }
  0x8a   : > { %2926 = vmatpush1.bf16.msra.mxu1 %v2925_v39  ;;  %2896 = vmatprep.subr.bf16.mxu0 %v2895_v40  ;;  %v477_v60 = vld [vmem:[%s3430_s30 + $0x168] sm:$0xff]  ;;  %v475_v61 = vld [vmem:[%s3430_s30 + $0x158] sm:$0xff]  ;;  %v2901_v63 = vpack.c.bf16 %v468_v55, %v464_v54  ;;  %v2933_v1 = vpack.c.bf16 %v470_v58, %v466_v56  ;;  %v472_v3 = vld [vmem:[%s3430_s30 + $0x140] sm:$0xff] }
  0x8b   : > { %2928 = vmatprep.subr.bf16.mxu1 %v2927_v44  ;;  %v479_v62 = vld [vmem:[%s3430_s30 + $0x178] sm:$0xff]  ;;  %v2903_v2 = vpack.c.bf16 %v477_v60, %v473_v59  ;;  %v476_v4 = vld [vmem:[%s3430_s30 + $0x160] sm:$0xff]  ;;  %v474_v5 = vld [vmem:[%s3430_s30 + $0x150] sm:$0xff] }
  0x8c   : > { %v2935_v6 = vpack.c.bf16 %v479_v62, %v475_v61  ;;  %v478_v7 = vld [vmem:[%s3430_s30 + $0x170] sm:$0xff]  ;;  %v481_v8 = vld [vmem:[%s3430_s30 + $0x188] sm:$0xff]  ;;  %v483_v10 = vld [vmem:[%s3430_s30 + $0x198] sm:$0xff]  ;;  %v2905_v12 = vpack.c.bf16 %v476_v4, %v472_v3 }
  0x8d   : > { %2898 = vmatpush1.bf16.msra.mxu0 %v2897_v51  ;;  %v485_v9 = vld [vmem:[%s3430_s30 + $0x1a8] sm:$0xff]  ;;  %v487_v11 = vld [vmem:[%s3430_s30 + $0x1b8] sm:$0xff]  ;;  %v2937_v13 = vpack.c.bf16 %v478_v7, %v474_v5  ;;  %v480_v15 = vld [vmem:[%s3430_s30 + $0x180] sm:$0xff] }
  0x8e   : > { %2930 = vmatpush1.bf16.msra.mxu1 %v2929_v52  ;;  %2900 = vmatprep.subr.bf16.mxu0 %v2899_v53  ;;  %v2907_v14 = vpack.c.bf16 %v485_v9, %v481_v8  ;;  %v484_v16 = vld [vmem:[%s3430_s30 + $0x1a0] sm:$0xff]  ;;  %v482_v17 = vld [vmem:[%s3430_s30 + $0x190] sm:$0xff]  ;;  %v2939_v18 = vpack.c.bf16 %v487_v11, %v483_v10  ;;  %v489_v20 = vld [vmem:[%s3430_s30 + $0x1c8] sm:$0xff] }
  0x8f   : > { %2932 = vmatprep.subr.bf16.mxu1 %v2931_v57  ;;  %v486_v19 = vld [vmem:[%s3430_s30 + $0x1b0] sm:$0xff]  ;;  %v493_v21 = vld [vmem:[%s3430_s30 + $0x1e8] sm:$0xff]  ;;  %v491_v22 = vld [vmem:[%s3430_s30 + $0x1d8] sm:$0xff]  ;;  %v2909_v24 = vpack.c.bf16 %v484_v16, %v480_v15 }
  0x90   : > { %v495_v23 = vld [vmem:[%s3430_s30 + $0x1f8] sm:$0xff]  ;;  %v2941_v25 = vpack.c.bf16 %v486_v19, %v482_v17  ;;  %v2911_v26 = vpack.c.bf16 %v493_v21, %v489_v20  ;;  %v488_v27 = vld [vmem:[%s3430_s30 + $0x1c0] sm:$0xff]  ;;  %v490_v30 = vld [vmem:[%s3430_s30 + $0x1d0] sm:$0xff]  ;;  %v498_v21 = vlaneseq }
  0x91   : > { %2902 = vmatpush1.bf16.msra.mxu0 %v2901_v63  ;;  %v492_v28 = vld [vmem:[%s3430_s30 + $0x1e0] sm:$0xff]  ;;  %v2943_v29 = vpack.c.bf16 %v495_v23, %v491_v22  ;;  %v494_v31 = vld [vmem:[%s3430_s30 + $0x1f0] sm:$0xff]  ;;  %v305_v35 = vld [vmem:[%s3422_s23 + $0x8] sm:$0xff] }
  0x92   : > { %2934 = vmatpush1.bf16.msra.mxu1 %v2933_v1  ;;  %2904 = vmatprep.subr.bf16.mxu0 %v2903_v2  ;;  %v2913_v32 = vpack.c.bf16 %v492_v28, %v488_v27  ;;  %v2945_v33 = vpack.c.bf16 %v494_v31, %v490_v30  ;;  %v304_v34 = vld [vmem:[%s3422_s23] sm:$0xff]  ;;  %v306_v36 = vld [vmem:[%s3422_s23 + $0x10] sm:$0xff]  ;;  %v307_v37 = vld [vmem:[%s3422_s23 + $0x18] sm:$0xff]  ;;  %v499_v23 = vshrl.u32 %v498_v21, 7 }
  0x93   : > { %2936 = vmatprep.subr.bf16.mxu1 %v2935_v6  ;;  %v308_v38 = vld [vmem:[%s3422_s23 + $0x20] sm:$0xff]  ;;  %v309_v39 = vld [vmem:[%s3422_s23 + $0x28] sm:$0xff]  ;;  %v310_v40 = vld [vmem:[%s3422_s23 + $0x30] sm:$0xff] }
  0x94   : > { %v311_v41 = vld [vmem:[%s3422_s23 + $0x38] sm:$0xff]  ;;  %v312_v42 = vld [vmem:[%s3422_s23 + $0x40] sm:$0xff]  ;;  %v313_v43 = vld [vmem:[%s3422_s23 + $0x48] sm:$0xff]  ;;  %v508_v28 = vsub.s32 2, %v499_v23  ;;  %v512_v30 = vsub.s32 3, %v499_v23 }
  0x95   : > { %2906 = vmatpush1.bf16.msra.mxu0 %v2905_v12  ;;  %v314_v44 = vld [vmem:[%s3422_s23 + $0x50] sm:$0xff]  ;;  %v315_v45 = vld [vmem:[%s3422_s23 + $0x58] sm:$0xff]  ;;  %v316_v46 = vld [vmem:[%s3422_s23 + $0x60] sm:$0xff] }
  0x96   : > { %2938 = vmatpush1.bf16.msra.mxu1 %v2937_v13  ;;  %2908 = vmatprep.subr.bf16.mxu0 %v2907_v14  ;;  %v317_v47 = vld [vmem:[%s3422_s23 + $0x68] sm:$0xff]  ;;  %v318_v48 = vld [vmem:[%s3422_s23 + $0x70] sm:$0xff]  ;;  %v319_v49 = vld [vmem:[%s3422_s23 + $0x78] sm:$0xff] }
  0x97   : > { %2940 = vmatprep.subr.bf16.mxu1 %v2939_v18  ;;  %v320_v50 = vld [vmem:[%s3422_s23 + $0x80] sm:$0xff]  ;;  %v321_v51 = vld [vmem:[%s3422_s23 + $0x88] sm:$0xff]  ;;  %v322_v52 = vld [vmem:[%s3422_s23 + $0x90] sm:$0xff] }
  0x98   : > { %v323_v53 = vld [vmem:[%s3422_s23 + $0x98] sm:$0xff]  ;;  %v324_v54 = vld [vmem:[%s3422_s23 + $0xa0] sm:$0xff]  ;;  %v325_v55 = vld [vmem:[%s3422_s23 + $0xa8] sm:$0xff] }
  0x99   : > { %2910 = vmatpush1.bf16.msra.mxu0 %v2909_v24  ;;  %v326_v56 = vld [vmem:[%s3422_s23 + $0xb0] sm:$0xff]  ;;  %v327_v57 = vld [vmem:[%s3422_s23 + $0xb8] sm:$0xff]  ;;  %v328_v58 = vld [vmem:[%s3422_s23 + $0xc0] sm:$0xff] }
  0x9a   : > { %2942 = vmatpush1.bf16.msra.mxu1 %v2941_v25  ;;  %2912 = vmatprep.subr.bf16.mxu0 %v2911_v26  ;;  %v329_v59 = vld [vmem:[%s3422_s23 + $0xc8] sm:$0xff]  ;;  %v330_v60 = vld [vmem:[%s3422_s23 + $0xd0] sm:$0xff]  ;;  %v331_v61 = vld [vmem:[%s3422_s23 + $0xd8] sm:$0xff]  ;;  %v500_v25 = vsub.s32 0, %v499_v23 }
  0x9b   : > { %2944 = vmatprep.subr.bf16.mxu1 %v2943_v29  ;;  %v332_v62 = vld [vmem:[%s3422_s23 + $0xe0] sm:$0xff]  ;;  %v333_v63 = vld [vmem:[%s3422_s23 + $0xe8] sm:$0xff]  ;;  %v334_v1 = vld [vmem:[%s3422_s23 + $0xf0] sm:$0xff]  ;;  %v504_v29 = vsub.s32 1, %v499_v23 }
  0x9c   : > { %v335_v2 = vld [vmem:[%s3422_s23 + $0xf8] sm:$0xff]  ;;  %v336_v3 = vld [vmem:[%s3422_s23 + $0x100] sm:$0xff]  ;;  %v337_v4 = vld [vmem:[%s3422_s23 + $0x108] sm:$0xff] }
  0x9d   : > { %2914 = vmatpush1.bf16.msra.mxu0 %v2913_v32  ;;  %v338_v5 = vld [vmem:[%s3422_s23 + $0x110] sm:$0xff]  ;;  %v339_v6 = vld [vmem:[%s3422_s23 + $0x118] sm:$0xff]  ;;  %v340_v7 = vld [vmem:[%s3422_s23 + $0x120] sm:$0xff] }
  0x9e   : > { %2946 = vmatpush1.bf16.msra.mxu1 %v2945_v33  ;;  %v341_v8 = vld [vmem:[%s3422_s23 + $0x128] sm:$0xff]  ;;  %v342_v9 = vld [vmem:[%s3422_s23 + $0x130] sm:$0xff]  ;;  %v343_v10 = vld [vmem:[%s3422_s23 + $0x138] sm:$0xff] }
  0x9f   : > { %v344_v11 = vld [vmem:[%s3422_s23 + $0x140] sm:$0xff]  ;;  %v345_v12 = vld [vmem:[%s3422_s23 + $0x148] sm:$0xff]  ;;  %v346_v13 = vld [vmem:[%s3422_s23 + $0x150] sm:$0xff] }
  0xa0   : > { %583 = vmatmul.mubr.f32.vlgmr.msra.gmra.mrb[0].mxu0 %v304_v34  ;;  %v347_v14 = vld [vmem:[%s3422_s23 + $0x158] sm:$0xff]  ;;  %v348_v15 = vld [vmem:[%s3422_s23 + $0x160] sm:$0xff]  ;;  %v349_v16 = vld [vmem:[%s3422_s23 + $0x168] sm:$0xff] }
  0xa1   : > { %1416 = vmatmul.mubr.f32.vlgmr.msra.gmra.mrb[0].mxu1 %v304_v34  ;;  %588 = vmatprep.mubr.f32.mxu0 %v3211_v0  ;;  %v350_v17 = vld [vmem:[%s3422_s23 + $0x170] sm:$0xff]  ;;  %v351_v18 = vld [vmem:[%s3422_s23 + $0x178] sm:$0xff]  ;;  %v352_v19 = vld [vmem:[%s3422_s23 + $0x180] sm:$0xff] }
  0xa2   : > { %1421 = vmatprep.mubr.f32.mxu1 %v3211_v0  ;;  %v353_v20 = vld [vmem:[%s3422_s23 + $0x188] sm:$0xff]  ;;  %v354_v22 = vld [vmem:[%s3422_s23 + $0x190] sm:$0xff]  ;;  %v355_v24 = vld [vmem:[%s3422_s23 + $0x198] sm:$0xff] }
  0xa3   : > { %v356_v26 = vld [vmem:[%s3422_s23 + $0x1a0] sm:$0xff]  ;;  %v357_v34 = vld [vmem:[%s3422_s23 + $0x1a8] sm:$0xff] }
  0xa4   : > { %589 = vmatmul.mubr.f32.gmra.mrb[2].mxu0 %v305_v35  ;;  %v496_v27 = vld [vmem:[%s266_s24] sm:$0xf] }
  0xa5   : > { %1422 = vmatmul.mubr.f32.gmra.mrb[2].mxu1 %v305_v35  ;;  %594 = vmatprep.mubr.f32.mxu0 %v3211_v0  ;;  %v3661_v31 = vrot.slane %v496_v27, %v500_v25  ;;  %v3664_v32 = vrot.slane %v496_v27, %v508_v28  ;;  %v3666_v33 = vrot.slane %v496_v27, %v504_v29  ;;  %v363_v25 = vld [vmem:[%s3422_s23 + $0x1d8] sm:$0xff] }
  0xa6   : > { %1427 = vmatprep.mubr.f32.mxu1 %v3211_v0  ;;  %v3670_v35 = vrot.slane %v496_v27, %v512_v30 }
  0xa8   : > { %595 = vmatmul.mubr.f32.gmra.mrb[4].mxu0 %v306_v36 }
  0xa9   : > { %1428 = vmatmul.mubr.f32.gmra.mrb[4].mxu1 %v306_v36  ;;  %600 = vmatprep.mubr.f32.mxu0 %v3211_v0 }
  0xaa   : > { %1433 = vmatprep.mubr.f32.mxu1 %v3211_v0 }
  0xac   : > { %601 = vmatmul.mubr.f32.gmra.mrb[6].mxu0 %v307_v37 }
  0xad   : > { %1434 = vmatmul.mubr.f32.gmra.mrb[6].mxu1 %v307_v37  ;;  %606 = vmatprep.mubr.f32.mxu0 %v3211_v0 }
  0xae   : > { %1439 = vmatprep.mubr.f32.mxu1 %v3211_v0 }
  0xb0   : > { %607 = vmatmul.mubr.f32.gmra.mrb[8].mxu0 %v308_v38 }
  0xb1   : > { %1440 = vmatmul.mubr.f32.gmra.mrb[8].mxu1 %v308_v38  ;;  %612 = vmatprep.mubr.f32.mxu0 %v3211_v0 }
  0xb2   : > { %1445 = vmatprep.mubr.f32.mxu1 %v3211_v0 }
  0xb4   : > { %613 = vmatmul.mubr.f32.gmra.mrb[10].mxu0 %v309_v39 }
  0xb5   : > { %1446 = vmatmul.mubr.f32.gmra.mrb[10].mxu1 %v309_v39  ;;  %618 = vmatprep.mubr.f32.mxu0 %v3211_v0 }
  0xb6   : > { %1451 = vmatprep.mubr.f32.mxu1 %v3211_v0 }
  0xb8   : > { %619 = vmatmul.mubr.f32.gmra.mrb[12].mxu0 %v310_v40 }
  0xb9   : > { %1452 = vmatmul.mubr.f32.gmra.mrb[12].mxu1 %v310_v40  ;;  %624 = vmatprep.mubr.f32.mxu0 %v3211_v0 }
  0xba   : > { %1457 = vmatprep.mubr.f32.mxu1 %v3211_v0 }
  0xbc   : > { %625 = vmatmul.mubr.f32.gmra.mrb[14].mxu0 %v311_v41 }
  0xbd   : > { %1458 = vmatmul.mubr.f32.gmra.mrb[14].mxu1 %v311_v41  ;;  %630 = vmatprep.mubr.f32.mxu0 %v3211_v0 }
  0xbe   : > { %1463 = vmatprep.mubr.f32.mxu1 %v3211_v0 }
  0xc0   : > { %631 = vmatmul.mubr.f32.gmra.mrb[16].mxu0 %v312_v42 }
  0xc1   : > { %1464 = vmatmul.mubr.f32.gmra.mrb[16].mxu1 %v312_v42  ;;  %636 = vmatprep.mubr.f32.mxu0 %v3211_v0 }
  0xc2   : > { %1469 = vmatprep.mubr.f32.mxu1 %v3211_v0 }
  0xc4   : > { %637 = vmatmul.mubr.f32.gmra.mrb[18].mxu0 %v313_v43 }
  0xc5   : > { %1470 = vmatmul.mubr.f32.gmra.mrb[18].mxu1 %v313_v43  ;;  %642 = vmatprep.mubr.f32.mxu0 %v3211_v0  ;;  %v358_v43 = vld [vmem:[%s3422_s23 + $0x1b0] sm:$0xff] }
  0xc6   : > { %1475 = vmatprep.mubr.f32.mxu1 %v3211_v0 }
  0xc8   : > { %643 = vmatmul.mubr.f32.gmra.mrb[20].mxu0 %v314_v44 }
  0xc9   : > { %1476 = vmatmul.mubr.f32.gmra.mrb[20].mxu1 %v314_v44  ;;  %648 = vmatprep.mubr.f32.mxu0 %v3211_v0 }
  0xca   : > { %1481 = vmatprep.mubr.f32.mxu1 %v3211_v0 }
  0xcc   : > { %649 = vmatmul.mubr.f32.gmra.mrb[22].mxu0 %v315_v45 }
  0xcd   : > { %1482 = vmatmul.mubr.f32.gmra.mrb[22].mxu1 %v315_v45  ;;  %654 = vmatprep.mubr.f32.mxu0 %v3211_v0 }
  0xce   : > { %1487 = vmatprep.mubr.f32.mxu1 %v3211_v0 }
  0xd0   : > { %655 = vmatmul.mubr.f32.gmra.mrb[24].mxu0 %v316_v46 }
  0xd1   : > { %1488 = vmatmul.mubr.f32.gmra.mrb[24].mxu1 %v316_v46  ;;  %660 = vmatprep.mubr.f32.mxu0 %v3211_v0 }
  0xd2   : > { %1493 = vmatprep.mubr.f32.mxu1 %v3211_v0 }
  0xd4   : > { %661 = vmatmul.mubr.f32.gmra.mrb[26].mxu0 %v317_v47 }
  0xd5   : > { %1494 = vmatmul.mubr.f32.gmra.mrb[26].mxu1 %v317_v47  ;;  %666 = vmatprep.mubr.f32.mxu0 %v3211_v0 }
  0xd6   : > { %1499 = vmatprep.mubr.f32.mxu1 %v3211_v0 }
  0xd8   : > { %667 = vmatmul.mubr.f32.gmra.mrb[28].mxu0 %v318_v48 }
  0xd9   : > { %1500 = vmatmul.mubr.f32.gmra.mrb[28].mxu1 %v318_v48  ;;  %672 = vmatprep.mubr.f32.mxu0 %v3211_v0 }
  0xda   : > { %1505 = vmatprep.mubr.f32.mxu1 %v3211_v0 }
  0xdc   : > { %673 = vmatmul.mubr.f32.gmra.mrb[30].mxu0 %v319_v49 }
  0xdd   : > { %1506 = vmatmul.mubr.f32.gmra.mrb[30].mxu1 %v319_v49  ;;  %678 = vmatprep.mubr.f32.mxu0 %v3211_v0 }
  0xde   : > { %1511 = vmatprep.mubr.f32.mxu1 %v3211_v0 }
  0xe0   : > { %679 = vmatmul.mubr.f32.gmra.mrb[32].mxu0 %v320_v50 }
  0xe1   : > { %1512 = vmatmul.mubr.f32.gmra.mrb[32].mxu1 %v320_v50  ;;  %684 = vmatprep.mubr.f32.mxu0 %v3211_v0 }
  0xe2   : > { %1517 = vmatprep.mubr.f32.mxu1 %v3211_v0 }
  0xe4   : > { %685 = vmatmul.mubr.f32.gmra.mrb[34].mxu0 %v321_v51 }
  0xe5   : > { %1518 = vmatmul.mubr.f32.gmra.mrb[34].mxu1 %v321_v51  ;;  %690 = vmatprep.mubr.f32.mxu0 %v3211_v0 }
  0xe6   : > { %1523 = vmatprep.mubr.f32.mxu1 %v3211_v0 }
  0xe8   : > { %691 = vmatmul.mubr.f32.gmra.mrb[36].mxu0 %v322_v52 }
  0xe9   : > { %1524 = vmatmul.mubr.f32.gmra.mrb[36].mxu1 %v322_v52  ;;  %696 = vmatprep.mubr.f32.mxu0 %v3211_v0  ;;  %v359_v52 = vld [vmem:[%s3422_s23 + $0x1b8] sm:$0xff] }
  0xea   : > { %1529 = vmatprep.mubr.f32.mxu1 %v3211_v0 }
  0xec   : > { %697 = vmatmul.mubr.f32.gmra.mrb[38].mxu0 %v323_v53 }
  0xed   : > { %1530 = vmatmul.mubr.f32.gmra.mrb[38].mxu1 %v323_v53  ;;  %702 = vmatprep.mubr.f32.mxu0 %v3211_v0 }
  0xee   : > { %1535 = vmatprep.mubr.f32.mxu1 %v3211_v0 }
  0xf0   : > { %703 = vmatmul.mubr.f32.gmra.mrb[40].mxu0 %v324_v54 }
  0xf1   : > { %1536 = vmatmul.mubr.f32.gmra.mrb[40].mxu1 %v324_v54  ;;  %708 = vmatprep.mubr.f32.mxu0 %v3211_v0 }
  0xf2   : > { %1541 = vmatprep.mubr.f32.mxu1 %v3211_v0 }
  0xf4   : > { %709 = vmatmul.mubr.f32.gmra.mrb[42].mxu0 %v325_v55 }
  0xf5   : > { %1542 = vmatmul.mubr.f32.gmra.mrb[42].mxu1 %v325_v55  ;;  %714 = vmatprep.mubr.f32.mxu0 %v3211_v0 }
  0xf6   : > { %1547 = vmatprep.mubr.f32.mxu1 %v3211_v0 }
  0xf8   : > { %715 = vmatmul.mubr.f32.gmra.mrb[44].mxu0 %v326_v56 }
  0xf9   : > { %1548 = vmatmul.mubr.f32.gmra.mrb[44].mxu1 %v326_v56  ;;  %720 = vmatprep.mubr.f32.mxu0 %v3211_v0 }
  0xfa   : > { %1553 = vmatprep.mubr.f32.mxu1 %v3211_v0 }
  0xfc   : > { %721 = vmatmul.mubr.f32.gmra.mrb[46].mxu0 %v327_v57 }
  0xfd   : > { %1554 = vmatmul.mubr.f32.gmra.mrb[46].mxu1 %v327_v57  ;;  %726 = vmatprep.mubr.f32.mxu0 %v3211_v0 }
  0xfe   : > { %1559 = vmatprep.mubr.f32.mxu1 %v3211_v0 }
 0x100   : > { %727 = vmatmul.mubr.f32.gmra.mrb[48].mxu0 %v328_v58 }
 0x101   : > { %1560 = vmatmul.mubr.f32.gmra.mrb[48].mxu1 %v328_v58  ;;  %732 = vmatprep.mubr.f32.mxu0 %v3211_v0 }
 0x102   : > { %1565 = vmatprep.mubr.f32.mxu1 %v3211_v0 }
 0x104   : > { %733 = vmatmul.mubr.f32.gmra.mrb[50].mxu0 %v329_v59 }
 0x105   : > { %1566 = vmatmul.mubr.f32.gmra.mrb[50].mxu1 %v329_v59  ;;  %738 = vmatprep.mubr.f32.mxu0 %v3211_v0 }
 0x106   : > { %1571 = vmatprep.mubr.f32.mxu1 %v3211_v0 }
 0x108   : > { %739 = vmatmul.mubr.f32.gmra.mrb[52].mxu0 %v330_v60 }
 0x109   : > { %1572 = vmatmul.mubr.f32.gmra.mrb[52].mxu1 %v330_v60  ;;  %744 = vmatprep.mubr.f32.mxu0 %v3211_v0 }
 0x10a   : > { %1577 = vmatprep.mubr.f32.mxu1 %v3211_v0 }
 0x10c   : > { %745 = vmatmul.mubr.f32.gmra.mrb[54].mxu0 %v331_v61 }
 0x10d   : > { %1578 = vmatmul.mubr.f32.gmra.mrb[54].mxu1 %v331_v61  ;;  %750 = vmatprep.mubr.f32.mxu0 %v3211_v0  ;;  %v360_v61 = vld [vmem:[%s3422_s23 + $0x1c0] sm:$0xff] }
 0x10e   : > { %1583 = vmatprep.mubr.f32.mxu1 %v3211_v0 }
 0x110   : > { %751 = vmatmul.mubr.f32.gmra.mrb[56].mxu0 %v332_v62 }
 0x111   : > { %1584 = vmatmul.mubr.f32.gmra.mrb[56].mxu1 %v332_v62  ;;  %756 = vmatprep.mubr.f32.mxu0 %v3211_v0 }
 0x112   : > { %1589 = vmatprep.mubr.f32.mxu1 %v3211_v0 }
 0x114   : > { %757 = vmatmul.mubr.f32.gmra.mrb[58].mxu0 %v333_v63 }
 0x115   : > { %1590 = vmatmul.mubr.f32.gmra.mrb[58].mxu1 %v333_v63  ;;  %762 = vmatprep.mubr.f32.mxu0 %v3211_v0 }
 0x116   : > { %1595 = vmatprep.mubr.f32.mxu1 %v3211_v0 }
 0x118   : > { %763 = vmatmul.mubr.f32.gmra.mrb[60].mxu0 %v334_v1 }
 0x119   : > { %1596 = vmatmul.mubr.f32.gmra.mrb[60].mxu1 %v334_v1  ;;  %768 = vmatprep.mubr.f32.mxu0 %v3211_v0 }
 0x11a   : > { %1601 = vmatprep.mubr.f32.mxu1 %v3211_v0 }
 0x11c   : > { %769 = vmatmul.mubr.f32.gmra.mrb[62].mxu0 %v335_v2 }
 0x11d   : > { %1602 = vmatmul.mubr.f32.gmra.mrb[62].mxu1 %v335_v2  ;;  %774 = vmatprep.mubr.f32.mxu0 %v3211_v0 }
 0x11e   : > { %1607 = vmatprep.mubr.f32.mxu1 %v3211_v0 }
 0x120   : > { %775 = vmatmul.mubr.f32.gmra.mrb[64].mxu0 %v336_v3 }
 0x121   : > { %1608 = vmatmul.mubr.f32.gmra.mrb[64].mxu1 %v336_v3  ;;  %780 = vmatprep.mubr.f32.mxu0 %v3211_v0 }
 0x122   : > { %1613 = vmatprep.mubr.f32.mxu1 %v3211_v0 }
 0x124   : > { %781 = vmatmul.mubr.f32.gmra.mrb[66].mxu0 %v337_v4 }
 0x125   : > { %1614 = vmatmul.mubr.f32.gmra.mrb[66].mxu1 %v337_v4  ;;  %786 = vmatprep.mubr.f32.mxu0 %v3211_v0 }
 0x126   : > { %1619 = vmatprep.mubr.f32.mxu1 %v3211_v0 }
 0x128   : > { %787 = vmatmul.mubr.f32.gmra.mrb[68].mxu0 %v338_v5 }
 0x129   : > { %1620 = vmatmul.mubr.f32.gmra.mrb[68].mxu1 %v338_v5  ;;  %792 = vmatprep.mubr.f32.mxu0 %v3211_v0 }
 0x12a   : > { %1625 = vmatprep.mubr.f32.mxu1 %v3211_v0 }
 0x12c   : > { %793 = vmatmul.mubr.f32.gmra.mrb[70].mxu0 %v339_v6 }
 0x12d   : > { %1626 = vmatmul.mubr.f32.gmra.mrb[70].mxu1 %v339_v6  ;;  %798 = vmatprep.mubr.f32.mxu0 %v3211_v0 }
 0x12e   : > { %1631 = vmatprep.mubr.f32.mxu1 %v3211_v0 }
 0x130   : > { %799 = vmatmul.mubr.f32.gmra.mrb[72].mxu0 %v340_v7 }
 0x131   : > { %1632 = vmatmul.mubr.f32.gmra.mrb[72].mxu1 %v340_v7  ;;  %804 = vmatprep.mubr.f32.mxu0 %v3211_v0  ;;  %v361_v7 = vld [vmem:[%s3422_s23 + $0x1c8] sm:$0xff] }
 0x132   : > { %1637 = vmatprep.mubr.f32.mxu1 %v3211_v0 }
 0x134   : > { %805 = vmatmul.mubr.f32.gmra.mrb[74].mxu0 %v341_v8 }
 0x135   : > { %1638 = vmatmul.mubr.f32.gmra.mrb[74].mxu1 %v341_v8  ;;  %810 = vmatprep.mubr.f32.mxu0 %v3211_v0 }
 0x136   : > { %1643 = vmatprep.mubr.f32.mxu1 %v3211_v0 }
 0x138   : > { %811 = vmatmul.mubr.f32.gmra.mrb[76].mxu0 %v342_v9 }
 0x139   : > { %1644 = vmatmul.mubr.f32.gmra.mrb[76].mxu1 %v342_v9  ;;  %816 = vmatprep.mubr.f32.mxu0 %v3211_v0 }
 0x13a   : > { %1649 = vmatprep.mubr.f32.mxu1 %v3211_v0 }
 0x13c   : > { %817 = vmatmul.mubr.f32.gmra.mrb[78].mxu0 %v343_v10 }
 0x13d   : > { %1650 = vmatmul.mubr.f32.gmra.mrb[78].mxu1 %v343_v10  ;;  %822 = vmatprep.mubr.f32.mxu0 %v3211_v0 }
 0x13e   : > { %1655 = vmatprep.mubr.f32.mxu1 %v3211_v0 }
 0x140   : > { %823 = vmatmul.mubr.f32.gmra.mrb[80].mxu0 %v344_v11 }
 0x141   : > { %1656 = vmatmul.mubr.f32.gmra.mrb[80].mxu1 %v344_v11  ;;  %828 = vmatprep.mubr.f32.mxu0 %v3211_v0 }
 0x142   : > { %1661 = vmatprep.mubr.f32.mxu1 %v3211_v0 }
 0x144   : > { %829 = vmatmul.mubr.f32.gmra.mrb[82].mxu0 %v345_v12 }
 0x145   : > { %1662 = vmatmul.mubr.f32.gmra.mrb[82].mxu1 %v345_v12  ;;  %834 = vmatprep.mubr.f32.mxu0 %v3211_v0 }
 0x146   : > { %1667 = vmatprep.mubr.f32.mxu1 %v3211_v0 }
 0x148   : > { %835 = vmatmul.mubr.f32.gmra.mrb[84].mxu0 %v346_v13 }
 0x149   : > { %1668 = vmatmul.mubr.f32.gmra.mrb[84].mxu1 %v346_v13  ;;  %840 = vmatprep.mubr.f32.mxu0 %v3211_v0 }
 0x14a   : > { %1673 = vmatprep.mubr.f32.mxu1 %v3211_v0 }
 0x14c   : > { %841 = vmatmul.mubr.f32.gmra.mrb[86].mxu0 %v347_v14 }
 0x14d   : > { %1674 = vmatmul.mubr.f32.gmra.mrb[86].mxu1 %v347_v14  ;;  %846 = vmatprep.mubr.f32.mxu0 %v3211_v0 }
 0x14e   : > { %1679 = vmatprep.mubr.f32.mxu1 %v3211_v0 }
 0x150   : > { %847 = vmatmul.mubr.f32.gmra.mrb[88].mxu0 %v348_v15 }
 0x151   : > { %1680 = vmatmul.mubr.f32.gmra.mrb[88].mxu1 %v348_v15  ;;  %852 = vmatprep.mubr.f32.mxu0 %v3211_v0 }
 0x152   : > { %1685 = vmatprep.mubr.f32.mxu1 %v3211_v0 }
 0x154   : > { %853 = vmatmul.mubr.f32.gmra.mrb[90].mxu0 %v349_v16 }
 0x155   : > { %1686 = vmatmul.mubr.f32.gmra.mrb[90].mxu1 %v349_v16  ;;  %858 = vmatprep.mubr.f32.mxu0 %v3211_v0  ;;  %v362_v16 = vld [vmem:[%s3422_s23 + $0x1d0] sm:$0xff] }
 0x156   : > { %1691 = vmatprep.mubr.f32.mxu1 %v3211_v0 }
 0x158   : > { %859 = vmatmul.mubr.f32.gmra.mrb[92].mxu0 %v350_v17 }
 0x159   : > { %1692 = vmatmul.mubr.f32.gmra.mrb[92].mxu1 %v350_v17  ;;  %864 = vmatprep.mubr.f32.mxu0 %v3211_v0 }
 0x15a   : > { %1697 = vmatprep.mubr.f32.mxu1 %v3211_v0 }
 0x15c   : > { %865 = vmatmul.mubr.f32.gmra.mrb[94].mxu0 %v351_v18 }
 0x15d   : > { %1698 = vmatmul.mubr.f32.gmra.mrb[94].mxu1 %v351_v18  ;;  %870 = vmatprep.mubr.f32.mxu0 %v3211_v0 }
 0x15e   : > { %1703 = vmatprep.mubr.f32.mxu1 %v3211_v0 }
 0x160   : > { %871 = vmatmul.mubr.f32.gmra.mrb[96].mxu0 %v352_v19 }
 0x161   : > { %1704 = vmatmul.mubr.f32.gmra.mrb[96].mxu1 %v352_v19  ;;  %876 = vmatprep.mubr.f32.mxu0 %v3211_v0 }
 0x162   : > { %1709 = vmatprep.mubr.f32.mxu1 %v3211_v0 }
 0x164   : > { %877 = vmatmul.mubr.f32.gmra.mrb[98].mxu0 %v353_v20 }
 0x165   : > { %1710 = vmatmul.mubr.f32.gmra.mrb[98].mxu1 %v353_v20  ;;  %882 = vmatprep.mubr.f32.mxu0 %v3211_v0 }
 0x166   : > { %1715 = vmatprep.mubr.f32.mxu1 %v3211_v0 }
 0x168   : > { %883 = vmatmul.mubr.f32.gmra.mrb[100].mxu0 %v354_v22 }
 0x169   : > { %1716 = vmatmul.mubr.f32.gmra.mrb[100].mxu1 %v354_v22  ;;  %888 = vmatprep.mubr.f32.mxu0 %v3211_v0 }
 0x16a   : > { %1721 = vmatprep.mubr.f32.mxu1 %v3211_v0 }
 0x16c   : > { %889 = vmatmul.mubr.f32.gmra.mrb[102].mxu0 %v355_v24 }
 0x16d   : > { %1722 = vmatmul.mubr.f32.gmra.mrb[102].mxu1 %v355_v24  ;;  %894 = vmatprep.mubr.f32.mxu0 %v3211_v0 }
 0x16e   : > { %1727 = vmatprep.mubr.f32.mxu1 %v3211_v0 }
 0x170   : > { %895 = vmatmul.mubr.f32.gmra.mrb[104].mxu0 %v356_v26 }
 0x171   : > { %1728 = vmatmul.mubr.f32.gmra.mrb[104].mxu1 %v356_v26  ;;  %900 = vmatprep.mubr.f32.mxu0 %v3211_v0 }
 0x172   : > { %1733 = vmatprep.mubr.f32.mxu1 %v3211_v0 }
 0x173   : > { %v584_v36 = vpop.f32.mrb[0].mxu0 }
 0x174   : > { %v585_v37 = vadd.f32 %v584_v36, %v3661_v31  ;;  %v1417_v38 = vpop.f32.mrb[0].mxu1  ;;  %v586_v39 = vpop.f32.mrb[1].mxu0  ;;  %901 = vmatmul.mubr.f32.gmra.mrb[106].mxu0 %v357_v34 }
 0x175   : > { %v1418_v40 = vadd.f32 %v1417_v38, %v3664_v32  ;;  %v587_v41 = vadd.f32 %v586_v39, %v3666_v33  ;;  %v1419_v42 = vpop.f32.mrb[1].mxu1  ;;  %1734 = vmatmul.mubr.f32.gmra.mrb[106].mxu1 %v357_v34  ;;  %906 = vmatprep.mubr.f32.mxu0 %v3211_v0  ;;  %v364_v38 = vld [vmem:[%s3422_s23 + $0x1e0] sm:$0xff] }
 0x176   : > { %2184 = vst [vmem:[%s3677_s1] sm:$0xff] %v585_v37  ;;  %v1420_v44 = vadd.f32 %v1419_v42, %v3670_v35  ;;  %1739 = vmatprep.mubr.f32.mxu1 %v3211_v0 }
 0x177   : > { %2186 = vst [vmem:[%s3677_s1 + $0x10] sm:$0xff] %v1418_v40  ;;  %2185 = vst [vmem:[%s3677_s1 + $0x8] sm:$0xff] %v587_v41  ;;  %v590_v45 = vpop.f32.mrb[2].mxu0 }
 0x178   : > { %2187 = vst [vmem:[%s3677_s1 + $0x18] sm:$0xff] %v1420_v44  ;;  %v591_v46 = vadd.f32 %v590_v45, %v3661_v31  ;;  %v1423_v47 = vpop.f32.mrb[2].mxu1  ;;  %v592_v48 = vpop.f32.mrb[3].mxu0  ;;  %907 = vmatmul.mubr.f32.gmra.mrb[108].mxu0 %v358_v43 }
 0x179   : > { %v1424_v49 = vadd.f32 %v1423_v47, %v3664_v32  ;;  %v593_v50 = vadd.f32 %v592_v48, %v3666_v33  ;;  %v1425_v51 = vpop.f32.mrb[3].mxu1  ;;  %1740 = vmatmul.mubr.f32.gmra.mrb[108].mxu1 %v358_v43  ;;  %912 = vmatprep.mubr.f32.mxu0 %v3211_v0  ;;  %v365_v47 = vld [vmem:[%s3422_s23 + $0x1e8] sm:$0xff] }
 0x17a   : > { %2188 = vst [vmem:[%s3677_s1 + $0x20] sm:$0xff] %v591_v46  ;;  %v1426_v53 = vadd.f32 %v1425_v51, %v3670_v35  ;;  %1745 = vmatprep.mubr.f32.mxu1 %v3211_v0 }
 0x17b   : > { %2190 = vst [vmem:[%s3677_s1 + $0x30] sm:$0xff] %v1424_v49  ;;  %2189 = vst [vmem:[%s3677_s1 + $0x28] sm:$0xff] %v593_v50  ;;  %v596_v54 = vpop.f32.mrb[4].mxu0 }
 0x17c   : > { %2191 = vst [vmem:[%s3677_s1 + $0x38] sm:$0xff] %v1426_v53  ;;  %v597_v55 = vadd.f32 %v596_v54, %v3661_v31  ;;  %v1429_v56 = vpop.f32.mrb[4].mxu1  ;;  %v598_v57 = vpop.f32.mrb[5].mxu0  ;;  %913 = vmatmul.mubr.f32.gmra.mrb[110].mxu0 %v359_v52 }
 0x17d   : > { %v1430_v58 = vadd.f32 %v1429_v56, %v3664_v32  ;;  %v599_v59 = vadd.f32 %v598_v57, %v3666_v33  ;;  %v1431_v60 = vpop.f32.mrb[5].mxu1  ;;  %1746 = vmatmul.mubr.f32.gmra.mrb[110].mxu1 %v359_v52  ;;  %918 = vmatprep.mubr.f32.mxu0 %v3211_v0  ;;  %v366_v56 = vld [vmem:[%s3422_s23 + $0x1f0] sm:$0xff] }
 0x17e   : > { %2192 = vst [vmem:[%s3677_s1 + $0x40] sm:$0xff] %v597_v55  ;;  %v1432_v62 = vadd.f32 %v1431_v60, %v3670_v35  ;;  %1751 = vmatprep.mubr.f32.mxu1 %v3211_v0 }
 0x17f   : > { %2194 = vst [vmem:[%s3677_s1 + $0x50] sm:$0xff] %v1430_v58  ;;  %2193 = vst [vmem:[%s3677_s1 + $0x48] sm:$0xff] %v599_v59  ;;  %v602_v63 = vpop.f32.mrb[6].mxu0 }
 0x180   : > { %2195 = vst [vmem:[%s3677_s1 + $0x58] sm:$0xff] %v1432_v62  ;;  %v603_v1 = vadd.f32 %v602_v63, %v3661_v31  ;;  %v1435_v2 = vpop.f32.mrb[6].mxu1  ;;  %v604_v3 = vpop.f32.mrb[7].mxu0  ;;  %919 = vmatmul.mubr.f32.gmra.mrb[112].mxu0 %v360_v61 }
 0x181   : > { %v1436_v4 = vadd.f32 %v1435_v2, %v3664_v32  ;;  %v605_v5 = vadd.f32 %v604_v3, %v3666_v33  ;;  %v1437_v6 = vpop.f32.mrb[7].mxu1  ;;  %1752 = vmatmul.mubr.f32.gmra.mrb[112].mxu1 %v360_v61  ;;  %924 = vmatprep.mubr.f32.mxu0 %v3211_v0  ;;  %v367_v2 = vld [vmem:[%s3422_s23 + $0x1f8] sm:$0xff] }
 0x182   : > { %2196 = vst [vmem:[%s3677_s1 + $0x60] sm:$0xff] %v603_v1  ;;  %v1438_v8 = vadd.f32 %v1437_v6, %v3670_v35  ;;  %1757 = vmatprep.mubr.f32.mxu1 %v3211_v0 }
 0x183   : > { %2198 = vst [vmem:[%s3677_s1 + $0x70] sm:$0xff] %v1436_v4  ;;  %2197 = vst [vmem:[%s3677_s1 + $0x68] sm:$0xff] %v605_v5  ;;  %v608_v9 = vpop.f32.mrb[8].mxu0 }
 0x184   : > { %2199 = vst [vmem:[%s3677_s1 + $0x78] sm:$0xff] %v1438_v8  ;;  %v609_v10 = vadd.f32 %v608_v9, %v3661_v31  ;;  %v1441_v11 = vpop.f32.mrb[8].mxu1  ;;  %v610_v12 = vpop.f32.mrb[9].mxu0  ;;  %925 = vmatmul.mubr.f32.gmra.mrb[114].mxu0 %v361_v7 }
 0x185   : > { %v1442_v13 = vadd.f32 %v1441_v11, %v3664_v32  ;;  %v611_v14 = vadd.f32 %v610_v12, %v3666_v33  ;;  %v1443_v15 = vpop.f32.mrb[9].mxu1  ;;  %1758 = vmatmul.mubr.f32.gmra.mrb[114].mxu1 %v361_v7  ;;  %930 = vmatprep.mubr.f32.mxu0 %v3211_v0  ;;  %v368_v11 = vld [vmem:[%s3422_s23 + $0x200] sm:$0xff] }
 0x186   : > { %2200 = vst [vmem:[%s3677_s1 + $0x80] sm:$0xff] %v609_v10  ;;  %v1444_v17 = vadd.f32 %v1443_v15, %v3670_v35  ;;  %1763 = vmatprep.mubr.f32.mxu1 %v3211_v0 }
 0x187   : > { %2202 = vst [vmem:[%s3677_s1 + $0x90] sm:$0xff] %v1442_v13  ;;  %2201 = vst [vmem:[%s3677_s1 + $0x88] sm:$0xff] %v611_v14  ;;  %v614_v18 = vpop.f32.mrb[10].mxu0 }
 0x188   : > { %2203 = vst [vmem:[%s3677_s1 + $0x98] sm:$0xff] %v1444_v17  ;;  %v615_v19 = vadd.f32 %v614_v18, %v3661_v31  ;;  %v1447_v20 = vpop.f32.mrb[10].mxu1  ;;  %v616_v21 = vpop.f32.mrb[11].mxu0  ;;  %931 = vmatmul.mubr.f32.gmra.mrb[116].mxu0 %v362_v16 }
 0x189   : > { %v1448_v22 = vadd.f32 %v1447_v20, %v3664_v32  ;;  %v617_v23 = vadd.f32 %v616_v21, %v3666_v33  ;;  %v1449_v24 = vpop.f32.mrb[11].mxu1  ;;  %1764 = vmatmul.mubr.f32.gmra.mrb[116].mxu1 %v362_v16  ;;  %936 = vmatprep.mubr.f32.mxu0 %v3211_v0  ;;  %v369_v20 = vld [vmem:[%s3422_s23 + $0x208] sm:$0xff] }
 0x18a   : > { %2204 = vst [vmem:[%s3677_s1 + $0xa0] sm:$0xff] %v615_v19  ;;  %v1450_v26 = vadd.f32 %v1449_v24, %v3670_v35  ;;  %1769 = vmatprep.mubr.f32.mxu1 %v3211_v0 }
 0x18b   : > { %2206 = vst [vmem:[%s3677_s1 + $0xb0] sm:$0xff] %v1448_v22  ;;  %2205 = vst [vmem:[%s3677_s1 + $0xa8] sm:$0xff] %v617_v23  ;;  %v620_v27 = vpop.f32.mrb[12].mxu0 }
 0x18c   : > { %2207 = vst [vmem:[%s3677_s1 + $0xb8] sm:$0xff] %v1450_v26  ;;  %v621_v28 = vadd.f32 %v620_v27, %v3661_v31  ;;  %v1453_v29 = vpop.f32.mrb[12].mxu1  ;;  %v622_v30 = vpop.f32.mrb[13].mxu0  ;;  %937 = vmatmul.mubr.f32.gmra.mrb[118].mxu0 %v363_v25 }
 0x18d   : > { %v1454_v34 = vadd.f32 %v1453_v29, %v3664_v32  ;;  %v623_v36 = vadd.f32 %v622_v30, %v3666_v33  ;;  %v1455_v37 = vpop.f32.mrb[13].mxu1  ;;  %1770 = vmatmul.mubr.f32.gmra.mrb[118].mxu1 %v363_v25  ;;  %942 = vmatprep.mubr.f32.mxu0 %v3211_v0  ;;  %v370_v29 = vld [vmem:[%s3422_s23 + $0x210] sm:$0xff] }
 0x18e   : > { %2208 = vst [vmem:[%s3677_s1 + $0xc0] sm:$0xff] %v621_v28  ;;  %v1456_v39 = vadd.f32 %v1455_v37, %v3670_v35  ;;  %1775 = vmatprep.mubr.f32.mxu1 %v3211_v0 }
 0x18f   : > { %2210 = vst [vmem:[%s3677_s1 + $0xd0] sm:$0xff] %v1454_v34  ;;  %2209 = vst [vmem:[%s3677_s1 + $0xc8] sm:$0xff] %v623_v36  ;;  %v626_v40 = vpop.f32.mrb[14].mxu0 }
 0x190   : > { %2211 = vst [vmem:[%s3677_s1 + $0xd8] sm:$0xff] %v1456_v39  ;;  %v627_v41 = vadd.f32 %v626_v40, %v3661_v31  ;;  %v1459_v42 = vpop.f32.mrb[14].mxu1  ;;  %v628_v43 = vpop.f32.mrb[15].mxu0  ;;  %943 = vmatmul.mubr.f32.gmra.mrb[120].mxu0 %v364_v38 }
 0x191   : > { %v1460_v44 = vadd.f32 %v1459_v42, %v3664_v32  ;;  %v629_v45 = vadd.f32 %v628_v43, %v3666_v33  ;;  %v1461_v46 = vpop.f32.mrb[15].mxu1  ;;  %1776 = vmatmul.mubr.f32.gmra.mrb[120].mxu1 %v364_v38  ;;  %948 = vmatprep.mubr.f32.mxu0 %v3211_v0  ;;  %v371_v42 = vld [vmem:[%s3422_s23 + $0x218] sm:$0xff] }
 0x192   : > { %2212 = vst [vmem:[%s3677_s1 + $0xe0] sm:$0xff] %v627_v41  ;;  %v1462_v48 = vadd.f32 %v1461_v46, %v3670_v35  ;;  %1781 = vmatprep.mubr.f32.mxu1 %v3211_v0 }
 0x193   : > { %2214 = vst [vmem:[%s3677_s1 + $0xf0] sm:$0xff] %v1460_v44  ;;  %2213 = vst [vmem:[%s3677_s1 + $0xe8] sm:$0xff] %v629_v45  ;;  %v632_v49 = vpop.f32.mrb[16].mxu0 }
 0x194   : > { %2215 = vst [vmem:[%s3677_s1 + $0xf8] sm:$0xff] %v1462_v48  ;;  %v633_v50 = vadd.f32 %v632_v49, %v3661_v31  ;;  %v1465_v51 = vpop.f32.mrb[16].mxu1  ;;  %v634_v52 = vpop.f32.mrb[17].mxu0  ;;  %949 = vmatmul.mubr.f32.gmra.mrb[122].mxu0 %v365_v47 }
 0x195   : > { %v1466_v53 = vadd.f32 %v1465_v51, %v3664_v32  ;;  %v635_v54 = vadd.f32 %v634_v52, %v3666_v33  ;;  %v1467_v55 = vpop.f32.mrb[17].mxu1  ;;  %1782 = vmatmul.mubr.f32.gmra.mrb[122].mxu1 %v365_v47  ;;  %954 = vmatprep.mubr.f32.mxu0 %v3211_v0  ;;  %v372_v51 = vld [vmem:[%s3422_s23 + $0x220] sm:$0xff] }
 0x196   : > { %2216 = vst [vmem:[%s3677_s1 + $0x100] sm:$0xff] %v633_v50  ;;  %v1468_v57 = vadd.f32 %v1467_v55, %v3670_v35  ;;  %1787 = vmatprep.mubr.f32.mxu1 %v3211_v0 }
 0x197   : > { %2218 = vst [vmem:[%s3677_s1 + $0x110] sm:$0xff] %v1466_v53  ;;  %2217 = vst [vmem:[%s3677_s1 + $0x108] sm:$0xff] %v635_v54  ;;  %v638_v58 = vpop.f32.mrb[18].mxu0 }
 0x198   : > { %2219 = vst [vmem:[%s3677_s1 + $0x118] sm:$0xff] %v1468_v57  ;;  %v639_v59 = vadd.f32 %v638_v58, %v3661_v31  ;;  %v1471_v60 = vpop.f32.mrb[18].mxu1  ;;  %v640_v61 = vpop.f32.mrb[19].mxu0  ;;  %955 = vmatmul.mubr.f32.gmra.mrb[124].mxu0 %v366_v56 }
 0x199   : > { %v1472_v62 = vadd.f32 %v1471_v60, %v3664_v32  ;;  %v641_v63 = vadd.f32 %v640_v61, %v3666_v33  ;;  %v1473_v1 = vpop.f32.mrb[19].mxu1  ;;  %1788 = vmatmul.mubr.f32.gmra.mrb[124].mxu1 %v366_v56  ;;  %960 = vmatprep.mubr.f32.mxu0 %v3211_v0  ;;  %v373_v60 = vld [vmem:[%s3422_s23 + $0x228] sm:$0xff] }
 0x19a   : > { %2220 = vst [vmem:[%s3677_s1 + $0x120] sm:$0xff] %v639_v59  ;;  %v1474_v3 = vadd.f32 %v1473_v1, %v3670_v35  ;;  %1793 = vmatprep.mubr.f32.mxu1 %v3211_v0 }
 0x19b   : > { %2222 = vst [vmem:[%s3677_s1 + $0x130] sm:$0xff] %v1472_v62  ;;  %2221 = vst [vmem:[%s3677_s1 + $0x128] sm:$0xff] %v641_v63  ;;  %v644_v4 = vpop.f32.mrb[20].mxu0 }
 0x19c   : > { %2223 = vst [vmem:[%s3677_s1 + $0x138] sm:$0xff] %v1474_v3  ;;  %v645_v5 = vadd.f32 %v644_v4, %v3661_v31  ;;  %v1477_v6 = vpop.f32.mrb[20].mxu1  ;;  %v646_v7 = vpop.f32.mrb[21].mxu0  ;;  %961 = vmatmul.mubr.f32.gmra.mrb[126].mxu0 %v367_v2 }
 0x19d   : > { %v1478_v8 = vadd.f32 %v1477_v6, %v3664_v32  ;;  %v647_v9 = vadd.f32 %v646_v7, %v3666_v33  ;;  %v1479_v10 = vpop.f32.mrb[21].mxu1  ;;  %1794 = vmatmul.mubr.f32.gmra.mrb[126].mxu1 %v367_v2  ;;  %966 = vmatprep.mubr.f32.mxu0 %v3211_v0  ;;  %v374_v6 = vld [vmem:[%s3422_s23 + $0x230] sm:$0xff] }
 0x19e   : > { %2224 = vst [vmem:[%s3677_s1 + $0x140] sm:$0xff] %v645_v5  ;;  %v1480_v12 = vadd.f32 %v1479_v10, %v3670_v35  ;;  %1799 = vmatprep.mubr.f32.mxu1 %v3211_v0 }
 0x19f   : > { %2226 = vst [vmem:[%s3677_s1 + $0x150] sm:$0xff] %v1478_v8  ;;  %2225 = vst [vmem:[%s3677_s1 + $0x148] sm:$0xff] %v647_v9  ;;  %v650_v13 = vpop.f32.mrb[22].mxu0 }
 0x1a0   : > { %2227 = vst [vmem:[%s3677_s1 + $0x158] sm:$0xff] %v1480_v12  ;;  %v651_v14 = vadd.f32 %v650_v13, %v3661_v31  ;;  %v1483_v15 = vpop.f32.mrb[22].mxu1  ;;  %v652_v16 = vpop.f32.mrb[23].mxu0  ;;  %967 = vmatmul.mubr.f32.gmra.mrb[128].mxu0 %v368_v11 }
 0x1a1   : > { %v1484_v17 = vadd.f32 %v1483_v15, %v3664_v32  ;;  %v653_v18 = vadd.f32 %v652_v16, %v3666_v33  ;;  %v1485_v19 = vpop.f32.mrb[23].mxu1  ;;  %1800 = vmatmul.mubr.f32.gmra.mrb[128].mxu1 %v368_v11  ;;  %972 = vmatprep.mubr.f32.mxu0 %v3211_v0  ;;  %v375_v15 = vld [vmem:[%s3422_s23 + $0x238] sm:$0xff] }
 0x1a2   : > { %2228 = vst [vmem:[%s3677_s1 + $0x160] sm:$0xff] %v651_v14  ;;  %v1486_v21 = vadd.f32 %v1485_v19, %v3670_v35  ;;  %1805 = vmatprep.mubr.f32.mxu1 %v3211_v0 }
 0x1a3   : > { %2230 = vst [vmem:[%s3677_s1 + $0x170] sm:$0xff] %v1484_v17  ;;  %2229 = vst [vmem:[%s3677_s1 + $0x168] sm:$0xff] %v653_v18  ;;  %v656_v22 = vpop.f32.mrb[24].mxu0 }
 0x1a4   : > { %2231 = vst [vmem:[%s3677_s1 + $0x178] sm:$0xff] %v1486_v21  ;;  %v657_v23 = vadd.f32 %v656_v22, %v3661_v31  ;;  %v1489_v24 = vpop.f32.mrb[24].mxu1  ;;  %v658_v25 = vpop.f32.mrb[25].mxu0  ;;  %973 = vmatmul.mubr.f32.gmra.mrb[130].mxu0 %v369_v20 }
 0x1a5   : > { %v1490_v26 = vadd.f32 %v1489_v24, %v3664_v32  ;;  %v659_v27 = vadd.f32 %v658_v25, %v3666_v33  ;;  %v1491_v28 = vpop.f32.mrb[25].mxu1  ;;  %1806 = vmatmul.mubr.f32.gmra.mrb[130].mxu1 %v369_v20  ;;  %978 = vmatprep.mubr.f32.mxu0 %v3211_v0  ;;  %v376_v24 = vld [vmem:[%s3422_s23 + $0x240] sm:$0xff] }
 0x1a6   : > { %2232 = vst [vmem:[%s3677_s1 + $0x180] sm:$0xff] %v657_v23  ;;  %v1492_v30 = vadd.f32 %v1491_v28, %v3670_v35  ;;  %1811 = vmatprep.mubr.f32.mxu1 %v3211_v0 }
 0x1a7   : > { %2234 = vst [vmem:[%s3677_s1 + $0x190] sm:$0xff] %v1490_v26  ;;  %2233 = vst [vmem:[%s3677_s1 + $0x188] sm:$0xff] %v659_v27  ;;  %v662_v34 = vpop.f32.mrb[26].mxu0 }
 0x1a8   : > { %2235 = vst [vmem:[%s3677_s1 + $0x198] sm:$0xff] %v1492_v30  ;;  %v663_v36 = vadd.f32 %v662_v34, %v3661_v31  ;;  %v1495_v37 = vpop.f32.mrb[26].mxu1  ;;  %v664_v38 = vpop.f32.mrb[27].mxu0  ;;  %979 = vmatmul.mubr.f32.gmra.mrb[132].mxu0 %v370_v29 }
 0x1a9   : > { %v1496_v39 = vadd.f32 %v1495_v37, %v3664_v32  ;;  %v665_v40 = vadd.f32 %v664_v38, %v3666_v33  ;;  %v1497_v41 = vpop.f32.mrb[27].mxu1  ;;  %1812 = vmatmul.mubr.f32.gmra.mrb[132].mxu1 %v370_v29  ;;  %984 = vmatprep.mubr.f32.mxu0 %v3211_v0  ;;  %v377_v37 = vld [vmem:[%s3422_s23 + $0x248] sm:$0xff] }
 0x1aa   : > { %2236 = vst [vmem:[%s3677_s1 + $0x1a0] sm:$0xff] %v663_v36  ;;  %v1498_v43 = vadd.f32 %v1497_v41, %v3670_v35  ;;  %1817 = vmatprep.mubr.f32.mxu1 %v3211_v0 }
 0x1ab   : > { %2238 = vst [vmem:[%s3677_s1 + $0x1b0] sm:$0xff] %v1496_v39  ;;  %2237 = vst [vmem:[%s3677_s1 + $0x1a8] sm:$0xff] %v665_v40  ;;  %v668_v44 = vpop.f32.mrb[28].mxu0 }
 0x1ac   : > { %2239 = vst [vmem:[%s3677_s1 + $0x1b8] sm:$0xff] %v1498_v43  ;;  %v669_v45 = vadd.f32 %v668_v44, %v3661_v31  ;;  %v1501_v46 = vpop.f32.mrb[28].mxu1  ;;  %v670_v47 = vpop.f32.mrb[29].mxu0  ;;  %985 = vmatmul.mubr.f32.gmra.mrb[134].mxu0 %v371_v42 }
 0x1ad   : > { %v1502_v48 = vadd.f32 %v1501_v46, %v3664_v32  ;;  %v671_v49 = vadd.f32 %v670_v47, %v3666_v33  ;;  %v1503_v50 = vpop.f32.mrb[29].mxu1  ;;  %1818 = vmatmul.mubr.f32.gmra.mrb[134].mxu1 %v371_v42  ;;  %990 = vmatprep.mubr.f32.mxu0 %v3211_v0  ;;  %v378_v46 = vld [vmem:[%s3422_s23 + $0x250] sm:$0xff] }
 0x1ae   : > { %2240 = vst [vmem:[%s3677_s1 + $0x1c0] sm:$0xff] %v669_v45  ;;  %v1504_v52 = vadd.f32 %v1503_v50, %v3670_v35  ;;  %1823 = vmatprep.mubr.f32.mxu1 %v3211_v0 }
 0x1af   : > { %2242 = vst [vmem:[%s3677_s1 + $0x1d0] sm:$0xff] %v1502_v48  ;;  %2241 = vst [vmem:[%s3677_s1 + $0x1c8] sm:$0xff] %v671_v49  ;;  %v674_v53 = vpop.f32.mrb[30].mxu0 }
 0x1b0   : > { %2243 = vst [vmem:[%s3677_s1 + $0x1d8] sm:$0xff] %v1504_v52  ;;  %v675_v54 = vadd.f32 %v674_v53, %v3661_v31  ;;  %v1507_v55 = vpop.f32.mrb[30].mxu1  ;;  %v676_v56 = vpop.f32.mrb[31].mxu0  ;;  %991 = vmatmul.mubr.f32.gmra.mrb[136].mxu0 %v372_v51 }
 0x1b1   : > { %v1508_v57 = vadd.f32 %v1507_v55, %v3664_v32  ;;  %v677_v58 = vadd.f32 %v676_v56, %v3666_v33  ;;  %v1509_v59 = vpop.f32.mrb[31].mxu1  ;;  %1824 = vmatmul.mubr.f32.gmra.mrb[136].mxu1 %v372_v51  ;;  %996 = vmatprep.mubr.f32.mxu0 %v3211_v0  ;;  %v379_v55 = vld [vmem:[%s3422_s23 + $0x258] sm:$0xff] }
 0x1b2   : > { %2244 = vst [vmem:[%s3677_s1 + $0x1e0] sm:$0xff] %v675_v54  ;;  %v1510_v61 = vadd.f32 %v1509_v59, %v3670_v35  ;;  %1829 = vmatprep.mubr.f32.mxu1 %v3211_v0 }
 0x1b3   : > { %2246 = vst [vmem:[%s3677_s1 + $0x1f0] sm:$0xff] %v1508_v57  ;;  %2245 = vst [vmem:[%s3677_s1 + $0x1e8] sm:$0xff] %v677_v58  ;;  %v680_v62 = vpop.f32.mrb[32].mxu0 }
 0x1b4   : > { %2247 = vst [vmem:[%s3677_s1 + $0x1f8] sm:$0xff] %v1510_v61  ;;  %v681_v63 = vadd.f32 %v680_v62, %v3661_v31  ;;  %v1513_v1 = vpop.f32.mrb[32].mxu1  ;;  %v682_v2 = vpop.f32.mrb[33].mxu0  ;;  %997 = vmatmul.mubr.f32.gmra.mrb[138].mxu0 %v373_v60 }
 0x1b5   : > { %v1514_v3 = vadd.f32 %v1513_v1, %v3664_v32  ;;  %v683_v4 = vadd.f32 %v682_v2, %v3666_v33  ;;  %v1515_v5 = vpop.f32.mrb[33].mxu1  ;;  %1830 = vmatmul.mubr.f32.gmra.mrb[138].mxu1 %v373_v60  ;;  %1002 = vmatprep.mubr.f32.mxu0 %v3211_v0  ;;  %v380_v1 = vld [vmem:[%s3422_s23 + $0x260] sm:$0xff] }
 0x1b6   : > { %2248 = vst [vmem:[%s3677_s1 + $0x200] sm:$0xff] %v681_v63  ;;  %v1516_v7 = vadd.f32 %v1515_v5, %v3670_v35  ;;  %1835 = vmatprep.mubr.f32.mxu1 %v3211_v0 }
 0x1b7   : > { %2250 = vst [vmem:[%s3677_s1 + $0x210] sm:$0xff] %v1514_v3  ;;  %2249 = vst [vmem:[%s3677_s1 + $0x208] sm:$0xff] %v683_v4  ;;  %v686_v8 = vpop.f32.mrb[34].mxu0 }
 0x1b8   : > { %2251 = vst [vmem:[%s3677_s1 + $0x218] sm:$0xff] %v1516_v7  ;;  %v687_v9 = vadd.f32 %v686_v8, %v3661_v31  ;;  %v1519_v10 = vpop.f32.mrb[34].mxu1  ;;  %v688_v11 = vpop.f32.mrb[35].mxu0  ;;  %1003 = vmatmul.mubr.f32.gmra.mrb[140].mxu0 %v374_v6 }
 0x1b9   : > { %v1520_v12 = vadd.f32 %v1519_v10, %v3664_v32  ;;  %v689_v13 = vadd.f32 %v688_v11, %v3666_v33  ;;  %v1521_v14 = vpop.f32.mrb[35].mxu1  ;;  %1836 = vmatmul.mubr.f32.gmra.mrb[140].mxu1 %v374_v6  ;;  %1008 = vmatprep.mubr.f32.mxu0 %v3211_v0  ;;  %v381_v10 = vld [vmem:[%s3422_s23 + $0x268] sm:$0xff] }
 0x1ba   : > { %2252 = vst [vmem:[%s3677_s1 + $0x220] sm:$0xff] %v687_v9  ;;  %v1522_v16 = vadd.f32 %v1521_v14, %v3670_v35  ;;  %1841 = vmatprep.mubr.f32.mxu1 %v3211_v0 }
 0x1bb   : > { %2254 = vst [vmem:[%s3677_s1 + $0x230] sm:$0xff] %v1520_v12  ;;  %2253 = vst [vmem:[%s3677_s1 + $0x228] sm:$0xff] %v689_v13  ;;  %v692_v17 = vpop.f32.mrb[36].mxu0 }
 0x1bc   : > { %2255 = vst [vmem:[%s3677_s1 + $0x238] sm:$0xff] %v1522_v16  ;;  %v693_v18 = vadd.f32 %v692_v17, %v3661_v31  ;;  %v1525_v19 = vpop.f32.mrb[36].mxu1  ;;  %v694_v20 = vpop.f32.mrb[37].mxu0  ;;  %1009 = vmatmul.mubr.f32.gmra.mrb[142].mxu0 %v375_v15 }
 0x1bd   : > { %v1526_v21 = vadd.f32 %v1525_v19, %v3664_v32  ;;  %v695_v22 = vadd.f32 %v694_v20, %v3666_v33  ;;  %v1527_v23 = vpop.f32.mrb[37].mxu1  ;;  %1842 = vmatmul.mubr.f32.gmra.mrb[142].mxu1 %v375_v15  ;;  %1014 = vmatprep.mubr.f32.mxu0 %v3211_v0  ;;  %v382_v19 = vld [vmem:[%s3422_s23 + $0x270] sm:$0xff] }
 0x1be   : > { %2256 = vst [vmem:[%s3677_s1 + $0x240] sm:$0xff] %v693_v18  ;;  %v1528_v25 = vadd.f32 %v1527_v23, %v3670_v35  ;;  %1847 = vmatprep.mubr.f32.mxu1 %v3211_v0 }
 0x1bf   : > { %2258 = vst [vmem:[%s3677_s1 + $0x250] sm:$0xff] %v1526_v21  ;;  %2257 = vst [vmem:[%s3677_s1 + $0x248] sm:$0xff] %v695_v22  ;;  %v698_v26 = vpop.f32.mrb[38].mxu0 }
 0x1c0   : > { %2259 = vst [vmem:[%s3677_s1 + $0x258] sm:$0xff] %v1528_v25  ;;  %v699_v27 = vadd.f32 %v698_v26, %v3661_v31  ;;  %v1531_v28 = vpop.f32.mrb[38].mxu1  ;;  %v700_v29 = vpop.f32.mrb[39].mxu0  ;;  %1015 = vmatmul.mubr.f32.gmra.mrb[144].mxu0 %v376_v24 }
 0x1c1   : > { %v1532_v30 = vadd.f32 %v1531_v28, %v3664_v32  ;;  %v701_v34 = vadd.f32 %v700_v29, %v3666_v33  ;;  %v1533_v36 = vpop.f32.mrb[39].mxu1  ;;  %1848 = vmatmul.mubr.f32.gmra.mrb[144].mxu1 %v376_v24  ;;  %1020 = vmatprep.mubr.f32.mxu0 %v3211_v0  ;;  %v383_v28 = vld [vmem:[%s3422_s23 + $0x278] sm:$0xff] }
 0x1c2   : > { %2260 = vst [vmem:[%s3677_s1 + $0x260] sm:$0xff] %v699_v27  ;;  %v1534_v38 = vadd.f32 %v1533_v36, %v3670_v35  ;;  %1853 = vmatprep.mubr.f32.mxu1 %v3211_v0 }
 0x1c3   : > { %2262 = vst [vmem:[%s3677_s1 + $0x270] sm:$0xff] %v1532_v30  ;;  %2261 = vst [vmem:[%s3677_s1 + $0x268] sm:$0xff] %v701_v34  ;;  %v704_v39 = vpop.f32.mrb[40].mxu0 }
 0x1c4   : > { %2263 = vst [vmem:[%s3677_s1 + $0x278] sm:$0xff] %v1534_v38  ;;  %v705_v40 = vadd.f32 %v704_v39, %v3661_v31  ;;  %v1537_v41 = vpop.f32.mrb[40].mxu1  ;;  %v706_v42 = vpop.f32.mrb[41].mxu0  ;;  %1021 = vmatmul.mubr.f32.gmra.mrb[146].mxu0 %v377_v37 }
 0x1c5   : > { %v1538_v43 = vadd.f32 %v1537_v41, %v3664_v32  ;;  %v707_v44 = vadd.f32 %v706_v42, %v3666_v33  ;;  %v1539_v45 = vpop.f32.mrb[41].mxu1  ;;  %1854 = vmatmul.mubr.f32.gmra.mrb[146].mxu1 %v377_v37  ;;  %1026 = vmatprep.mubr.f32.mxu0 %v3211_v0  ;;  %v384_v41 = vld [vmem:[%s3422_s23 + $0x280] sm:$0xff] }
 0x1c6   : > { %2264 = vst [vmem:[%s3677_s1 + $0x280] sm:$0xff] %v705_v40  ;;  %v1540_v47 = vadd.f32 %v1539_v45, %v3670_v35  ;;  %1859 = vmatprep.mubr.f32.mxu1 %v3211_v0 }
 0x1c7   : > { %2266 = vst [vmem:[%s3677_s1 + $0x290] sm:$0xff] %v1538_v43  ;;  %2265 = vst [vmem:[%s3677_s1 + $0x288] sm:$0xff] %v707_v44  ;;  %v710_v48 = vpop.f32.mrb[42].mxu0 }
 0x1c8   : > { %2267 = vst [vmem:[%s3677_s1 + $0x298] sm:$0xff] %v1540_v47  ;;  %v711_v49 = vadd.f32 %v710_v48, %v3661_v31  ;;  %v1543_v50 = vpop.f32.mrb[42].mxu1  ;;  %v712_v51 = vpop.f32.mrb[43].mxu0  ;;  %1027 = vmatmul.mubr.f32.gmra.mrb[148].mxu0 %v378_v46 }
 0x1c9   : > { %v1544_v52 = vadd.f32 %v1543_v50, %v3664_v32  ;;  %v713_v53 = vadd.f32 %v712_v51, %v3666_v33  ;;  %v1545_v54 = vpop.f32.mrb[43].mxu1  ;;  %1860 = vmatmul.mubr.f32.gmra.mrb[148].mxu1 %v378_v46  ;;  %1032 = vmatprep.mubr.f32.mxu0 %v3211_v0  ;;  %v385_v50 = vld [vmem:[%s3422_s23 + $0x288] sm:$0xff] }
 0x1ca   : > { %2268 = vst [vmem:[%s3677_s1 + $0x2a0] sm:$0xff] %v711_v49  ;;  %v1546_v56 = vadd.f32 %v1545_v54, %v3670_v35  ;;  %1865 = vmatprep.mubr.f32.mxu1 %v3211_v0 }
 0x1cb   : > { %2270 = vst [vmem:[%s3677_s1 + $0x2b0] sm:$0xff] %v1544_v52  ;;  %2269 = vst [vmem:[%s3677_s1 + $0x2a8] sm:$0xff] %v713_v53  ;;  %v716_v57 = vpop.f32.mrb[44].mxu0 }
 0x1cc   : > { %2271 = vst [vmem:[%s3677_s1 + $0x2b8] sm:$0xff] %v1546_v56  ;;  %v717_v58 = vadd.f32 %v716_v57, %v3661_v31  ;;  %v1549_v59 = vpop.f32.mrb[44].mxu1  ;;  %v718_v60 = vpop.f32.mrb[45].mxu0  ;;  %1033 = vmatmul.mubr.f32.gmra.mrb[150].mxu0 %v379_v55 }
 0x1cd   : > { %v1550_v61 = vadd.f32 %v1549_v59, %v3664_v32  ;;  %v719_v62 = vadd.f32 %v718_v60, %v3666_v33  ;;  %v1551_v63 = vpop.f32.mrb[45].mxu1  ;;  %1866 = vmatmul.mubr.f32.gmra.mrb[150].mxu1 %v379_v55  ;;  %1038 = vmatprep.mubr.f32.mxu0 %v3211_v0  ;;  %v386_v59 = vld [vmem:[%s3422_s23 + $0x290] sm:$0xff] }
 0x1ce   : > { %2272 = vst [vmem:[%s3677_s1 + $0x2c0] sm:$0xff] %v717_v58  ;;  %v1552_v2 = vadd.f32 %v1551_v63, %v3670_v35  ;;  %1871 = vmatprep.mubr.f32.mxu1 %v3211_v0 }
 0x1cf   : > { %2274 = vst [vmem:[%s3677_s1 + $0x2d0] sm:$0xff] %v1550_v61  ;;  %2273 = vst [vmem:[%s3677_s1 + $0x2c8] sm:$0xff] %v719_v62  ;;  %v722_v3 = vpop.f32.mrb[46].mxu0 }
 0x1d0   : > { %2275 = vst [vmem:[%s3677_s1 + $0x2d8] sm:$0xff] %v1552_v2  ;;  %v723_v4 = vadd.f32 %v722_v3, %v3661_v31  ;;  %v1555_v5 = vpop.f32.mrb[46].mxu1  ;;  %v724_v6 = vpop.f32.mrb[47].mxu0  ;;  %1039 = vmatmul.mubr.f32.gmra.mrb[152].mxu0 %v380_v1 }
 0x1d1   : > { %v1556_v7 = vadd.f32 %v1555_v5, %v3664_v32  ;;  %v725_v8 = vadd.f32 %v724_v6, %v3666_v33  ;;  %v1557_v9 = vpop.f32.mrb[47].mxu1  ;;  %1872 = vmatmul.mubr.f32.gmra.mrb[152].mxu1 %v380_v1  ;;  %1044 = vmatprep.mubr.f32.mxu0 %v3211_v0  ;;  %v387_v5 = vld [vmem:[%s3422_s23 + $0x298] sm:$0xff] }
 0x1d2   : > { %2276 = vst [vmem:[%s3677_s1 + $0x2e0] sm:$0xff] %v723_v4  ;;  %v1558_v11 = vadd.f32 %v1557_v9, %v3670_v35  ;;  %1877 = vmatprep.mubr.f32.mxu1 %v3211_v0 }
 0x1d3   : > { %2278 = vst [vmem:[%s3677_s1 + $0x2f0] sm:$0xff] %v1556_v7  ;;  %2277 = vst [vmem:[%s3677_s1 + $0x2e8] sm:$0xff] %v725_v8  ;;  %v728_v12 = vpop.f32.mrb[48].mxu0 }
 0x1d4   : > { %2279 = vst [vmem:[%s3677_s1 + $0x2f8] sm:$0xff] %v1558_v11  ;;  %v729_v13 = vadd.f32 %v728_v12, %v3661_v31  ;;  %v1561_v14 = vpop.f32.mrb[48].mxu1  ;;  %v730_v15 = vpop.f32.mrb[49].mxu0  ;;  %1045 = vmatmul.mubr.f32.gmra.mrb[154].mxu0 %v381_v10 }
 0x1d5   : > { %v1562_v16 = vadd.f32 %v1561_v14, %v3664_v32  ;;  %v731_v17 = vadd.f32 %v730_v15, %v3666_v33  ;;  %v1563_v18 = vpop.f32.mrb[49].mxu1  ;;  %1878 = vmatmul.mubr.f32.gmra.mrb[154].mxu1 %v381_v10  ;;  %1050 = vmatprep.mubr.f32.mxu0 %v3211_v0  ;;  %v388_v14 = vld [vmem:[%s3422_s23 + $0x2a0] sm:$0xff] }
 0x1d6   : > { %2280 = vst [vmem:[%s3677_s1 + $0x300] sm:$0xff] %v729_v13  ;;  %v1564_v20 = vadd.f32 %v1563_v18, %v3670_v35  ;;  %1883 = vmatprep.mubr.f32.mxu1 %v3211_v0 }
 0x1d7   : > { %2282 = vst [vmem:[%s3677_s1 + $0x310] sm:$0xff] %v1562_v16  ;;  %2281 = vst [vmem:[%s3677_s1 + $0x308] sm:$0xff] %v731_v17  ;;  %v734_v21 = vpop.f32.mrb[50].mxu0 }
 0x1d8   : > { %2283 = vst [vmem:[%s3677_s1 + $0x318] sm:$0xff] %v1564_v20  ;;  %v735_v22 = vadd.f32 %v734_v21, %v3661_v31  ;;  %v1567_v23 = vpop.f32.mrb[50].mxu1  ;;  %v736_v24 = vpop.f32.mrb[51].mxu0  ;;  %1051 = vmatmul.mubr.f32.gmra.mrb[156].mxu0 %v382_v19 }
 0x1d9   : > { %v1568_v25 = vadd.f32 %v1567_v23, %v3664_v32  ;;  %v737_v26 = vadd.f32 %v736_v24, %v3666_v33  ;;  %v1569_v27 = vpop.f32.mrb[51].mxu1  ;;  %1884 = vmatmul.mubr.f32.gmra.mrb[156].mxu1 %v382_v19  ;;  %1056 = vmatprep.mubr.f32.mxu0 %v3211_v0  ;;  %v389_v23 = vld [vmem:[%s3422_s23 + $0x2a8] sm:$0xff] }
 0x1da   : > { %2284 = vst [vmem:[%s3677_s1 + $0x320] sm:$0xff] %v735_v22  ;;  %v1570_v29 = vadd.f32 %v1569_v27, %v3670_v35  ;;  %1889 = vmatprep.mubr.f32.mxu1 %v3211_v0 }
 0x1db   : > { %2286 = vst [vmem:[%s3677_s1 + $0x330] sm:$0xff] %v1568_v25  ;;  %2285 = vst [vmem:[%s3677_s1 + $0x328] sm:$0xff] %v737_v26  ;;  %v740_v30 = vpop.f32.mrb[52].mxu0 }
 0x1dc   : > { %2287 = vst [vmem:[%s3677_s1 + $0x338] sm:$0xff] %v1570_v29  ;;  %v741_v34 = vadd.f32 %v740_v30, %v3661_v31  ;;  %v1573_v36 = vpop.f32.mrb[52].mxu1  ;;  %v742_v37 = vpop.f32.mrb[53].mxu0  ;;  %1057 = vmatmul.mubr.f32.gmra.mrb[158].mxu0 %v383_v28 }
 0x1dd   : > { %v1574_v38 = vadd.f32 %v1573_v36, %v3664_v32  ;;  %v743_v39 = vadd.f32 %v742_v37, %v3666_v33  ;;  %v1575_v40 = vpop.f32.mrb[53].mxu1  ;;  %1890 = vmatmul.mubr.f32.gmra.mrb[158].mxu1 %v383_v28  ;;  %1062 = vmatprep.mubr.f32.mxu0 %v3211_v0  ;;  %v390_v36 = vld [vmem:[%s3422_s23 + $0x2b0] sm:$0xff] }
 0x1de   : > { %2288 = vst [vmem:[%s3677_s1 + $0x340] sm:$0xff] %v741_v34  ;;  %v1576_v42 = vadd.f32 %v1575_v40, %v3670_v35  ;;  %1895 = vmatprep.mubr.f32.mxu1 %v3211_v0 }
 0x1df   : > { %2290 = vst [vmem:[%s3677_s1 + $0x350] sm:$0xff] %v1574_v38  ;;  %2289 = vst [vmem:[%s3677_s1 + $0x348] sm:$0xff] %v743_v39  ;;  %v746_v43 = vpop.f32.mrb[54].mxu0 }
 0x1e0   : > { %2291 = vst [vmem:[%s3677_s1 + $0x358] sm:$0xff] %v1576_v42  ;;  %v747_v44 = vadd.f32 %v746_v43, %v3661_v31  ;;  %v1579_v45 = vpop.f32.mrb[54].mxu1  ;;  %v748_v46 = vpop.f32.mrb[55].mxu0  ;;  %1063 = vmatmul.mubr.f32.gmra.mrb[160].mxu0 %v384_v41 }
 0x1e1   : > { %v1580_v47 = vadd.f32 %v1579_v45, %v3664_v32  ;;  %v749_v48 = vadd.f32 %v748_v46, %v3666_v33  ;;  %v1581_v49 = vpop.f32.mrb[55].mxu1  ;;  %1896 = vmatmul.mubr.f32.gmra.mrb[160].mxu1 %v384_v41  ;;  %1068 = vmatprep.mubr.f32.mxu0 %v3211_v0  ;;  %v391_v45 = vld [vmem:[%s3422_s23 + $0x2b8] sm:$0xff] }
 0x1e2   : > { %2292 = vst [vmem:[%s3677_s1 + $0x360] sm:$0xff] %v747_v44  ;;  %v1582_v51 = vadd.f32 %v1581_v49, %v3670_v35  ;;  %1901 = vmatprep.mubr.f32.mxu1 %v3211_v0 }
 0x1e3   : > { %2294 = vst [vmem:[%s3677_s1 + $0x370] sm:$0xff] %v1580_v47  ;;  %2293 = vst [vmem:[%s3677_s1 + $0x368] sm:$0xff] %v749_v48  ;;  %v752_v52 = vpop.f32.mrb[56].mxu0 }
 0x1e4   : > { %2295 = vst [vmem:[%s3677_s1 + $0x378] sm:$0xff] %v1582_v51  ;;  %v753_v53 = vadd.f32 %v752_v52, %v3661_v31  ;;  %v1585_v54 = vpop.f32.mrb[56].mxu1  ;;  %v754_v55 = vpop.f32.mrb[57].mxu0  ;;  %1069 = vmatmul.mubr.f32.gmra.mrb[162].mxu0 %v385_v50 }
 0x1e5   : > { %v1586_v56 = vadd.f32 %v1585_v54, %v3664_v32  ;;  %v755_v57 = vadd.f32 %v754_v55, %v3666_v33  ;;  %v1587_v58 = vpop.f32.mrb[57].mxu1  ;;  %1902 = vmatmul.mubr.f32.gmra.mrb[162].mxu1 %v385_v50  ;;  %1074 = vmatprep.mubr.f32.mxu0 %v3211_v0  ;;  %v392_v54 = vld [vmem:[%s3422_s23 + $0x2c0] sm:$0xff] }
 0x1e6   : > { %2296 = vst [vmem:[%s3677_s1 + $0x380] sm:$0xff] %v753_v53  ;;  %v1588_v60 = vadd.f32 %v1587_v58, %v3670_v35  ;;  %1907 = vmatprep.mubr.f32.mxu1 %v3211_v0 }
 0x1e7   : > { %2298 = vst [vmem:[%s3677_s1 + $0x390] sm:$0xff] %v1586_v56  ;;  %2297 = vst [vmem:[%s3677_s1 + $0x388] sm:$0xff] %v755_v57  ;;  %v758_v61 = vpop.f32.mrb[58].mxu0 }
 0x1e8   : > { %2299 = vst [vmem:[%s3677_s1 + $0x398] sm:$0xff] %v1588_v60  ;;  %v759_v62 = vadd.f32 %v758_v61, %v3661_v31  ;;  %v1591_v63 = vpop.f32.mrb[58].mxu1  ;;  %v760_v1 = vpop.f32.mrb[59].mxu0  ;;  %1075 = vmatmul.mubr.f32.gmra.mrb[164].mxu0 %v386_v59 }
 0x1e9   : > { %v1592_v2 = vadd.f32 %v1591_v63, %v3664_v32  ;;  %v761_v3 = vadd.f32 %v760_v1, %v3666_v33  ;;  %v1593_v4 = vpop.f32.mrb[59].mxu1  ;;  %1908 = vmatmul.mubr.f32.gmra.mrb[164].mxu1 %v386_v59  ;;  %1080 = vmatprep.mubr.f32.mxu0 %v3211_v0  ;;  %v393_v63 = vld [vmem:[%s3422_s23 + $0x2c8] sm:$0xff] }
 0x1ea   : > { %2300 = vst [vmem:[%s3677_s1 + $0x3a0] sm:$0xff] %v759_v62  ;;  %v1594_v6 = vadd.f32 %v1593_v4, %v3670_v35  ;;  %1913 = vmatprep.mubr.f32.mxu1 %v3211_v0 }
 0x1eb   : > { %2302 = vst [vmem:[%s3677_s1 + $0x3b0] sm:$0xff] %v1592_v2  ;;  %2301 = vst [vmem:[%s3677_s1 + $0x3a8] sm:$0xff] %v761_v3  ;;  %v764_v7 = vpop.f32.mrb[60].mxu0 }
 0x1ec   : > { %2303 = vst [vmem:[%s3677_s1 + $0x3b8] sm:$0xff] %v1594_v6  ;;  %v765_v8 = vadd.f32 %v764_v7, %v3661_v31  ;;  %v1597_v9 = vpop.f32.mrb[60].mxu1  ;;  %v766_v10 = vpop.f32.mrb[61].mxu0  ;;  %1081 = vmatmul.mubr.f32.gmra.mrb[166].mxu0 %v387_v5 }
 0x1ed   : > { %v1598_v11 = vadd.f32 %v1597_v9, %v3664_v32  ;;  %v767_v12 = vadd.f32 %v766_v10, %v3666_v33  ;;  %v1599_v13 = vpop.f32.mrb[61].mxu1  ;;  %1914 = vmatmul.mubr.f32.gmra.mrb[166].mxu1 %v387_v5  ;;  %1086 = vmatprep.mubr.f32.mxu0 %v3211_v0  ;;  %v394_v9 = vld [vmem:[%s3422_s23 + $0x2d0] sm:$0xff] }
 0x1ee   : > { %2304 = vst [vmem:[%s3677_s1 + $0x3c0] sm:$0xff] %v765_v8  ;;  %v1600_v15 = vadd.f32 %v1599_v13, %v3670_v35  ;;  %1919 = vmatprep.mubr.f32.mxu1 %v3211_v0 }
 0x1ef   : > { %2306 = vst [vmem:[%s3677_s1 + $0x3d0] sm:$0xff] %v1598_v11  ;;  %2305 = vst [vmem:[%s3677_s1 + $0x3c8] sm:$0xff] %v767_v12  ;;  %v770_v16 = vpop.f32.mrb[62].mxu0 }
 0x1f0   : > { %2307 = vst [vmem:[%s3677_s1 + $0x3d8] sm:$0xff] %v1600_v15  ;;  %v771_v17 = vadd.f32 %v770_v16, %v3661_v31  ;;  %v1603_v18 = vpop.f32.mrb[62].mxu1  ;;  %v772_v19 = vpop.f32.mrb[63].mxu0  ;;  %1087 = vmatmul.mubr.f32.gmra.mrb[168].mxu0 %v388_v14 }
 0x1f1   : > { %v1604_v20 = vadd.f32 %v1603_v18, %v3664_v32  ;;  %v773_v21 = vadd.f32 %v772_v19, %v3666_v33  ;;  %v1605_v22 = vpop.f32.mrb[63].mxu1  ;;  %1920 = vmatmul.mubr.f32.gmra.mrb[168].mxu1 %v388_v14  ;;  %1092 = vmatprep.mubr.f32.mxu0 %v3211_v0  ;;  %v395_v18 = vld [vmem:[%s3422_s23 + $0x2d8] sm:$0xff] }
 0x1f2   : > { %2308 = vst [vmem:[%s3677_s1 + $0x3e0] sm:$0xff] %v771_v17  ;;  %v1606_v24 = vadd.f32 %v1605_v22, %v3670_v35  ;;  %1925 = vmatprep.mubr.f32.mxu1 %v3211_v0 }
 0x1f3   : > { %2310 = vst [vmem:[%s3677_s1 + $0x3f0] sm:$0xff] %v1604_v20  ;;  %2309 = vst [vmem:[%s3677_s1 + $0x3e8] sm:$0xff] %v773_v21  ;;  %v776_v25 = vpop.f32.mrb[64].mxu0 }
 0x1f4   : > { %2311 = vst [vmem:[%s3677_s1 + $0x3f8] sm:$0xff] %v1606_v24  ;;  %v777_v26 = vadd.f32 %v776_v25, %v3661_v31  ;;  %v1609_v27 = vpop.f32.mrb[64].mxu1  ;;  %v778_v28 = vpop.f32.mrb[65].mxu0  ;;  %1093 = vmatmul.mubr.f32.gmra.mrb[170].mxu0 %v389_v23 }
 0x1f5   : > { %v1610_v29 = vadd.f32 %v1609_v27, %v3664_v32  ;;  %v779_v30 = vadd.f32 %v778_v28, %v3666_v33  ;;  %v1611_v34 = vpop.f32.mrb[65].mxu1  ;;  %1926 = vmatmul.mubr.f32.gmra.mrb[170].mxu1 %v389_v23  ;;  %1098 = vmatprep.mubr.f32.mxu0 %v3211_v0  ;;  %v396_v27 = vld [vmem:[%s3422_s23 + $0x2e0] sm:$0xff] }
 0x1f6   : > { %2312 = vst [vmem:[%s3677_s1 + $0x400] sm:$0xff] %v777_v26  ;;  %v1612_v37 = vadd.f32 %v1611_v34, %v3670_v35  ;;  %1931 = vmatprep.mubr.f32.mxu1 %v3211_v0 }
 0x1f7   : > { %2314 = vst [vmem:[%s3677_s1 + $0x410] sm:$0xff] %v1610_v29  ;;  %2313 = vst [vmem:[%s3677_s1 + $0x408] sm:$0xff] %v779_v30  ;;  %v782_v38 = vpop.f32.mrb[66].mxu0 }
 0x1f8   : > { %2315 = vst [vmem:[%s3677_s1 + $0x418] sm:$0xff] %v1612_v37  ;;  %v783_v39 = vadd.f32 %v782_v38, %v3661_v31  ;;  %v1615_v40 = vpop.f32.mrb[66].mxu1  ;;  %v784_v41 = vpop.f32.mrb[67].mxu0  ;;  %1099 = vmatmul.mubr.f32.gmra.mrb[172].mxu0 %v390_v36 }
 0x1f9   : > { %v1616_v42 = vadd.f32 %v1615_v40, %v3664_v32  ;;  %v785_v43 = vadd.f32 %v784_v41, %v3666_v33  ;;  %v1617_v44 = vpop.f32.mrb[67].mxu1  ;;  %1932 = vmatmul.mubr.f32.gmra.mrb[172].mxu1 %v390_v36  ;;  %1104 = vmatprep.mubr.f32.mxu0 %v3211_v0  ;;  %v397_v40 = vld [vmem:[%s3422_s23 + $0x2e8] sm:$0xff] }
 0x1fa   : > { %2316 = vst [vmem:[%s3677_s1 + $0x420] sm:$0xff] %v783_v39  ;;  %v1618_v46 = vadd.f32 %v1617_v44, %v3670_v35  ;;  %1937 = vmatprep.mubr.f32.mxu1 %v3211_v0 }
 0x1fb   : > { %2318 = vst [vmem:[%s3677_s1 + $0x430] sm:$0xff] %v1616_v42  ;;  %2317 = vst [vmem:[%s3677_s1 + $0x428] sm:$0xff] %v785_v43  ;;  %v788_v47 = vpop.f32.mrb[68].mxu0 }
 0x1fc   : > { %2319 = vst [vmem:[%s3677_s1 + $0x438] sm:$0xff] %v1618_v46  ;;  %v789_v48 = vadd.f32 %v788_v47, %v3661_v31  ;;  %v1621_v49 = vpop.f32.mrb[68].mxu1  ;;  %v790_v50 = vpop.f32.mrb[69].mxu0  ;;  %1105 = vmatmul.mubr.f32.gmra.mrb[174].mxu0 %v391_v45 }
 0x1fd   : > { %v1622_v51 = vadd.f32 %v1621_v49, %v3664_v32  ;;  %v791_v52 = vadd.f32 %v790_v50, %v3666_v33  ;;  %v1623_v53 = vpop.f32.mrb[69].mxu1  ;;  %1938 = vmatmul.mubr.f32.gmra.mrb[174].mxu1 %v391_v45  ;;  %1110 = vmatprep.mubr.f32.mxu0 %v3211_v0  ;;  %v398_v49 = vld [vmem:[%s3422_s23 + $0x2f0] sm:$0xff] }
 0x1fe   : > { %2320 = vst [vmem:[%s3677_s1 + $0x440] sm:$0xff] %v789_v48  ;;  %v1624_v55 = vadd.f32 %v1623_v53, %v3670_v35  ;;  %1943 = vmatprep.mubr.f32.mxu1 %v3211_v0 }
 0x1ff   : > { %2322 = vst [vmem:[%s3677_s1 + $0x450] sm:$0xff] %v1622_v51  ;;  %2321 = vst [vmem:[%s3677_s1 + $0x448] sm:$0xff] %v791_v52  ;;  %v794_v56 = vpop.f32.mrb[70].mxu0 }
 0x200   : > { %2323 = vst [vmem:[%s3677_s1 + $0x458] sm:$0xff] %v1624_v55  ;;  %v795_v57 = vadd.f32 %v794_v56, %v3661_v31  ;;  %v1627_v58 = vpop.f32.mrb[70].mxu1  ;;  %v796_v59 = vpop.f32.mrb[71].mxu0  ;;  %1111 = vmatmul.mubr.f32.gmra.mrb[176].mxu0 %v392_v54 }
 0x201   : > { %v1628_v60 = vadd.f32 %v1627_v58, %v3664_v32  ;;  %v797_v61 = vadd.f32 %v796_v59, %v3666_v33  ;;  %v1629_v62 = vpop.f32.mrb[71].mxu1  ;;  %1944 = vmatmul.mubr.f32.gmra.mrb[176].mxu1 %v392_v54  ;;  %1116 = vmatprep.mubr.f32.mxu0 %v3211_v0  ;;  %v399_v58 = vld [vmem:[%s3422_s23 + $0x2f8] sm:$0xff] }
 0x202   : > { %2324 = vst [vmem:[%s3677_s1 + $0x460] sm:$0xff] %v795_v57  ;;  %v1630_v1 = vadd.f32 %v1629_v62, %v3670_v35  ;;  %1949 = vmatprep.mubr.f32.mxu1 %v3211_v0 }
 0x203   : > { %2326 = vst [vmem:[%s3677_s1 + $0x470] sm:$0xff] %v1628_v60  ;;  %2325 = vst [vmem:[%s3677_s1 + $0x468] sm:$0xff] %v797_v61  ;;  %v800_v2 = vpop.f32.mrb[72].mxu0 }
 0x204   : > { %2327 = vst [vmem:[%s3677_s1 + $0x478] sm:$0xff] %v1630_v1  ;;  %v801_v3 = vadd.f32 %v800_v2, %v3661_v31  ;;  %v1633_v4 = vpop.f32.mrb[72].mxu1  ;;  %v802_v5 = vpop.f32.mrb[73].mxu0  ;;  %1117 = vmatmul.mubr.f32.gmra.mrb[178].mxu0 %v393_v63 }
 0x205   : > { %v1634_v6 = vadd.f32 %v1633_v4, %v3664_v32  ;;  %v803_v7 = vadd.f32 %v802_v5, %v3666_v33  ;;  %v1635_v8 = vpop.f32.mrb[73].mxu1  ;;  %1950 = vmatmul.mubr.f32.gmra.mrb[178].mxu1 %v393_v63  ;;  %1122 = vmatprep.mubr.f32.mxu0 %v3211_v0  ;;  %v400_v4 = vld [vmem:[%s3422_s23 + $0x300] sm:$0xff] }
 0x206   : > { %2328 = vst [vmem:[%s3677_s1 + $0x480] sm:$0xff] %v801_v3  ;;  %v1636_v10 = vadd.f32 %v1635_v8, %v3670_v35  ;;  %1955 = vmatprep.mubr.f32.mxu1 %v3211_v0 }
 0x207   : > { %2330 = vst [vmem:[%s3677_s1 + $0x490] sm:$0xff] %v1634_v6  ;;  %2329 = vst [vmem:[%s3677_s1 + $0x488] sm:$0xff] %v803_v7  ;;  %v806_v11 = vpop.f32.mrb[74].mxu0 }
 0x208   : > { %2331 = vst [vmem:[%s3677_s1 + $0x498] sm:$0xff] %v1636_v10  ;;  %v807_v12 = vadd.f32 %v806_v11, %v3661_v31  ;;  %v1639_v13 = vpop.f32.mrb[74].mxu1  ;;  %v808_v14 = vpop.f32.mrb[75].mxu0  ;;  %1123 = vmatmul.mubr.f32.gmra.mrb[180].mxu0 %v394_v9 }
 0x209   : > { %v1640_v15 = vadd.f32 %v1639_v13, %v3664_v32  ;;  %v809_v16 = vadd.f32 %v808_v14, %v3666_v33  ;;  %v1641_v17 = vpop.f32.mrb[75].mxu1  ;;  %1956 = vmatmul.mubr.f32.gmra.mrb[180].mxu1 %v394_v9  ;;  %1128 = vmatprep.mubr.f32.mxu0 %v3211_v0  ;;  %v401_v13 = vld [vmem:[%s3422_s23 + $0x308] sm:$0xff] }
 0x20a   : > { %2332 = vst [vmem:[%s3677_s1 + $0x4a0] sm:$0xff] %v807_v12  ;;  %v1642_v19 = vadd.f32 %v1641_v17, %v3670_v35  ;;  %1961 = vmatprep.mubr.f32.mxu1 %v3211_v0 }
 0x20b   : > { %2334 = vst [vmem:[%s3677_s1 + $0x4b0] sm:$0xff] %v1640_v15  ;;  %2333 = vst [vmem:[%s3677_s1 + $0x4a8] sm:$0xff] %v809_v16  ;;  %v812_v20 = vpop.f32.mrb[76].mxu0 }
 0x20c   : > { %2335 = vst [vmem:[%s3677_s1 + $0x4b8] sm:$0xff] %v1642_v19  ;;  %v813_v21 = vadd.f32 %v812_v20, %v3661_v31  ;;  %v1645_v22 = vpop.f32.mrb[76].mxu1  ;;  %v814_v23 = vpop.f32.mrb[77].mxu0  ;;  %1129 = vmatmul.mubr.f32.gmra.mrb[182].mxu0 %v395_v18 }
 0x20d   : > { %v1646_v24 = vadd.f32 %v1645_v22, %v3664_v32  ;;  %v815_v25 = vadd.f32 %v814_v23, %v3666_v33  ;;  %v1647_v26 = vpop.f32.mrb[77].mxu1  ;;  %1962 = vmatmul.mubr.f32.gmra.mrb[182].mxu1 %v395_v18  ;;  %1134 = vmatprep.mubr.f32.mxu0 %v3211_v0  ;;  %v402_v22 = vld [vmem:[%s3422_s23 + $0x310] sm:$0xff] }
 0x20e   : > { %2336 = vst [vmem:[%s3677_s1 + $0x4c0] sm:$0xff] %v813_v21  ;;  %v1648_v28 = vadd.f32 %v1647_v26, %v3670_v35  ;;  %1967 = vmatprep.mubr.f32.mxu1 %v3211_v0 }
 0x20f   : > { %2338 = vst [vmem:[%s3677_s1 + $0x4d0] sm:$0xff] %v1646_v24  ;;  %2337 = vst [vmem:[%s3677_s1 + $0x4c8] sm:$0xff] %v815_v25  ;;  %v818_v29 = vpop.f32.mrb[78].mxu0 }
 0x210   : > { %2339 = vst [vmem:[%s3677_s1 + $0x4d8] sm:$0xff] %v1648_v28  ;;  %v819_v30 = vadd.f32 %v818_v29, %v3661_v31  ;;  %v1651_v34 = vpop.f32.mrb[78].mxu1  ;;  %v820_v36 = vpop.f32.mrb[79].mxu0  ;;  %1135 = vmatmul.mubr.f32.gmra.mrb[184].mxu0 %v396_v27 }
 0x211   : > { %v1652_v37 = vadd.f32 %v1651_v34, %v3664_v32  ;;  %v821_v38 = vadd.f32 %v820_v36, %v3666_v33  ;;  %v1653_v39 = vpop.f32.mrb[79].mxu1  ;;  %1968 = vmatmul.mubr.f32.gmra.mrb[184].mxu1 %v396_v27  ;;  %1140 = vmatprep.mubr.f32.mxu0 %v3211_v0  ;;  %v403_v34 = vld [vmem:[%s3422_s23 + $0x318] sm:$0xff] }
 0x212   : > { %2340 = vst [vmem:[%s3677_s1 + $0x4e0] sm:$0xff] %v819_v30  ;;  %v1654_v41 = vadd.f32 %v1653_v39, %v3670_v35  ;;  %1973 = vmatprep.mubr.f32.mxu1 %v3211_v0 }
 0x213   : > { %2342 = vst [vmem:[%s3677_s1 + $0x4f0] sm:$0xff] %v1652_v37  ;;  %2341 = vst [vmem:[%s3677_s1 + $0x4e8] sm:$0xff] %v821_v38  ;;  %v824_v42 = vpop.f32.mrb[80].mxu0 }
 0x214   : > { %2343 = vst [vmem:[%s3677_s1 + $0x4f8] sm:$0xff] %v1654_v41  ;;  %v825_v43 = vadd.f32 %v824_v42, %v3661_v31  ;;  %v1657_v44 = vpop.f32.mrb[80].mxu1  ;;  %v826_v45 = vpop.f32.mrb[81].mxu0  ;;  %1141 = vmatmul.mubr.f32.gmra.mrb[186].mxu0 %v397_v40 }
 0x215   : > { %v1658_v46 = vadd.f32 %v1657_v44, %v3664_v32  ;;  %v827_v47 = vadd.f32 %v826_v45, %v3666_v33  ;;  %v1659_v48 = vpop.f32.mrb[81].mxu1  ;;  %1974 = vmatmul.mubr.f32.gmra.mrb[186].mxu1 %v397_v40  ;;  %1146 = vmatprep.mubr.f32.mxu0 %v3211_v0  ;;  %v404_v44 = vld [vmem:[%s3422_s23 + $0x320] sm:$0xff] }
 0x216   : > { %2344 = vst [vmem:[%s3677_s1 + $0x500] sm:$0xff] %v825_v43  ;;  %v1660_v50 = vadd.f32 %v1659_v48, %v3670_v35  ;;  %1979 = vmatprep.mubr.f32.mxu1 %v3211_v0 }
 0x217   : > { %2346 = vst [vmem:[%s3677_s1 + $0x510] sm:$0xff] %v1658_v46  ;;  %2345 = vst [vmem:[%s3677_s1 + $0x508] sm:$0xff] %v827_v47  ;;  %v830_v51 = vpop.f32.mrb[82].mxu0 }
 0x218   : > { %2347 = vst [vmem:[%s3677_s1 + $0x518] sm:$0xff] %v1660_v50  ;;  %v831_v52 = vadd.f32 %v830_v51, %v3661_v31  ;;  %v1663_v53 = vpop.f32.mrb[82].mxu1  ;;  %v832_v54 = vpop.f32.mrb[83].mxu0  ;;  %1147 = vmatmul.mubr.f32.gmra.mrb[188].mxu0 %v398_v49 }
 0x219   : > { %v1664_v55 = vadd.f32 %v1663_v53, %v3664_v32  ;;  %v833_v56 = vadd.f32 %v832_v54, %v3666_v33  ;;  %v1665_v57 = vpop.f32.mrb[83].mxu1  ;;  %1980 = vmatmul.mubr.f32.gmra.mrb[188].mxu1 %v398_v49  ;;  %1152 = vmatprep.mubr.f32.mxu0 %v3211_v0  ;;  %v405_v53 = vld [vmem:[%s3422_s23 + $0x328] sm:$0xff] }
 0x21a   : > { %2348 = vst [vmem:[%s3677_s1 + $0x520] sm:$0xff] %v831_v52  ;;  %v1666_v59 = vadd.f32 %v1665_v57, %v3670_v35  ;;  %1985 = vmatprep.mubr.f32.mxu1 %v3211_v0 }
 0x21b   : > { %2350 = vst [vmem:[%s3677_s1 + $0x530] sm:$0xff] %v1664_v55  ;;  %2349 = vst [vmem:[%s3677_s1 + $0x528] sm:$0xff] %v833_v56  ;;  %v836_v60 = vpop.f32.mrb[84].mxu0 }
 0x21c   : > { %2351 = vst [vmem:[%s3677_s1 + $0x538] sm:$0xff] %v1666_v59  ;;  %v837_v61 = vadd.f32 %v836_v60, %v3661_v31  ;;  %v1669_v62 = vpop.f32.mrb[84].mxu1  ;;  %v838_v63 = vpop.f32.mrb[85].mxu0  ;;  %1153 = vmatmul.mubr.f32.gmra.mrb[190].mxu0 %v399_v58 }
 0x21d   : > { %v1670_v1 = vadd.f32 %v1669_v62, %v3664_v32  ;;  %v839_v2 = vadd.f32 %v838_v63, %v3666_v33  ;;  %v1671_v3 = vpop.f32.mrb[85].mxu1  ;;  %1986 = vmatmul.mubr.f32.gmra.mrb[190].mxu1 %v399_v58  ;;  %1158 = vmatprep.mubr.f32.mxu0 %v3211_v0  ;;  %v406_v62 = vld [vmem:[%s3422_s23 + $0x330] sm:$0xff] }
 0x21e   : > { %2352 = vst [vmem:[%s3677_s1 + $0x540] sm:$0xff] %v837_v61  ;;  %v1672_v5 = vadd.f32 %v1671_v3, %v3670_v35  ;;  %1991 = vmatprep.mubr.f32.mxu1 %v3211_v0 }
 0x21f   : > { %2354 = vst [vmem:[%s3677_s1 + $0x550] sm:$0xff] %v1670_v1  ;;  %2353 = vst [vmem:[%s3677_s1 + $0x548] sm:$0xff] %v839_v2  ;;  %v842_v6 = vpop.f32.mrb[86].mxu0 }
 0x220   : > { %2355 = vst [vmem:[%s3677_s1 + $0x558] sm:$0xff] %v1672_v5  ;;  %v843_v7 = vadd.f32 %v842_v6, %v3661_v31  ;;  %v1675_v8 = vpop.f32.mrb[86].mxu1  ;;  %v844_v9 = vpop.f32.mrb[87].mxu0  ;;  %1159 = vmatmul.mubr.f32.gmra.mrb[192].mxu0 %v400_v4 }
 0x221   : > { %v1676_v10 = vadd.f32 %v1675_v8, %v3664_v32  ;;  %v845_v11 = vadd.f32 %v844_v9, %v3666_v33  ;;  %v1677_v12 = vpop.f32.mrb[87].mxu1  ;;  %1992 = vmatmul.mubr.f32.gmra.mrb[192].mxu1 %v400_v4  ;;  %1164 = vmatprep.mubr.f32.mxu0 %v3211_v0  ;;  %v407_v8 = vld [vmem:[%s3422_s23 + $0x338] sm:$0xff] }
 0x222   : > { %2356 = vst [vmem:[%s3677_s1 + $0x560] sm:$0xff] %v843_v7  ;;  %v1678_v14 = vadd.f32 %v1677_v12, %v3670_v35  ;;  %1997 = vmatprep.mubr.f32.mxu1 %v3211_v0 }
 0x223   : > { %2358 = vst [vmem:[%s3677_s1 + $0x570] sm:$0xff] %v1676_v10  ;;  %2357 = vst [vmem:[%s3677_s1 + $0x568] sm:$0xff] %v845_v11  ;;  %v848_v15 = vpop.f32.mrb[88].mxu0 }
 0x224   : > { %2359 = vst [vmem:[%s3677_s1 + $0x578] sm:$0xff] %v1678_v14  ;;  %v849_v16 = vadd.f32 %v848_v15, %v3661_v31  ;;  %v1681_v17 = vpop.f32.mrb[88].mxu1  ;;  %v850_v18 = vpop.f32.mrb[89].mxu0  ;;  %1165 = vmatmul.mubr.f32.gmra.mrb[194].mxu0 %v401_v13 }
 0x225   : > { %v1682_v19 = vadd.f32 %v1681_v17, %v3664_v32  ;;  %v851_v20 = vadd.f32 %v850_v18, %v3666_v33  ;;  %v1683_v21 = vpop.f32.mrb[89].mxu1  ;;  %1998 = vmatmul.mubr.f32.gmra.mrb[194].mxu1 %v401_v13  ;;  %1170 = vmatprep.mubr.f32.mxu0 %v3211_v0  ;;  %v408_v17 = vld [vmem:[%s3422_s23 + $0x340] sm:$0xff] }
 0x226   : > { %2360 = vst [vmem:[%s3677_s1 + $0x580] sm:$0xff] %v849_v16  ;;  %v1684_v23 = vadd.f32 %v1683_v21, %v3670_v35  ;;  %2003 = vmatprep.mubr.f32.mxu1 %v3211_v0 }
 0x227   : > { %2362 = vst [vmem:[%s3677_s1 + $0x590] sm:$0xff] %v1682_v19  ;;  %2361 = vst [vmem:[%s3677_s1 + $0x588] sm:$0xff] %v851_v20  ;;  %v854_v24 = vpop.f32.mrb[90].mxu0 }
 0x228   : > { %2363 = vst [vmem:[%s3677_s1 + $0x598] sm:$0xff] %v1684_v23  ;;  %v855_v25 = vadd.f32 %v854_v24, %v3661_v31  ;;  %v1687_v26 = vpop.f32.mrb[90].mxu1  ;;  %v856_v27 = vpop.f32.mrb[91].mxu0  ;;  %1171 = vmatmul.mubr.f32.gmra.mrb[196].mxu0 %v402_v22 }
 0x229   : > { %v1688_v28 = vadd.f32 %v1687_v26, %v3664_v32  ;;  %v857_v29 = vadd.f32 %v856_v27, %v3666_v33  ;;  %v1689_v30 = vpop.f32.mrb[91].mxu1  ;;  %2004 = vmatmul.mubr.f32.gmra.mrb[196].mxu1 %v402_v22  ;;  %1176 = vmatprep.mubr.f32.mxu0 %v3211_v0  ;;  %v409_v26 = vld [vmem:[%s3422_s23 + $0x348] sm:$0xff] }
 0x22a   : > { %2364 = vst [vmem:[%s3677_s1 + $0x5a0] sm:$0xff] %v855_v25  ;;  %v1690_v36 = vadd.f32 %v1689_v30, %v3670_v35  ;;  %2009 = vmatprep.mubr.f32.mxu1 %v3211_v0 }
 0x22b   : > { %2366 = vst [vmem:[%s3677_s1 + $0x5b0] sm:$0xff] %v1688_v28  ;;  %2365 = vst [vmem:[%s3677_s1 + $0x5a8] sm:$0xff] %v857_v29  ;;  %v860_v37 = vpop.f32.mrb[92].mxu0 }
 0x22c   : > { %2367 = vst [vmem:[%s3677_s1 + $0x5b8] sm:$0xff] %v1690_v36  ;;  %v861_v38 = vadd.f32 %v860_v37, %v3661_v31  ;;  %v1693_v39 = vpop.f32.mrb[92].mxu1  ;;  %v862_v40 = vpop.f32.mrb[93].mxu0  ;;  %1177 = vmatmul.mubr.f32.gmra.mrb[198].mxu0 %v403_v34 }
 0x22d   : > { %v1694_v41 = vadd.f32 %v1693_v39, %v3664_v32  ;;  %v863_v42 = vadd.f32 %v862_v40, %v3666_v33  ;;  %v1695_v43 = vpop.f32.mrb[93].mxu1  ;;  %2010 = vmatmul.mubr.f32.gmra.mrb[198].mxu1 %v403_v34  ;;  %1182 = vmatprep.mubr.f32.mxu0 %v3211_v0  ;;  %v410_v39 = vld [vmem:[%s3422_s23 + $0x350] sm:$0xff] }
 0x22e   : > { %2368 = vst [vmem:[%s3677_s1 + $0x5c0] sm:$0xff] %v861_v38  ;;  %v1696_v45 = vadd.f32 %v1695_v43, %v3670_v35  ;;  %2015 = vmatprep.mubr.f32.mxu1 %v3211_v0 }
 0x22f   : > { %2370 = vst [vmem:[%s3677_s1 + $0x5d0] sm:$0xff] %v1694_v41  ;;  %2369 = vst [vmem:[%s3677_s1 + $0x5c8] sm:$0xff] %v863_v42  ;;  %v866_v46 = vpop.f32.mrb[94].mxu0 }
 0x230   : > { %2371 = vst [vmem:[%s3677_s1 + $0x5d8] sm:$0xff] %v1696_v45  ;;  %v867_v47 = vadd.f32 %v866_v46, %v3661_v31  ;;  %v1699_v48 = vpop.f32.mrb[94].mxu1  ;;  %v868_v49 = vpop.f32.mrb[95].mxu0  ;;  %1183 = vmatmul.mubr.f32.gmra.mrb[200].mxu0 %v404_v44 }
 0x231   : > { %v1700_v50 = vadd.f32 %v1699_v48, %v3664_v32  ;;  %v869_v51 = vadd.f32 %v868_v49, %v3666_v33  ;;  %v1701_v52 = vpop.f32.mrb[95].mxu1  ;;  %2016 = vmatmul.mubr.f32.gmra.mrb[200].mxu1 %v404_v44  ;;  %1188 = vmatprep.mubr.f32.mxu0 %v3211_v0  ;;  %v411_v48 = vld [vmem:[%s3422_s23 + $0x358] sm:$0xff] }
 0x232   : > { %2372 = vst [vmem:[%s3677_s1 + $0x5e0] sm:$0xff] %v867_v47  ;;  %v1702_v54 = vadd.f32 %v1701_v52, %v3670_v35  ;;  %2021 = vmatprep.mubr.f32.mxu1 %v3211_v0 }
 0x233   : > { %2374 = vst [vmem:[%s3677_s1 + $0x5f0] sm:$0xff] %v1700_v50  ;;  %2373 = vst [vmem:[%s3677_s1 + $0x5e8] sm:$0xff] %v869_v51  ;;  %v872_v55 = vpop.f32.mrb[96].mxu0 }
 0x234   : > { %2375 = vst [vmem:[%s3677_s1 + $0x5f8] sm:$0xff] %v1702_v54  ;;  %v873_v56 = vadd.f32 %v872_v55, %v3661_v31  ;;  %v1705_v57 = vpop.f32.mrb[96].mxu1  ;;  %v874_v58 = vpop.f32.mrb[97].mxu0  ;;  %1189 = vmatmul.mubr.f32.gmra.mrb[202].mxu0 %v405_v53 }
 0x235   : > { %v1706_v59 = vadd.f32 %v1705_v57, %v3664_v32  ;;  %v875_v60 = vadd.f32 %v874_v58, %v3666_v33  ;;  %v1707_v61 = vpop.f32.mrb[97].mxu1  ;;  %2022 = vmatmul.mubr.f32.gmra.mrb[202].mxu1 %v405_v53  ;;  %1194 = vmatprep.mubr.f32.mxu0 %v3211_v0  ;;  %v412_v57 = vld [vmem:[%s3422_s23 + $0x360] sm:$0xff] }
 0x236   : > { %2376 = vst [vmem:[%s3677_s1 + $0x600] sm:$0xff] %v873_v56  ;;  %v1708_v63 = vadd.f32 %v1707_v61, %v3670_v35  ;;  %2027 = vmatprep.mubr.f32.mxu1 %v3211_v0 }
 0x237   : > { %2378 = vst [vmem:[%s3677_s1 + $0x610] sm:$0xff] %v1706_v59  ;;  %2377 = vst [vmem:[%s3677_s1 + $0x608] sm:$0xff] %v875_v60  ;;  %v878_v1 = vpop.f32.mrb[98].mxu0 }
 0x238   : > { %2379 = vst [vmem:[%s3677_s1 + $0x618] sm:$0xff] %v1708_v63  ;;  %v879_v2 = vadd.f32 %v878_v1, %v3661_v31  ;;  %v1711_v3 = vpop.f32.mrb[98].mxu1  ;;  %v880_v4 = vpop.f32.mrb[99].mxu0  ;;  %1195 = vmatmul.mubr.f32.gmra.mrb[204].mxu0 %v406_v62 }
 0x239   : > { %v1712_v5 = vadd.f32 %v1711_v3, %v3664_v32  ;;  %v881_v6 = vadd.f32 %v880_v4, %v3666_v33  ;;  %v1713_v7 = vpop.f32.mrb[99].mxu1  ;;  %2028 = vmatmul.mubr.f32.gmra.mrb[204].mxu1 %v406_v62  ;;  %1200 = vmatprep.mubr.f32.mxu0 %v3211_v0  ;;  %v413_v3 = vld [vmem:[%s3422_s23 + $0x368] sm:$0xff] }
 0x23a   : > { %2380 = vst [vmem:[%s3677_s1 + $0x620] sm:$0xff] %v879_v2  ;;  %v1714_v9 = vadd.f32 %v1713_v7, %v3670_v35  ;;  %2033 = vmatprep.mubr.f32.mxu1 %v3211_v0 }
 0x23b   : > { %2382 = vst [vmem:[%s3677_s1 + $0x630] sm:$0xff] %v1712_v5  ;;  %2381 = vst [vmem:[%s3677_s1 + $0x628] sm:$0xff] %v881_v6  ;;  %v884_v10 = vpop.f32.mrb[100].mxu0 }
 0x23c   : > { %2383 = vst [vmem:[%s3677_s1 + $0x638] sm:$0xff] %v1714_v9  ;;  %v885_v11 = vadd.f32 %v884_v10, %v3661_v31  ;;  %v1717_v12 = vpop.f32.mrb[100].mxu1  ;;  %v886_v13 = vpop.f32.mrb[101].mxu0  ;;  %1201 = vmatmul.mubr.f32.gmra.mrb[206].mxu0 %v407_v8 }
 0x23d   : > { %v1718_v14 = vadd.f32 %v1717_v12, %v3664_v32  ;;  %v887_v15 = vadd.f32 %v886_v13, %v3666_v33  ;;  %v1719_v16 = vpop.f32.mrb[101].mxu1  ;;  %2034 = vmatmul.mubr.f32.gmra.mrb[206].mxu1 %v407_v8  ;;  %1206 = vmatprep.mubr.f32.mxu0 %v3211_v0  ;;  %v414_v12 = vld [vmem:[%s3422_s23 + $0x370] sm:$0xff] }
 0x23e   : > { %2384 = vst [vmem:[%s3677_s1 + $0x640] sm:$0xff] %v885_v11  ;;  %v1720_v18 = vadd.f32 %v1719_v16, %v3670_v35  ;;  %2039 = vmatprep.mubr.f32.mxu1 %v3211_v0 }
 0x23f   : > { %2386 = vst [vmem:[%s3677_s1 + $0x650] sm:$0xff] %v1718_v14  ;;  %2385 = vst [vmem:[%s3677_s1 + $0x648] sm:$0xff] %v887_v15  ;;  %v890_v19 = vpop.f32.mrb[102].mxu0 }
 0x240   : > { %2387 = vst [vmem:[%s3677_s1 + $0x658] sm:$0xff] %v1720_v18  ;;  %v891_v20 = vadd.f32 %v890_v19, %v3661_v31  ;;  %v1723_v21 = vpop.f32.mrb[102].mxu1  ;;  %v892_v22 = vpop.f32.mrb[103].mxu0  ;;  %1207 = vmatmul.mubr.f32.gmra.mrb[208].mxu0 %v408_v17 }
 0x241   : > { %v1724_v23 = vadd.f32 %v1723_v21, %v3664_v32  ;;  %v893_v24 = vadd.f32 %v892_v22, %v3666_v33  ;;  %v1725_v25 = vpop.f32.mrb[103].mxu1  ;;  %2040 = vmatmul.mubr.f32.gmra.mrb[208].mxu1 %v408_v17  ;;  %1212 = vmatprep.mubr.f32.mxu0 %v3211_v0  ;;  %v415_v21 = vld [vmem:[%s3422_s23 + $0x378] sm:$0xff] }
 0x242   : > { %2388 = vst [vmem:[%s3677_s1 + $0x660] sm:$0xff] %v891_v20  ;;  %v1726_v27 = vadd.f32 %v1725_v25, %v3670_v35  ;;  %2045 = vmatprep.mubr.f32.mxu1 %v3211_v0 }
 0x243   : > { %2390 = vst [vmem:[%s3677_s1 + $0x670] sm:$0xff] %v1724_v23  ;;  %2389 = vst [vmem:[%s3677_s1 + $0x668] sm:$0xff] %v893_v24  ;;  %v896_v28 = vpop.f32.mrb[104].mxu0 }
 0x244   : > { %2391 = vst [vmem:[%s3677_s1 + $0x678] sm:$0xff] %v1726_v27  ;;  %v897_v29 = vadd.f32 %v896_v28, %v3661_v31  ;;  %v1729_v30 = vpop.f32.mrb[104].mxu1  ;;  %v898_v34 = vpop.f32.mrb[105].mxu0  ;;  %1213 = vmatmul.mubr.f32.gmra.mrb[210].mxu0 %v409_v26 }
 0x245   : > { %v1730_v36 = vadd.f32 %v1729_v30, %v3664_v32  ;;  %v899_v37 = vadd.f32 %v898_v34, %v3666_v33  ;;  %v1731_v38 = vpop.f32.mrb[105].mxu1  ;;  %2046 = vmatmul.mubr.f32.gmra.mrb[210].mxu1 %v409_v26  ;;  %1218 = vmatprep.mubr.f32.mxu0 %v3211_v0  ;;  %v416_v30 = vld [vmem:[%s3422_s23 + $0x380] sm:$0xff] }
 0x246   : > { %2392 = vst [vmem:[%s3677_s1 + $0x680] sm:$0xff] %v897_v29  ;;  %v1732_v40 = vadd.f32 %v1731_v38, %v3670_v35  ;;  %2051 = vmatprep.mubr.f32.mxu1 %v3211_v0 }
 0x247   : > { %2394 = vst [vmem:[%s3677_s1 + $0x690] sm:$0xff] %v1730_v36  ;;  %2393 = vst [vmem:[%s3677_s1 + $0x688] sm:$0xff] %v899_v37  ;;  %v902_v41 = vpop.f32.mrb[106].mxu0 }
 0x248   : > { %2395 = vst [vmem:[%s3677_s1 + $0x698] sm:$0xff] %v1732_v40  ;;  %v903_v42 = vadd.f32 %v902_v41, %v3661_v31  ;;  %v1735_v43 = vpop.f32.mrb[106].mxu1  ;;  %v904_v44 = vpop.f32.mrb[107].mxu0  ;;  %1219 = vmatmul.mubr.f32.gmra.mrb[212].mxu0 %v410_v39 }
 0x249   : > { %v1736_v45 = vadd.f32 %v1735_v43, %v3664_v32  ;;  %v905_v46 = vadd.f32 %v904_v44, %v3666_v33  ;;  %v1737_v47 = vpop.f32.mrb[107].mxu1  ;;  %2052 = vmatmul.mubr.f32.gmra.mrb[212].mxu1 %v410_v39  ;;  %1224 = vmatprep.mubr.f32.mxu0 %v3211_v0  ;;  %v417_v43 = vld [vmem:[%s3422_s23 + $0x388] sm:$0xff] }
 0x24a   : > { %2396 = vst [vmem:[%s3677_s1 + $0x6a0] sm:$0xff] %v903_v42  ;;  %v1738_v49 = vadd.f32 %v1737_v47, %v3670_v35  ;;  %2057 = vmatprep.mubr.f32.mxu1 %v3211_v0 }
 0x24b   : > { %2398 = vst [vmem:[%s3677_s1 + $0x6b0] sm:$0xff] %v1736_v45  ;;  %2397 = vst [vmem:[%s3677_s1 + $0x6a8] sm:$0xff] %v905_v46  ;;  %v908_v50 = vpop.f32.mrb[108].mxu0 }
 0x24c   : > { %2399 = vst [vmem:[%s3677_s1 + $0x6b8] sm:$0xff] %v1738_v49  ;;  %v909_v51 = vadd.f32 %v908_v50, %v3661_v31  ;;  %v1741_v52 = vpop.f32.mrb[108].mxu1  ;;  %v910_v53 = vpop.f32.mrb[109].mxu0  ;;  %1225 = vmatmul.mubr.f32.gmra.mrb[214].mxu0 %v411_v48 }
 0x24d   : > { %v1742_v54 = vadd.f32 %v1741_v52, %v3664_v32  ;;  %v911_v55 = vadd.f32 %v910_v53, %v3666_v33  ;;  %v1743_v56 = vpop.f32.mrb[109].mxu1  ;;  %2058 = vmatmul.mubr.f32.gmra.mrb[214].mxu1 %v411_v48  ;;  %1230 = vmatprep.mubr.f32.mxu0 %v3211_v0  ;;  %v418_v52 = vld [vmem:[%s3422_s23 + $0x390] sm:$0xff] }
 0x24e   : > { %2400 = vst [vmem:[%s3677_s1 + $0x6c0] sm:$0xff] %v909_v51  ;;  %v1744_v58 = vadd.f32 %v1743_v56, %v3670_v35  ;;  %2063 = vmatprep.mubr.f32.mxu1 %v3211_v0 }
 0x24f   : > { %2402 = vst [vmem:[%s3677_s1 + $0x6d0] sm:$0xff] %v1742_v54  ;;  %2401 = vst [vmem:[%s3677_s1 + $0x6c8] sm:$0xff] %v911_v55  ;;  %v914_v59 = vpop.f32.mrb[110].mxu0 }
 0x250   : > { %2403 = vst [vmem:[%s3677_s1 + $0x6d8] sm:$0xff] %v1744_v58  ;;  %v915_v60 = vadd.f32 %v914_v59, %v3661_v31  ;;  %v1747_v61 = vpop.f32.mrb[110].mxu1  ;;  %v916_v62 = vpop.f32.mrb[111].mxu0  ;;  %1231 = vmatmul.mubr.f32.gmra.mrb[216].mxu0 %v412_v57 }
 0x251   : > { %v1748_v63 = vadd.f32 %v1747_v61, %v3664_v32  ;;  %v917_v1 = vadd.f32 %v916_v62, %v3666_v33  ;;  %v1749_v2 = vpop.f32.mrb[111].mxu1  ;;  %2064 = vmatmul.mubr.f32.gmra.mrb[216].mxu1 %v412_v57  ;;  %1236 = vmatprep.mubr.f32.mxu0 %v3211_v0  ;;  %v419_v61 = vld [vmem:[%s3422_s23 + $0x398] sm:$0xff] }
 0x252   : > { %2404 = vst [vmem:[%s3677_s1 + $0x6e0] sm:$0xff] %v915_v60  ;;  %v1750_v4 = vadd.f32 %v1749_v2, %v3670_v35  ;;  %2069 = vmatprep.mubr.f32.mxu1 %v3211_v0 }
 0x253   : > { %2406 = vst [vmem:[%s3677_s1 + $0x6f0] sm:$0xff] %v1748_v63  ;;  %2405 = vst [vmem:[%s3677_s1 + $0x6e8] sm:$0xff] %v917_v1  ;;  %v920_v5 = vpop.f32.mrb[112].mxu0 }
 0x254   : > { %2407 = vst [vmem:[%s3677_s1 + $0x6f8] sm:$0xff] %v1750_v4  ;;  %v921_v6 = vadd.f32 %v920_v5, %v3661_v31  ;;  %v1753_v7 = vpop.f32.mrb[112].mxu1  ;;  %v922_v8 = vpop.f32.mrb[113].mxu0  ;;  %1237 = vmatmul.mubr.f32.gmra.mrb[218].mxu0 %v413_v3 }
 0x255   : > { %v1754_v9 = vadd.f32 %v1753_v7, %v3664_v32  ;;  %v923_v10 = vadd.f32 %v922_v8, %v3666_v33  ;;  %v1755_v11 = vpop.f32.mrb[113].mxu1  ;;  %2070 = vmatmul.mubr.f32.gmra.mrb[218].mxu1 %v413_v3  ;;  %1242 = vmatprep.mubr.f32.mxu0 %v3211_v0  ;;  %v420_v7 = vld [vmem:[%s3422_s23 + $0x3a0] sm:$0xff] }
 0x256   : > { %2408 = vst [vmem:[%s3677_s1 + $0x700] sm:$0xff] %v921_v6  ;;  %v1756_v13 = vadd.f32 %v1755_v11, %v3670_v35  ;;  %2075 = vmatprep.mubr.f32.mxu1 %v3211_v0 }
 0x257   : > { %2410 = vst [vmem:[%s3677_s1 + $0x710] sm:$0xff] %v1754_v9  ;;  %2409 = vst [vmem:[%s3677_s1 + $0x708] sm:$0xff] %v923_v10  ;;  %v926_v14 = vpop.f32.mrb[114].mxu0 }
 0x258   : > { %2411 = vst [vmem:[%s3677_s1 + $0x718] sm:$0xff] %v1756_v13  ;;  %v927_v15 = vadd.f32 %v926_v14, %v3661_v31  ;;  %v1759_v16 = vpop.f32.mrb[114].mxu1  ;;  %v928_v17 = vpop.f32.mrb[115].mxu0  ;;  %1243 = vmatmul.mubr.f32.gmra.mrb[220].mxu0 %v414_v12 }
 0x259   : > { %v1760_v18 = vadd.f32 %v1759_v16, %v3664_v32  ;;  %v929_v19 = vadd.f32 %v928_v17, %v3666_v33  ;;  %v1761_v20 = vpop.f32.mrb[115].mxu1  ;;  %2076 = vmatmul.mubr.f32.gmra.mrb[220].mxu1 %v414_v12  ;;  %1248 = vmatprep.mubr.f32.mxu0 %v3211_v0  ;;  %v421_v16 = vld [vmem:[%s3422_s23 + $0x3a8] sm:$0xff] }
 0x25a   : > { %2412 = vst [vmem:[%s3677_s1 + $0x720] sm:$0xff] %v927_v15  ;;  %v1762_v22 = vadd.f32 %v1761_v20, %v3670_v35  ;;  %2081 = vmatprep.mubr.f32.mxu1 %v3211_v0 }
 0x25b   : > { %2414 = vst [vmem:[%s3677_s1 + $0x730] sm:$0xff] %v1760_v18  ;;  %2413 = vst [vmem:[%s3677_s1 + $0x728] sm:$0xff] %v929_v19  ;;  %v932_v23 = vpop.f32.mrb[116].mxu0 }
 0x25c   : > { %2415 = vst [vmem:[%s3677_s1 + $0x738] sm:$0xff] %v1762_v22  ;;  %v933_v24 = vadd.f32 %v932_v23, %v3661_v31  ;;  %v1765_v25 = vpop.f32.mrb[116].mxu1  ;;  %v934_v26 = vpop.f32.mrb[117].mxu0  ;;  %1249 = vmatmul.mubr.f32.gmra.mrb[222].mxu0 %v415_v21 }
 0x25d   : > { %v1766_v27 = vadd.f32 %v1765_v25, %v3664_v32  ;;  %v935_v28 = vadd.f32 %v934_v26, %v3666_v33  ;;  %v1767_v29 = vpop.f32.mrb[117].mxu1  ;;  %2082 = vmatmul.mubr.f32.gmra.mrb[222].mxu1 %v415_v21  ;;  %1254 = vmatprep.mubr.f32.mxu0 %v3211_v0  ;;  %v422_v25 = vld [vmem:[%s3422_s23 + $0x3b0] sm:$0xff] }
 0x25e   : > { %2416 = vst [vmem:[%s3677_s1 + $0x740] sm:$0xff] %v933_v24  ;;  %v1768_v34 = vadd.f32 %v1767_v29, %v3670_v35  ;;  %2087 = vmatprep.mubr.f32.mxu1 %v3211_v0 }
 0x25f   : > { %2418 = vst [vmem:[%s3677_s1 + $0x750] sm:$0xff] %v1766_v27  ;;  %2417 = vst [vmem:[%s3677_s1 + $0x748] sm:$0xff] %v935_v28  ;;  %v938_v36 = vpop.f32.mrb[118].mxu0 }
 0x260   : > { %2419 = vst [vmem:[%s3677_s1 + $0x758] sm:$0xff] %v1768_v34  ;;  %v939_v37 = vadd.f32 %v938_v36, %v3661_v31  ;;  %v1771_v38 = vpop.f32.mrb[118].mxu1  ;;  %v940_v39 = vpop.f32.mrb[119].mxu0  ;;  %1255 = vmatmul.mubr.f32.gmra.mrb[224].mxu0 %v416_v30 }
 0x261   : > { %v1772_v40 = vadd.f32 %v1771_v38, %v3664_v32  ;;  %v941_v41 = vadd.f32 %v940_v39, %v3666_v33  ;;  %v1773_v42 = vpop.f32.mrb[119].mxu1  ;;  %2088 = vmatmul.mubr.f32.gmra.mrb[224].mxu1 %v416_v30  ;;  %1260 = vmatprep.mubr.f32.mxu0 %v3211_v0  ;;  %v423_v38 = vld [vmem:[%s3422_s23 + $0x3b8] sm:$0xff] }
 0x262   : > { %2420 = vst [vmem:[%s3677_s1 + $0x760] sm:$0xff] %v939_v37  ;;  %v1774_v44 = vadd.f32 %v1773_v42, %v3670_v35  ;;  %2093 = vmatprep.mubr.f32.mxu1 %v3211_v0 }
 0x263   : > { %2422 = vst [vmem:[%s3677_s1 + $0x770] sm:$0xff] %v1772_v40  ;;  %2421 = vst [vmem:[%s3677_s1 + $0x768] sm:$0xff] %v941_v41  ;;  %v944_v45 = vpop.f32.mrb[120].mxu0 }
 0x264   : > { %2423 = vst [vmem:[%s3677_s1 + $0x778] sm:$0xff] %v1774_v44  ;;  %v945_v46 = vadd.f32 %v944_v45, %v3661_v31  ;;  %v1777_v47 = vpop.f32.mrb[120].mxu1  ;;  %v946_v48 = vpop.f32.mrb[121].mxu0  ;;  %1261 = vmatmul.mubr.f32.gmra.mrb[226].mxu0 %v417_v43 }
 0x265   : > { %v1778_v49 = vadd.f32 %v1777_v47, %v3664_v32  ;;  %v947_v50 = vadd.f32 %v946_v48, %v3666_v33  ;;  %v1779_v51 = vpop.f32.mrb[121].mxu1  ;;  %2094 = vmatmul.mubr.f32.gmra.mrb[226].mxu1 %v417_v43  ;;  %1266 = vmatprep.mubr.f32.mxu0 %v3211_v0  ;;  %v424_v47 = vld [vmem:[%s3422_s23 + $0x3c0] sm:$0xff] }
 0x266   : > { %2424 = vst [vmem:[%s3677_s1 + $0x780] sm:$0xff] %v945_v46  ;;  %v1780_v53 = vadd.f32 %v1779_v51, %v3670_v35  ;;  %2099 = vmatprep.mubr.f32.mxu1 %v3211_v0 }
 0x267   : > { %2426 = vst [vmem:[%s3677_s1 + $0x790] sm:$0xff] %v1778_v49  ;;  %2425 = vst [vmem:[%s3677_s1 + $0x788] sm:$0xff] %v947_v50  ;;  %v950_v54 = vpop.f32.mrb[122].mxu0 }
 0x268   : > { %2427 = vst [vmem:[%s3677_s1 + $0x798] sm:$0xff] %v1780_v53  ;;  %v951_v55 = vadd.f32 %v950_v54, %v3661_v31  ;;  %v1783_v56 = vpop.f32.mrb[122].mxu1  ;;  %v952_v57 = vpop.f32.mrb[123].mxu0  ;;  %1267 = vmatmul.mubr.f32.gmra.mrb[228].mxu0 %v418_v52 }
 0x269   : > { %v1784_v58 = vadd.f32 %v1783_v56, %v3664_v32  ;;  %v953_v59 = vadd.f32 %v952_v57, %v3666_v33  ;;  %v1785_v60 = vpop.f32.mrb[123].mxu1  ;;  %2100 = vmatmul.mubr.f32.gmra.mrb[228].mxu1 %v418_v52  ;;  %1272 = vmatprep.mubr.f32.mxu0 %v3211_v0  ;;  %v425_v56 = vld [vmem:[%s3422_s23 + $0x3c8] sm:$0xff] }
 0x26a   : > { %2428 = vst [vmem:[%s3677_s1 + $0x7a0] sm:$0xff] %v951_v55  ;;  %v1786_v62 = vadd.f32 %v1785_v60, %v3670_v35  ;;  %2105 = vmatprep.mubr.f32.mxu1 %v3211_v0 }
 0x26b   : > { %2430 = vst [vmem:[%s3677_s1 + $0x7b0] sm:$0xff] %v1784_v58  ;;  %2429 = vst [vmem:[%s3677_s1 + $0x7a8] sm:$0xff] %v953_v59  ;;  %v956_v63 = vpop.f32.mrb[124].mxu0 }
 0x26c   : > { %2431 = vst [vmem:[%s3677_s1 + $0x7b8] sm:$0xff] %v1786_v62  ;;  %v957_v1 = vadd.f32 %v956_v63, %v3661_v31  ;;  %v1789_v2 = vpop.f32.mrb[124].mxu1  ;;  %v958_v3 = vpop.f32.mrb[125].mxu0  ;;  %1273 = vmatmul.mubr.f32.gmra.mrb[230].mxu0 %v419_v61 }
 0x26d   : > { %v1790_v4 = vadd.f32 %v1789_v2, %v3664_v32  ;;  %v959_v5 = vadd.f32 %v958_v3, %v3666_v33  ;;  %v1791_v6 = vpop.f32.mrb[125].mxu1  ;;  %2106 = vmatmul.mubr.f32.gmra.mrb[230].mxu1 %v419_v61  ;;  %1278 = vmatprep.mubr.f32.mxu0 %v3211_v0  ;;  %v426_v2 = vld [vmem:[%s3422_s23 + $0x3d0] sm:$0xff] }
 0x26e   : > { %2432 = vst [vmem:[%s3677_s1 + $0x7c0] sm:$0xff] %v957_v1  ;;  %v1792_v8 = vadd.f32 %v1791_v6, %v3670_v35  ;;  %2111 = vmatprep.mubr.f32.mxu1 %v3211_v0 }
 0x26f   : > { %2434 = vst [vmem:[%s3677_s1 + $0x7d0] sm:$0xff] %v1790_v4  ;;  %2433 = vst [vmem:[%s3677_s1 + $0x7c8] sm:$0xff] %v959_v5  ;;  %v962_v9 = vpop.f32.mrb[126].mxu0 }
 0x270   : > { %2435 = vst [vmem:[%s3677_s1 + $0x7d8] sm:$0xff] %v1792_v8  ;;  %v963_v10 = vadd.f32 %v962_v9, %v3661_v31  ;;  %v1795_v11 = vpop.f32.mrb[126].mxu1  ;;  %v964_v12 = vpop.f32.mrb[127].mxu0  ;;  %1279 = vmatmul.mubr.f32.gmra.mrb[232].mxu0 %v420_v7 }
 0x271   : > { %v1796_v13 = vadd.f32 %v1795_v11, %v3664_v32  ;;  %v965_v14 = vadd.f32 %v964_v12, %v3666_v33  ;;  %v1797_v15 = vpop.f32.mrb[127].mxu1  ;;  %2112 = vmatmul.mubr.f32.gmra.mrb[232].mxu1 %v420_v7  ;;  %1284 = vmatprep.mubr.f32.mxu0 %v3211_v0  ;;  %v427_v11 = vld [vmem:[%s3422_s23 + $0x3d8] sm:$0xff] }
 0x272   : > { %2436 = vst [vmem:[%s3677_s1 + $0x7e0] sm:$0xff] %v963_v10  ;;  %v1798_v17 = vadd.f32 %v1797_v15, %v3670_v35  ;;  %2117 = vmatprep.mubr.f32.mxu1 %v3211_v0 }
 0x273   : > { %2438 = vst [vmem:[%s3677_s1 + $0x7f0] sm:$0xff] %v1796_v13  ;;  %2437 = vst [vmem:[%s3677_s1 + $0x7e8] sm:$0xff] %v965_v14  ;;  %v968_v18 = vpop.f32.mrb[128].mxu0 }
 0x274   : > { %2439 = vst [vmem:[%s3677_s1 + $0x7f8] sm:$0xff] %v1798_v17  ;;  %v969_v19 = vadd.f32 %v968_v18, %v3661_v31  ;;  %v1801_v20 = vpop.f32.mrb[128].mxu1  ;;  %v970_v21 = vpop.f32.mrb[129].mxu0  ;;  %1285 = vmatmul.mubr.f32.gmra.mrb[234].mxu0 %v421_v16 }
 0x275   : > { %v1802_v22 = vadd.f32 %v1801_v20, %v3664_v32  ;;  %v971_v23 = vadd.f32 %v970_v21, %v3666_v33  ;;  %v1803_v24 = vpop.f32.mrb[129].mxu1  ;;  %2118 = vmatmul.mubr.f32.gmra.mrb[234].mxu1 %v421_v16  ;;  %1290 = vmatprep.mubr.f32.mxu0 %v3211_v0  ;;  %v428_v20 = vld [vmem:[%s3422_s23 + $0x3e0] sm:$0xff] }
 0x276   : > { %2440 = vst [vmem:[%s3677_s1 + $0x800] sm:$0xff] %v969_v19  ;;  %v1804_v26 = vadd.f32 %v1803_v24, %v3670_v35  ;;  %2123 = vmatprep.mubr.f32.mxu1 %v3211_v0 }
 0x277   : > { %2442 = vst [vmem:[%s3677_s1 + $0x810] sm:$0xff] %v1802_v22  ;;  %2441 = vst [vmem:[%s3677_s1 + $0x808] sm:$0xff] %v971_v23  ;;  %v974_v27 = vpop.f32.mrb[130].mxu0 }
 0x278   : > { %2443 = vst [vmem:[%s3677_s1 + $0x818] sm:$0xff] %v1804_v26  ;;  %v975_v28 = vadd.f32 %v974_v27, %v3661_v31  ;;  %v1807_v29 = vpop.f32.mrb[130].mxu1  ;;  %v976_v30 = vpop.f32.mrb[131].mxu0  ;;  %1291 = vmatmul.mubr.f32.gmra.mrb[236].mxu0 %v422_v25 }
 0x279   : > { %v1808_v34 = vadd.f32 %v1807_v29, %v3664_v32  ;;  %v977_v36 = vadd.f32 %v976_v30, %v3666_v33  ;;  %v1809_v37 = vpop.f32.mrb[131].mxu1  ;;  %2124 = vmatmul.mubr.f32.gmra.mrb[236].mxu1 %v422_v25  ;;  %1296 = vmatprep.mubr.f32.mxu0 %v3211_v0  ;;  %v429_v29 = vld [vmem:[%s3422_s23 + $0x3e8] sm:$0xff] }
 0x27a   : > { %2444 = vst [vmem:[%s3677_s1 + $0x820] sm:$0xff] %v975_v28  ;;  %v1810_v39 = vadd.f32 %v1809_v37, %v3670_v35  ;;  %2129 = vmatprep.mubr.f32.mxu1 %v3211_v0 }
 0x27b   : > { %2446 = vst [vmem:[%s3677_s1 + $0x830] sm:$0xff] %v1808_v34  ;;  %2445 = vst [vmem:[%s3677_s1 + $0x828] sm:$0xff] %v977_v36  ;;  %v980_v40 = vpop.f32.mrb[132].mxu0 }
 0x27c   : > { %2447 = vst [vmem:[%s3677_s1 + $0x838] sm:$0xff] %v1810_v39  ;;  %v981_v41 = vadd.f32 %v980_v40, %v3661_v31  ;;  %v1813_v42 = vpop.f32.mrb[132].mxu1  ;;  %v982_v43 = vpop.f32.mrb[133].mxu0  ;;  %1297 = vmatmul.mubr.f32.gmra.mrb[238].mxu0 %v423_v38 }
 0x27d   : > { %v1814_v44 = vadd.f32 %v1813_v42, %v3664_v32  ;;  %v983_v45 = vadd.f32 %v982_v43, %v3666_v33  ;;  %v1815_v46 = vpop.f32.mrb[133].mxu1  ;;  %2130 = vmatmul.mubr.f32.gmra.mrb[238].mxu1 %v423_v38  ;;  %1302 = vmatprep.mubr.f32.mxu0 %v3211_v0  ;;  %v430_v42 = vld [vmem:[%s3422_s23 + $0x3f0] sm:$0xff] }
 0x27e   : > { %2448 = vst [vmem:[%s3677_s1 + $0x840] sm:$0xff] %v981_v41  ;;  %v1816_v48 = vadd.f32 %v1815_v46, %v3670_v35  ;;  %2135 = vmatprep.mubr.f32.mxu1 %v3211_v0 }
 0x27f   : > { %2450 = vst [vmem:[%s3677_s1 + $0x850] sm:$0xff] %v1814_v44  ;;  %2449 = vst [vmem:[%s3677_s1 + $0x848] sm:$0xff] %v983_v45  ;;  %v986_v49 = vpop.f32.mrb[134].mxu0 }
 0x280   : > { %2451 = vst [vmem:[%s3677_s1 + $0x858] sm:$0xff] %v1816_v48  ;;  %v987_v50 = vadd.f32 %v986_v49, %v3661_v31  ;;  %v1819_v51 = vpop.f32.mrb[134].mxu1  ;;  %v988_v52 = vpop.f32.mrb[135].mxu0  ;;  %1303 = vmatmul.mubr.f32.gmra.mrb[240].mxu0 %v424_v47 }
 0x281   : > { %v1820_v53 = vadd.f32 %v1819_v51, %v3664_v32  ;;  %v989_v54 = vadd.f32 %v988_v52, %v3666_v33  ;;  %v1821_v55 = vpop.f32.mrb[135].mxu1  ;;  %2136 = vmatmul.mubr.f32.gmra.mrb[240].mxu1 %v424_v47  ;;  %1308 = vmatprep.mubr.f32.mxu0 %v3211_v0  ;;  %v431_v51 = vld [vmem:[%s3422_s23 + $0x3f8] sm:$0xff] }
 0x282   : > { %2452 = vst [vmem:[%s3677_s1 + $0x860] sm:$0xff] %v987_v50  ;;  %v1822_v57 = vadd.f32 %v1821_v55, %v3670_v35  ;;  %2141 = vmatprep.mubr.f32.mxu1 %v3211_v0 }
 0x283   : > { %2454 = vst [vmem:[%s3677_s1 + $0x870] sm:$0xff] %v1820_v53  ;;  %2453 = vst [vmem:[%s3677_s1 + $0x868] sm:$0xff] %v989_v54  ;;  %v992_v58 = vpop.f32.mrb[136].mxu0 }
 0x284   : > { %2455 = vst [vmem:[%s3677_s1 + $0x878] sm:$0xff] %v1822_v57  ;;  %v993_v59 = vadd.f32 %v992_v58, %v3661_v31  ;;  %v1825_v60 = vpop.f32.mrb[136].mxu1  ;;  %v994_v61 = vpop.f32.mrb[137].mxu0  ;;  %1309 = vmatmul.mubr.f32.gmra.mrb[242].mxu0 %v425_v56 }
 0x285   : > { %v1826_v62 = vadd.f32 %v1825_v60, %v3664_v32  ;;  %v995_v63 = vadd.f32 %v994_v61, %v3666_v33  ;;  %v1827_v1 = vpop.f32.mrb[137].mxu1  ;;  %2142 = vmatmul.mubr.f32.gmra.mrb[242].mxu1 %v425_v56  ;;  %1314 = vmatprep.mubr.f32.mxu0 %v3211_v0 }
 0x286   : > { %2456 = vst [vmem:[%s3677_s1 + $0x880] sm:$0xff] %v993_v59  ;;  %v1828_v3 = vadd.f32 %v1827_v1, %v3670_v35  ;;  %2147 = vmatprep.mubr.f32.mxu1 %v3211_v0 }
 0x287   : > { %2458 = vst [vmem:[%s3677_s1 + $0x890] sm:$0xff] %v1826_v62  ;;  %2457 = vst [vmem:[%s3677_s1 + $0x888] sm:$0xff] %v995_v63  ;;  %v998_v4 = vpop.f32.mrb[138].mxu0 }
 0x288   : > { %2459 = vst [vmem:[%s3677_s1 + $0x898] sm:$0xff] %v1828_v3  ;;  %v999_v5 = vadd.f32 %v998_v4, %v3661_v31  ;;  %v1831_v6 = vpop.f32.mrb[138].mxu1  ;;  %v1000_v7 = vpop.f32.mrb[139].mxu0  ;;  %1315 = vmatmul.mubr.f32.gmra.mrb[244].mxu0 %v426_v2 }
 0x289   : > { %v1832_v8 = vadd.f32 %v1831_v6, %v3664_v32  ;;  %v1001_v9 = vadd.f32 %v1000_v7, %v3666_v33  ;;  %v1833_v10 = vpop.f32.mrb[139].mxu1  ;;  %2148 = vmatmul.mubr.f32.gmra.mrb[244].mxu1 %v426_v2  ;;  %1320 = vmatprep.mubr.f32.mxu0 %v3211_v0 }
 0x28a   : > { %2460 = vst [vmem:[%s3677_s1 + $0x8a0] sm:$0xff] %v999_v5  ;;  %v1834_v12 = vadd.f32 %v1833_v10, %v3670_v35  ;;  %2153 = vmatprep.mubr.f32.mxu1 %v3211_v0 }
 0x28b   : > { %2462 = vst [vmem:[%s3677_s1 + $0x8b0] sm:$0xff] %v1832_v8  ;;  %2461 = vst [vmem:[%s3677_s1 + $0x8a8] sm:$0xff] %v1001_v9  ;;  %v1004_v13 = vpop.f32.mrb[140].mxu0 }
 0x28c   : > { %2463 = vst [vmem:[%s3677_s1 + $0x8b8] sm:$0xff] %v1834_v12  ;;  %v1005_v14 = vadd.f32 %v1004_v13, %v3661_v31  ;;  %v1837_v15 = vpop.f32.mrb[140].mxu1  ;;  %v1006_v16 = vpop.f32.mrb[141].mxu0  ;;  %1321 = vmatmul.mubr.f32.gmra.mrb[246].mxu0 %v427_v11 }
 0x28d   : > { %v1838_v17 = vadd.f32 %v1837_v15, %v3664_v32  ;;  %v1007_v18 = vadd.f32 %v1006_v16, %v3666_v33  ;;  %v1839_v19 = vpop.f32.mrb[141].mxu1  ;;  %2154 = vmatmul.mubr.f32.gmra.mrb[246].mxu1 %v427_v11  ;;  %1326 = vmatprep.mubr.f32.mxu0 %v3211_v0 }
 0x28e   : > { %2464 = vst [vmem:[%s3677_s1 + $0x8c0] sm:$0xff] %v1005_v14  ;;  %v1840_v21 = vadd.f32 %v1839_v19, %v3670_v35  ;;  %2159 = vmatprep.mubr.f32.mxu1 %v3211_v0 }
 0x28f   : > { %2466 = vst [vmem:[%s3677_s1 + $0x8d0] sm:$0xff] %v1838_v17  ;;  %2465 = vst [vmem:[%s3677_s1 + $0x8c8] sm:$0xff] %v1007_v18  ;;  %v1010_v22 = vpop.f32.mrb[142].mxu0 }
 0x290   : > { %2467 = vst [vmem:[%s3677_s1 + $0x8d8] sm:$0xff] %v1840_v21  ;;  %v1011_v23 = vadd.f32 %v1010_v22, %v3661_v31  ;;  %v1843_v24 = vpop.f32.mrb[142].mxu1  ;;  %v1012_v25 = vpop.f32.mrb[143].mxu0  ;;  %1327 = vmatmul.mubr.f32.gmra.mrb[248].mxu0 %v428_v20 }
 0x291   : > { %v1844_v26 = vadd.f32 %v1843_v24, %v3664_v32  ;;  %v1013_v27 = vadd.f32 %v1012_v25, %v3666_v33  ;;  %v1845_v28 = vpop.f32.mrb[143].mxu1  ;;  %2160 = vmatmul.mubr.f32.gmra.mrb[248].mxu1 %v428_v20  ;;  %1332 = vmatprep.mubr.f32.mxu0 %v3211_v0 }
 0x292   : > { %2468 = vst [vmem:[%s3677_s1 + $0x8e0] sm:$0xff] %v1011_v23  ;;  %v1846_v30 = vadd.f32 %v1845_v28, %v3670_v35  ;;  %2165 = vmatprep.mubr.f32.mxu1 %v3211_v0 }
 0x293   : > { %2470 = vst [vmem:[%s3677_s1 + $0x8f0] sm:$0xff] %v1844_v26  ;;  %2469 = vst [vmem:[%s3677_s1 + $0x8e8] sm:$0xff] %v1013_v27  ;;  %v1016_v34 = vpop.f32.mrb[144].mxu0 }
 0x294   : > { %2471 = vst [vmem:[%s3677_s1 + $0x8f8] sm:$0xff] %v1846_v30  ;;  %v1017_v36 = vadd.f32 %v1016_v34, %v3661_v31  ;;  %v1849_v37 = vpop.f32.mrb[144].mxu1  ;;  %v1018_v38 = vpop.f32.mrb[145].mxu0  ;;  %1333 = vmatmul.mubr.f32.gmra.mrb[250].mxu0 %v429_v29 }
 0x295   : > { %v1850_v39 = vadd.f32 %v1849_v37, %v3664_v32  ;;  %v1019_v40 = vadd.f32 %v1018_v38, %v3666_v33  ;;  %v1851_v41 = vpop.f32.mrb[145].mxu1  ;;  %2166 = vmatmul.mubr.f32.gmra.mrb[250].mxu1 %v429_v29  ;;  %1338 = vmatprep.mubr.f32.mxu0 %v3211_v0 }
 0x296   : > { %2472 = vst [vmem:[%s3677_s1 + $0x900] sm:$0xff] %v1017_v36  ;;  %v1852_v43 = vadd.f32 %v1851_v41, %v3670_v35  ;;  %2171 = vmatprep.mubr.f32.mxu1 %v3211_v0 }
 0x297   : > { %2474 = vst [vmem:[%s3677_s1 + $0x910] sm:$0xff] %v1850_v39  ;;  %2473 = vst [vmem:[%s3677_s1 + $0x908] sm:$0xff] %v1019_v40  ;;  %v1022_v44 = vpop.f32.mrb[146].mxu0 }
 0x298   : > { %2475 = vst [vmem:[%s3677_s1 + $0x918] sm:$0xff] %v1852_v43  ;;  %v1023_v45 = vadd.f32 %v1022_v44, %v3661_v31  ;;  %v1855_v46 = vpop.f32.mrb[146].mxu1  ;;  %v1024_v47 = vpop.f32.mrb[147].mxu0  ;;  %1339 = vmatmul.mubr.f32.gmra.mrb[252].mxu0 %v430_v42 }
 0x299   : > { %v1856_v48 = vadd.f32 %v1855_v46, %v3664_v32  ;;  %v1025_v49 = vadd.f32 %v1024_v47, %v3666_v33  ;;  %v1857_v50 = vpop.f32.mrb[147].mxu1  ;;  %2172 = vmatmul.mubr.f32.gmra.mrb[252].mxu1 %v430_v42  ;;  %1344 = vmatprep.mubr.f32.mxu0 %v3211_v0 }
 0x29a   : > { %2476 = vst [vmem:[%s3677_s1 + $0x920] sm:$0xff] %v1023_v45  ;;  %v1858_v52 = vadd.f32 %v1857_v50, %v3670_v35  ;;  %2177 = vmatprep.mubr.f32.mxu1 %v3211_v0 }
 0x29b   : > { %2478 = vst [vmem:[%s3677_s1 + $0x930] sm:$0xff] %v1856_v48  ;;  %2477 = vst [vmem:[%s3677_s1 + $0x928] sm:$0xff] %v1025_v49  ;;  %v1028_v53 = vpop.f32.mrb[148].mxu0 }
 0x29c   : > { %2479 = vst [vmem:[%s3677_s1 + $0x938] sm:$0xff] %v1858_v52  ;;  %v1029_v54 = vadd.f32 %v1028_v53, %v3661_v31  ;;  %v1861_v55 = vpop.f32.mrb[148].mxu1  ;;  %v1030_v56 = vpop.f32.mrb[149].mxu0  ;;  %1345 = vmatmul.mubr.f32.gmra.mrb[254].mxu0 %v431_v51 }
 0x29d   : > { %v1862_v57 = vadd.f32 %v1861_v55, %v3664_v32  ;;  %v1031_v58 = vadd.f32 %v1030_v56, %v3666_v33  ;;  %v1863_v59 = vpop.f32.mrb[149].mxu1  ;;  %2178 = vmatmul.mubr.f32.gmra.mrb[254].mxu1 %v431_v51 }
 0x29e   : > { %2480 = vst [vmem:[%s3677_s1 + $0x940] sm:$0xff] %v1029_v54  ;;  %v1864_v0 = vadd.f32 %v1863_v59, %v3670_v35 }
 0x29f   : > { %2482 = vst [vmem:[%s3677_s1 + $0x950] sm:$0xff] %v1862_v57  ;;  %2481 = vst [vmem:[%s3677_s1 + $0x948] sm:$0xff] %v1031_v58  ;;  %v1034_v60 = vpop.f32.mrb[150].mxu0 }
 0x2a0   : > { %2483 = vst [vmem:[%s3677_s1 + $0x958] sm:$0xff] %v1864_v0  ;;  %v1035_v61 = vadd.f32 %v1034_v60, %v3661_v31  ;;  %v1867_v62 = vpop.f32.mrb[150].mxu1  ;;  %v1036_v63 = vpop.f32.mrb[151].mxu0 }
 0x2a1   : > { %v1868_v1 = vadd.f32 %v1867_v62, %v3664_v32  ;;  %v1037_v2 = vadd.f32 %v1036_v63, %v3666_v33  ;;  %v1869_v3 = vpop.f32.mrb[151].mxu1 }
 0x2a2   : > { %2484 = vst [vmem:[%s3677_s1 + $0x960] sm:$0xff] %v1035_v61  ;;  %v1870_v4 = vadd.f32 %v1869_v3, %v3670_v35 }
 0x2a3   : > { %2486 = vst [vmem:[%s3677_s1 + $0x970] sm:$0xff] %v1868_v1  ;;  %2485 = vst [vmem:[%s3677_s1 + $0x968] sm:$0xff] %v1037_v2  ;;  %v1040_v5 = vpop.f32.mrb[152].mxu0 }
 0x2a4   : > { %2487 = vst [vmem:[%s3677_s1 + $0x978] sm:$0xff] %v1870_v4  ;;  %v1041_v6 = vadd.f32 %v1040_v5, %v3661_v31  ;;  %v1873_v7 = vpop.f32.mrb[152].mxu1  ;;  %v1042_v8 = vpop.f32.mrb[153].mxu0 }
 0x2a5   : > { %v1874_v9 = vadd.f32 %v1873_v7, %v3664_v32  ;;  %v1043_v10 = vadd.f32 %v1042_v8, %v3666_v33  ;;  %v1875_v11 = vpop.f32.mrb[153].mxu1 }
 0x2a6   : > { %2488 = vst [vmem:[%s3677_s1 + $0x980] sm:$0xff] %v1041_v6  ;;  %v1876_v12 = vadd.f32 %v1875_v11, %v3670_v35 }
 0x2a7   : > { %2490 = vst [vmem:[%s3677_s1 + $0x990] sm:$0xff] %v1874_v9  ;;  %2489 = vst [vmem:[%s3677_s1 + $0x988] sm:$0xff] %v1043_v10  ;;  %v1046_v13 = vpop.f32.mrb[154].mxu0 }
 0x2a8   : > { %2491 = vst [vmem:[%s3677_s1 + $0x998] sm:$0xff] %v1876_v12  ;;  %v1047_v14 = vadd.f32 %v1046_v13, %v3661_v31  ;;  %v1879_v15 = vpop.f32.mrb[154].mxu1  ;;  %v1048_v16 = vpop.f32.mrb[155].mxu0 }
 0x2a9   : > { %v1880_v17 = vadd.f32 %v1879_v15, %v3664_v32  ;;  %v1049_v18 = vadd.f32 %v1048_v16, %v3666_v33  ;;  %v1881_v19 = vpop.f32.mrb[155].mxu1 }
 0x2aa   : > { %2492 = vst [vmem:[%s3677_s1 + $0x9a0] sm:$0xff] %v1047_v14  ;;  %v1882_v20 = vadd.f32 %v1881_v19, %v3670_v35 }
 0x2ab   : > { %2494 = vst [vmem:[%s3677_s1 + $0x9b0] sm:$0xff] %v1880_v17  ;;  %2493 = vst [vmem:[%s3677_s1 + $0x9a8] sm:$0xff] %v1049_v18  ;;  %v1052_v21 = vpop.f32.mrb[156].mxu0 }
 0x2ac   : > { %2495 = vst [vmem:[%s3677_s1 + $0x9b8] sm:$0xff] %v1882_v20  ;;  %v1053_v22 = vadd.f32 %v1052_v21, %v3661_v31  ;;  %v1885_v23 = vpop.f32.mrb[156].mxu1  ;;  %v1054_v24 = vpop.f32.mrb[157].mxu0 }
 0x2ad   : > { %v1886_v25 = vadd.f32 %v1885_v23, %v3664_v32  ;;  %v1055_v26 = vadd.f32 %v1054_v24, %v3666_v33  ;;  %v1887_v27 = vpop.f32.mrb[157].mxu1 }
 0x2ae   : > { %2496 = vst [vmem:[%s3677_s1 + $0x9c0] sm:$0xff] %v1053_v22  ;;  %v1888_v28 = vadd.f32 %v1887_v27, %v3670_v35 }
 0x2af   : > { %2498 = vst [vmem:[%s3677_s1 + $0x9d0] sm:$0xff] %v1886_v25  ;;  %2497 = vst [vmem:[%s3677_s1 + $0x9c8] sm:$0xff] %v1055_v26  ;;  %v1058_v29 = vpop.f32.mrb[158].mxu0 }
 0x2b0   : > { %2499 = vst [vmem:[%s3677_s1 + $0x9d8] sm:$0xff] %v1888_v28  ;;  %v1059_v30 = vadd.f32 %v1058_v29, %v3661_v31  ;;  %v1891_v34 = vpop.f32.mrb[158].mxu1  ;;  %v1060_v36 = vpop.f32.mrb[159].mxu0 }
 0x2b1   : > { %v1892_v37 = vadd.f32 %v1891_v34, %v3664_v32  ;;  %v1061_v38 = vadd.f32 %v1060_v36, %v3666_v33  ;;  %v1893_v39 = vpop.f32.mrb[159].mxu1 }
 0x2b2   : > { %2500 = vst [vmem:[%s3677_s1 + $0x9e0] sm:$0xff] %v1059_v30  ;;  %v1894_v40 = vadd.f32 %v1893_v39, %v3670_v35 }
 0x2b3   : > { %2502 = vst [vmem:[%s3677_s1 + $0x9f0] sm:$0xff] %v1892_v37  ;;  %2501 = vst [vmem:[%s3677_s1 + $0x9e8] sm:$0xff] %v1061_v38  ;;  %v1064_v41 = vpop.f32.mrb[160].mxu0 }
 0x2b4   : > { %2503 = vst [vmem:[%s3677_s1 + $0x9f8] sm:$0xff] %v1894_v40  ;;  %v1065_v42 = vadd.f32 %v1064_v41, %v3661_v31  ;;  %v1897_v43 = vpop.f32.mrb[160].mxu1  ;;  %v1066_v44 = vpop.f32.mrb[161].mxu0 }
 0x2b5   : > { %v1898_v45 = vadd.f32 %v1897_v43, %v3664_v32  ;;  %v1067_v46 = vadd.f32 %v1066_v44, %v3666_v33  ;;  %v1899_v47 = vpop.f32.mrb[161].mxu1 }
 0x2b6   : > { %2504 = vst [vmem:[%s3677_s1 + $0xa00] sm:$0xff] %v1065_v42  ;;  %v1900_v48 = vadd.f32 %v1899_v47, %v3670_v35 }
 0x2b7   : > { %2506 = vst [vmem:[%s3677_s1 + $0xa10] sm:$0xff] %v1898_v45  ;;  %2505 = vst [vmem:[%s3677_s1 + $0xa08] sm:$0xff] %v1067_v46  ;;  %v1070_v49 = vpop.f32.mrb[162].mxu0 }
 0x2b8   : > { %2507 = vst [vmem:[%s3677_s1 + $0xa18] sm:$0xff] %v1900_v48  ;;  %v1071_v50 = vadd.f32 %v1070_v49, %v3661_v31  ;;  %v1903_v51 = vpop.f32.mrb[162].mxu1  ;;  %v1072_v52 = vpop.f32.mrb[163].mxu0 }
 0x2b9   : > { %v1904_v53 = vadd.f32 %v1903_v51, %v3664_v32  ;;  %v1073_v54 = vadd.f32 %v1072_v52, %v3666_v33  ;;  %v1905_v55 = vpop.f32.mrb[163].mxu1 }
 0x2ba   : > { %2508 = vst [vmem:[%s3677_s1 + $0xa20] sm:$0xff] %v1071_v50  ;;  %v1906_v56 = vadd.f32 %v1905_v55, %v3670_v35 }
 0x2bb   : > { %2510 = vst [vmem:[%s3677_s1 + $0xa30] sm:$0xff] %v1904_v53  ;;  %2509 = vst [vmem:[%s3677_s1 + $0xa28] sm:$0xff] %v1073_v54  ;;  %v1076_v57 = vpop.f32.mrb[164].mxu0 }
 0x2bc   : > { %2511 = vst [vmem:[%s3677_s1 + $0xa38] sm:$0xff] %v1906_v56  ;;  %v1077_v58 = vadd.f32 %v1076_v57, %v3661_v31  ;;  %v1909_v59 = vpop.f32.mrb[164].mxu1  ;;  %v1078_v0 = vpop.f32.mrb[165].mxu0 }
 0x2bd   : > { %v1910_v60 = vadd.f32 %v1909_v59, %v3664_v32  ;;  %v1079_v61 = vadd.f32 %v1078_v0, %v3666_v33  ;;  %v1911_v62 = vpop.f32.mrb[165].mxu1 }
 0x2be   : > { %2512 = vst [vmem:[%s3677_s1 + $0xa40] sm:$0xff] %v1077_v58  ;;  %v1912_v63 = vadd.f32 %v1911_v62, %v3670_v35 }
 0x2bf   : > { %2514 = vst [vmem:[%s3677_s1 + $0xa50] sm:$0xff] %v1910_v60  ;;  %2513 = vst [vmem:[%s3677_s1 + $0xa48] sm:$0xff] %v1079_v61  ;;  %v1082_v1 = vpop.f32.mrb[166].mxu0 }
 0x2c0   : > { %2515 = vst [vmem:[%s3677_s1 + $0xa58] sm:$0xff] %v1912_v63  ;;  %v1083_v2 = vadd.f32 %v1082_v1, %v3661_v31  ;;  %v1915_v3 = vpop.f32.mrb[166].mxu1  ;;  %v1084_v4 = vpop.f32.mrb[167].mxu0 }
 0x2c1   : > { %v1916_v5 = vadd.f32 %v1915_v3, %v3664_v32  ;;  %v1085_v6 = vadd.f32 %v1084_v4, %v3666_v33  ;;  %v1917_v7 = vpop.f32.mrb[167].mxu1 }
 0x2c2   : > { %2516 = vst [vmem:[%s3677_s1 + $0xa60] sm:$0xff] %v1083_v2  ;;  %v1918_v8 = vadd.f32 %v1917_v7, %v3670_v35 }
 0x2c3   : > { %2518 = vst [vmem:[%s3677_s1 + $0xa70] sm:$0xff] %v1916_v5  ;;  %2517 = vst [vmem:[%s3677_s1 + $0xa68] sm:$0xff] %v1085_v6  ;;  %v1088_v9 = vpop.f32.mrb[168].mxu0 }
 0x2c4   : > { %2519 = vst [vmem:[%s3677_s1 + $0xa78] sm:$0xff] %v1918_v8  ;;  %v1089_v10 = vadd.f32 %v1088_v9, %v3661_v31  ;;  %v1921_v11 = vpop.f32.mrb[168].mxu1  ;;  %v1090_v12 = vpop.f32.mrb[169].mxu0 }
 0x2c5   : > { %v1922_v13 = vadd.f32 %v1921_v11, %v3664_v32  ;;  %v1091_v14 = vadd.f32 %v1090_v12, %v3666_v33  ;;  %v1923_v15 = vpop.f32.mrb[169].mxu1 }
 0x2c6   : > { %2520 = vst [vmem:[%s3677_s1 + $0xa80] sm:$0xff] %v1089_v10  ;;  %v1924_v16 = vadd.f32 %v1923_v15, %v3670_v35 }
 0x2c7   : > { %2522 = vst [vmem:[%s3677_s1 + $0xa90] sm:$0xff] %v1922_v13  ;;  %2521 = vst [vmem:[%s3677_s1 + $0xa88] sm:$0xff] %v1091_v14  ;;  %v1094_v17 = vpop.f32.mrb[170].mxu0 }
 0x2c8   : > { %2523 = vst [vmem:[%s3677_s1 + $0xa98] sm:$0xff] %v1924_v16  ;;  %v1095_v18 = vadd.f32 %v1094_v17, %v3661_v31  ;;  %v1927_v19 = vpop.f32.mrb[170].mxu1  ;;  %v1096_v20 = vpop.f32.mrb[171].mxu0 }
 0x2c9   : > { %v1928_v21 = vadd.f32 %v1927_v19, %v3664_v32  ;;  %v1097_v22 = vadd.f32 %v1096_v20, %v3666_v33  ;;  %v1929_v23 = vpop.f32.mrb[171].mxu1 }
 0x2ca   : > { %2524 = vst [vmem:[%s3677_s1 + $0xaa0] sm:$0xff] %v1095_v18  ;;  %v1930_v24 = vadd.f32 %v1929_v23, %v3670_v35 }
 0x2cb   : > { %2526 = vst [vmem:[%s3677_s1 + $0xab0] sm:$0xff] %v1928_v21  ;;  %2525 = vst [vmem:[%s3677_s1 + $0xaa8] sm:$0xff] %v1097_v22  ;;  %v1100_v25 = vpop.f32.mrb[172].mxu0 }
 0x2cc   : > { %2527 = vst [vmem:[%s3677_s1 + $0xab8] sm:$0xff] %v1930_v24  ;;  %v1101_v26 = vadd.f32 %v1100_v25, %v3661_v31  ;;  %v1933_v27 = vpop.f32.mrb[172].mxu1  ;;  %v1102_v28 = vpop.f32.mrb[173].mxu0 }
 0x2cd   : > { %v1934_v29 = vadd.f32 %v1933_v27, %v3664_v32  ;;  %v1103_v30 = vadd.f32 %v1102_v28, %v3666_v33  ;;  %v1935_v34 = vpop.f32.mrb[173].mxu1 }
 0x2ce   : > { %2528 = vst [vmem:[%s3677_s1 + $0xac0] sm:$0xff] %v1101_v26  ;;  %v1936_v36 = vadd.f32 %v1935_v34, %v3670_v35 }
 0x2cf   : > { %2530 = vst [vmem:[%s3677_s1 + $0xad0] sm:$0xff] %v1934_v29  ;;  %2529 = vst [vmem:[%s3677_s1 + $0xac8] sm:$0xff] %v1103_v30  ;;  %v1106_v37 = vpop.f32.mrb[174].mxu0 }
 0x2d0   : > { %2531 = vst [vmem:[%s3677_s1 + $0xad8] sm:$0xff] %v1936_v36  ;;  %v1107_v38 = vadd.f32 %v1106_v37, %v3661_v31  ;;  %v1939_v39 = vpop.f32.mrb[174].mxu1  ;;  %v1108_v40 = vpop.f32.mrb[175].mxu0 }
 0x2d1   : > { %v1940_v41 = vadd.f32 %v1939_v39, %v3664_v32  ;;  %v1109_v42 = vadd.f32 %v1108_v40, %v3666_v33  ;;  %v1941_v43 = vpop.f32.mrb[175].mxu1 }
 0x2d2   : > { %2532 = vst [vmem:[%s3677_s1 + $0xae0] sm:$0xff] %v1107_v38  ;;  %v1942_v44 = vadd.f32 %v1941_v43, %v3670_v35 }
 0x2d3   : > { %2534 = vst [vmem:[%s3677_s1 + $0xaf0] sm:$0xff] %v1940_v41  ;;  %2533 = vst [vmem:[%s3677_s1 + $0xae8] sm:$0xff] %v1109_v42  ;;  %v1112_v45 = vpop.f32.mrb[176].mxu0 }
 0x2d4   : > { %2535 = vst [vmem:[%s3677_s1 + $0xaf8] sm:$0xff] %v1942_v44  ;;  %v1113_v46 = vadd.f32 %v1112_v45, %v3661_v31  ;;  %v1945_v47 = vpop.f32.mrb[176].mxu1  ;;  %v1114_v48 = vpop.f32.mrb[177].mxu0 }
 0x2d5   : > { %v1946_v49 = vadd.f32 %v1945_v47, %v3664_v32  ;;  %v1115_v50 = vadd.f32 %v1114_v48, %v3666_v33  ;;  %v1947_v51 = vpop.f32.mrb[177].mxu1 }
 0x2d6   : > { %2536 = vst [vmem:[%s3677_s1 + $0xb00] sm:$0xff] %v1113_v46  ;;  %v1948_v52 = vadd.f32 %v1947_v51, %v3670_v35 }
 0x2d7   : > { %2538 = vst [vmem:[%s3677_s1 + $0xb10] sm:$0xff] %v1946_v49  ;;  %2537 = vst [vmem:[%s3677_s1 + $0xb08] sm:$0xff] %v1115_v50  ;;  %v1118_v53 = vpop.f32.mrb[178].mxu0 }
 0x2d8   : > { %2539 = vst [vmem:[%s3677_s1 + $0xb18] sm:$0xff] %v1948_v52  ;;  %v1119_v54 = vadd.f32 %v1118_v53, %v3661_v31  ;;  %v1951_v55 = vpop.f32.mrb[178].mxu1  ;;  %v1120_v56 = vpop.f32.mrb[179].mxu0 }
 0x2d9   : > { %v1952_v57 = vadd.f32 %v1951_v55, %v3664_v32  ;;  %v1121_v58 = vadd.f32 %v1120_v56, %v3666_v33  ;;  %v1953_v59 = vpop.f32.mrb[179].mxu1 }
 0x2da   : > { %2540 = vst [vmem:[%s3677_s1 + $0xb20] sm:$0xff] %v1119_v54  ;;  %v1954_v0 = vadd.f32 %v1953_v59, %v3670_v35 }
 0x2db   : > { %2542 = vst [vmem:[%s3677_s1 + $0xb30] sm:$0xff] %v1952_v57  ;;  %2541 = vst [vmem:[%s3677_s1 + $0xb28] sm:$0xff] %v1121_v58  ;;  %v1124_v60 = vpop.f32.mrb[180].mxu0 }
 0x2dc   : > { %2543 = vst [vmem:[%s3677_s1 + $0xb38] sm:$0xff] %v1954_v0  ;;  %v1125_v61 = vadd.f32 %v1124_v60, %v3661_v31  ;;  %v1957_v62 = vpop.f32.mrb[180].mxu1  ;;  %v1126_v63 = vpop.f32.mrb[181].mxu0 }
 0x2dd   : > { %v1958_v1 = vadd.f32 %v1957_v62, %v3664_v32  ;;  %v1127_v2 = vadd.f32 %v1126_v63, %v3666_v33  ;;  %v1959_v3 = vpop.f32.mrb[181].mxu1 }
 0x2de   : > { %2544 = vst [vmem:[%s3677_s1 + $0xb40] sm:$0xff] %v1125_v61  ;;  %v1960_v4 = vadd.f32 %v1959_v3, %v3670_v35 }
 0x2df   : > { %2546 = vst [vmem:[%s3677_s1 + $0xb50] sm:$0xff] %v1958_v1  ;;  %2545 = vst [vmem:[%s3677_s1 + $0xb48] sm:$0xff] %v1127_v2  ;;  %v1130_v5 = vpop.f32.mrb[182].mxu0 }
 0x2e0   : > { %2547 = vst [vmem:[%s3677_s1 + $0xb58] sm:$0xff] %v1960_v4  ;;  %v1131_v6 = vadd.f32 %v1130_v5, %v3661_v31  ;;  %v1963_v7 = vpop.f32.mrb[182].mxu1  ;;  %v1132_v8 = vpop.f32.mrb[183].mxu0 }
 0x2e1   : > { %v1964_v9 = vadd.f32 %v1963_v7, %v3664_v32  ;;  %v1133_v10 = vadd.f32 %v1132_v8, %v3666_v33  ;;  %v1965_v11 = vpop.f32.mrb[183].mxu1 }
 0x2e2   : > { %2548 = vst [vmem:[%s3677_s1 + $0xb60] sm:$0xff] %v1131_v6  ;;  %v1966_v12 = vadd.f32 %v1965_v11, %v3670_v35 }
 0x2e3   : > { %2550 = vst [vmem:[%s3677_s1 + $0xb70] sm:$0xff] %v1964_v9  ;;  %2549 = vst [vmem:[%s3677_s1 + $0xb68] sm:$0xff] %v1133_v10  ;;  %v1136_v13 = vpop.f32.mrb[184].mxu0 }
 0x2e4   : > { %2551 = vst [vmem:[%s3677_s1 + $0xb78] sm:$0xff] %v1966_v12  ;;  %v1137_v14 = vadd.f32 %v1136_v13, %v3661_v31  ;;  %v1969_v15 = vpop.f32.mrb[184].mxu1  ;;  %v1138_v16 = vpop.f32.mrb[185].mxu0 }
 0x2e5   : > { %v1970_v17 = vadd.f32 %v1969_v15, %v3664_v32  ;;  %v1139_v18 = vadd.f32 %v1138_v16, %v3666_v33  ;;  %v1971_v19 = vpop.f32.mrb[185].mxu1 }
 0x2e6   : > { %2552 = vst [vmem:[%s3677_s1 + $0xb80] sm:$0xff] %v1137_v14  ;;  %v1972_v20 = vadd.f32 %v1971_v19, %v3670_v35 }
 0x2e7   : > { %2554 = vst [vmem:[%s3677_s1 + $0xb90] sm:$0xff] %v1970_v17  ;;  %2553 = vst [vmem:[%s3677_s1 + $0xb88] sm:$0xff] %v1139_v18  ;;  %v1142_v21 = vpop.f32.mrb[186].mxu0 }
 0x2e8   : > { %2555 = vst [vmem:[%s3677_s1 + $0xb98] sm:$0xff] %v1972_v20  ;;  %v1143_v22 = vadd.f32 %v1142_v21, %v3661_v31  ;;  %v1975_v23 = vpop.f32.mrb[186].mxu1  ;;  %v1144_v24 = vpop.f32.mrb[187].mxu0 }
 0x2e9   : > { %v1976_v25 = vadd.f32 %v1975_v23, %v3664_v32  ;;  %v1145_v26 = vadd.f32 %v1144_v24, %v3666_v33  ;;  %v1977_v27 = vpop.f32.mrb[187].mxu1 }
 0x2ea   : > { %2556 = vst [vmem:[%s3677_s1 + $0xba0] sm:$0xff] %v1143_v22  ;;  %v1978_v28 = vadd.f32 %v1977_v27, %v3670_v35 }
 0x2eb   : > { %2558 = vst [vmem:[%s3677_s1 + $0xbb0] sm:$0xff] %v1976_v25  ;;  %2557 = vst [vmem:[%s3677_s1 + $0xba8] sm:$0xff] %v1145_v26  ;;  %v1148_v29 = vpop.f32.mrb[188].mxu0 }
 0x2ec   : > { %2559 = vst [vmem:[%s3677_s1 + $0xbb8] sm:$0xff] %v1978_v28  ;;  %v1149_v30 = vadd.f32 %v1148_v29, %v3661_v31  ;;  %v1981_v34 = vpop.f32.mrb[188].mxu1  ;;  %v1150_v36 = vpop.f32.mrb[189].mxu0 }
 0x2ed   : > { %v1982_v37 = vadd.f32 %v1981_v34, %v3664_v32  ;;  %v1151_v38 = vadd.f32 %v1150_v36, %v3666_v33  ;;  %v1983_v39 = vpop.f32.mrb[189].mxu1 }
 0x2ee   : > { %2560 = vst [vmem:[%s3677_s1 + $0xbc0] sm:$0xff] %v1149_v30  ;;  %v1984_v40 = vadd.f32 %v1983_v39, %v3670_v35 }
 0x2ef   : > { %2562 = vst [vmem:[%s3677_s1 + $0xbd0] sm:$0xff] %v1982_v37  ;;  %2561 = vst [vmem:[%s3677_s1 + $0xbc8] sm:$0xff] %v1151_v38  ;;  %v1154_v41 = vpop.f32.mrb[190].mxu0 }
 0x2f0   : > { %2563 = vst [vmem:[%s3677_s1 + $0xbd8] sm:$0xff] %v1984_v40  ;;  %v1155_v42 = vadd.f32 %v1154_v41, %v3661_v31  ;;  %v1987_v43 = vpop.f32.mrb[190].mxu1  ;;  %v1156_v44 = vpop.f32.mrb[191].mxu0 }
 0x2f1   : > { %v1988_v45 = vadd.f32 %v1987_v43, %v3664_v32  ;;  %v1157_v46 = vadd.f32 %v1156_v44, %v3666_v33  ;;  %v1989_v47 = vpop.f32.mrb[191].mxu1 }
 0x2f2   : > { %2564 = vst [vmem:[%s3677_s1 + $0xbe0] sm:$0xff] %v1155_v42  ;;  %v1990_v48 = vadd.f32 %v1989_v47, %v3670_v35 }
 0x2f3   : > { %2566 = vst [vmem:[%s3677_s1 + $0xbf0] sm:$0xff] %v1988_v45  ;;  %2565 = vst [vmem:[%s3677_s1 + $0xbe8] sm:$0xff] %v1157_v46  ;;  %v1160_v49 = vpop.f32.mrb[192].mxu0 }
 0x2f4   : > { %2567 = vst [vmem:[%s3677_s1 + $0xbf8] sm:$0xff] %v1990_v48  ;;  %v1161_v50 = vadd.f32 %v1160_v49, %v3661_v31  ;;  %v1993_v51 = vpop.f32.mrb[192].mxu1  ;;  %v1162_v52 = vpop.f32.mrb[193].mxu0 }
 0x2f5   : > { %v1994_v53 = vadd.f32 %v1993_v51, %v3664_v32  ;;  %v1163_v54 = vadd.f32 %v1162_v52, %v3666_v33  ;;  %v1995_v55 = vpop.f32.mrb[193].mxu1 }
 0x2f6   : > { %2568 = vst [vmem:[%s3677_s1 + $0xc00] sm:$0xff] %v1161_v50  ;;  %v1996_v56 = vadd.f32 %v1995_v55, %v3670_v35 }
 0x2f7   : > { %2570 = vst [vmem:[%s3677_s1 + $0xc10] sm:$0xff] %v1994_v53  ;;  %2569 = vst [vmem:[%s3677_s1 + $0xc08] sm:$0xff] %v1163_v54  ;;  %v1166_v57 = vpop.f32.mrb[194].mxu0 }
 0x2f8   : > { %2571 = vst [vmem:[%s3677_s1 + $0xc18] sm:$0xff] %v1996_v56  ;;  %v1167_v58 = vadd.f32 %v1166_v57, %v3661_v31  ;;  %v1999_v59 = vpop.f32.mrb[194].mxu1  ;;  %v1168_v0 = vpop.f32.mrb[195].mxu0 }
 0x2f9   : > { %v2000_v60 = vadd.f32 %v1999_v59, %v3664_v32  ;;  %v1169_v61 = vadd.f32 %v1168_v0, %v3666_v33  ;;  %v2001_v62 = vpop.f32.mrb[195].mxu1 }
 0x2fa   : > { %2572 = vst [vmem:[%s3677_s1 + $0xc20] sm:$0xff] %v1167_v58  ;;  %v2002_v63 = vadd.f32 %v2001_v62, %v3670_v35 }
 0x2fb   : > { %2574 = vst [vmem:[%s3677_s1 + $0xc30] sm:$0xff] %v2000_v60  ;;  %2573 = vst [vmem:[%s3677_s1 + $0xc28] sm:$0xff] %v1169_v61  ;;  %v1172_v1 = vpop.f32.mrb[196].mxu0 }
 0x2fc   : > { %2575 = vst [vmem:[%s3677_s1 + $0xc38] sm:$0xff] %v2002_v63  ;;  %v1173_v2 = vadd.f32 %v1172_v1, %v3661_v31  ;;  %v2005_v3 = vpop.f32.mrb[196].mxu1  ;;  %v1174_v4 = vpop.f32.mrb[197].mxu0 }
 0x2fd   : > { %v2006_v5 = vadd.f32 %v2005_v3, %v3664_v32  ;;  %v1175_v6 = vadd.f32 %v1174_v4, %v3666_v33  ;;  %v2007_v7 = vpop.f32.mrb[197].mxu1 }
 0x2fe   : > { %2576 = vst [vmem:[%s3677_s1 + $0xc40] sm:$0xff] %v1173_v2  ;;  %v2008_v8 = vadd.f32 %v2007_v7, %v3670_v35 }
 0x2ff   : > { %2578 = vst [vmem:[%s3677_s1 + $0xc50] sm:$0xff] %v2006_v5  ;;  %2577 = vst [vmem:[%s3677_s1 + $0xc48] sm:$0xff] %v1175_v6  ;;  %v1178_v9 = vpop.f32.mrb[198].mxu0 }
 0x300   : > { %2579 = vst [vmem:[%s3677_s1 + $0xc58] sm:$0xff] %v2008_v8  ;;  %v1179_v10 = vadd.f32 %v1178_v9, %v3661_v31  ;;  %v2011_v11 = vpop.f32.mrb[198].mxu1  ;;  %v1180_v12 = vpop.f32.mrb[199].mxu0 }
 0x301   : > { %v2012_v13 = vadd.f32 %v2011_v11, %v3664_v32  ;;  %v1181_v14 = vadd.f32 %v1180_v12, %v3666_v33  ;;  %v2013_v15 = vpop.f32.mrb[199].mxu1 }
 0x302   : > { %2580 = vst [vmem:[%s3677_s1 + $0xc60] sm:$0xff] %v1179_v10  ;;  %v2014_v16 = vadd.f32 %v2013_v15, %v3670_v35 }
 0x303   : > { %2582 = vst [vmem:[%s3677_s1 + $0xc70] sm:$0xff] %v2012_v13  ;;  %2581 = vst [vmem:[%s3677_s1 + $0xc68] sm:$0xff] %v1181_v14  ;;  %v1184_v17 = vpop.f32.mrb[200].mxu0 }
 0x304   : > { %2583 = vst [vmem:[%s3677_s1 + $0xc78] sm:$0xff] %v2014_v16  ;;  %v1185_v18 = vadd.f32 %v1184_v17, %v3661_v31  ;;  %v2017_v19 = vpop.f32.mrb[200].mxu1  ;;  %v1186_v20 = vpop.f32.mrb[201].mxu0 }
 0x305   : > { %v2018_v21 = vadd.f32 %v2017_v19, %v3664_v32  ;;  %v1187_v22 = vadd.f32 %v1186_v20, %v3666_v33  ;;  %v2019_v23 = vpop.f32.mrb[201].mxu1 }
 0x306   : > { %2584 = vst [vmem:[%s3677_s1 + $0xc80] sm:$0xff] %v1185_v18  ;;  %v2020_v24 = vadd.f32 %v2019_v23, %v3670_v35 }
 0x307   : > { %2586 = vst [vmem:[%s3677_s1 + $0xc90] sm:$0xff] %v2018_v21  ;;  %2585 = vst [vmem:[%s3677_s1 + $0xc88] sm:$0xff] %v1187_v22  ;;  %v1190_v25 = vpop.f32.mrb[202].mxu0 }
 0x308   : > { %2587 = vst [vmem:[%s3677_s1 + $0xc98] sm:$0xff] %v2020_v24  ;;  %v1191_v26 = vadd.f32 %v1190_v25, %v3661_v31  ;;  %v2023_v27 = vpop.f32.mrb[202].mxu1  ;;  %v1192_v28 = vpop.f32.mrb[203].mxu0 }
 0x309   : > { %v2024_v29 = vadd.f32 %v2023_v27, %v3664_v32  ;;  %v1193_v30 = vadd.f32 %v1192_v28, %v3666_v33  ;;  %v2025_v34 = vpop.f32.mrb[203].mxu1 }
 0x30a   : > { %2588 = vst [vmem:[%s3677_s1 + $0xca0] sm:$0xff] %v1191_v26  ;;  %v2026_v36 = vadd.f32 %v2025_v34, %v3670_v35 }
 0x30b   : > { %2590 = vst [vmem:[%s3677_s1 + $0xcb0] sm:$0xff] %v2024_v29  ;;  %2589 = vst [vmem:[%s3677_s1 + $0xca8] sm:$0xff] %v1193_v30  ;;  %v1196_v37 = vpop.f32.mrb[204].mxu0 }
 0x30c   : > { %2591 = vst [vmem:[%s3677_s1 + $0xcb8] sm:$0xff] %v2026_v36  ;;  %v1197_v38 = vadd.f32 %v1196_v37, %v3661_v31  ;;  %v2029_v39 = vpop.f32.mrb[204].mxu1  ;;  %v1198_v40 = vpop.f32.mrb[205].mxu0 }
 0x30d   : > { %v2030_v41 = vadd.f32 %v2029_v39, %v3664_v32  ;;  %v1199_v42 = vadd.f32 %v1198_v40, %v3666_v33  ;;  %v2031_v43 = vpop.f32.mrb[205].mxu1 }
 0x30e   : > { %2592 = vst [vmem:[%s3677_s1 + $0xcc0] sm:$0xff] %v1197_v38  ;;  %v2032_v44 = vadd.f32 %v2031_v43, %v3670_v35 }
 0x30f   : > { %2594 = vst [vmem:[%s3677_s1 + $0xcd0] sm:$0xff] %v2030_v41  ;;  %2593 = vst [vmem:[%s3677_s1 + $0xcc8] sm:$0xff] %v1199_v42  ;;  %v1202_v45 = vpop.f32.mrb[206].mxu0 }
 0x310   : > { %2595 = vst [vmem:[%s3677_s1 + $0xcd8] sm:$0xff] %v2032_v44  ;;  %v1203_v46 = vadd.f32 %v1202_v45, %v3661_v31  ;;  %v2035_v47 = vpop.f32.mrb[206].mxu1  ;;  %v1204_v48 = vpop.f32.mrb[207].mxu0 }
 0x311   : > { %v2036_v49 = vadd.f32 %v2035_v47, %v3664_v32  ;;  %v1205_v50 = vadd.f32 %v1204_v48, %v3666_v33  ;;  %v2037_v51 = vpop.f32.mrb[207].mxu1 }
 0x312   : > { %2596 = vst [vmem:[%s3677_s1 + $0xce0] sm:$0xff] %v1203_v46  ;;  %v2038_v52 = vadd.f32 %v2037_v51, %v3670_v35 }
 0x313   : > { %2598 = vst [vmem:[%s3677_s1 + $0xcf0] sm:$0xff] %v2036_v49  ;;  %2597 = vst [vmem:[%s3677_s1 + $0xce8] sm:$0xff] %v1205_v50  ;;  %v1208_v53 = vpop.f32.mrb[208].mxu0 }
 0x314   : > { %2599 = vst [vmem:[%s3677_s1 + $0xcf8] sm:$0xff] %v2038_v52  ;;  %v1209_v54 = vadd.f32 %v1208_v53, %v3661_v31  ;;  %v2041_v55 = vpop.f32.mrb[208].mxu1  ;;  %v1210_v56 = vpop.f32.mrb[209].mxu0 }
 0x315   : > { %v2042_v57 = vadd.f32 %v2041_v55, %v3664_v32  ;;  %v1211_v58 = vadd.f32 %v1210_v56, %v3666_v33  ;;  %v2043_v59 = vpop.f32.mrb[209].mxu1 }
 0x316   : > { %2600 = vst [vmem:[%s3677_s1 + $0xd00] sm:$0xff] %v1209_v54  ;;  %v2044_v0 = vadd.f32 %v2043_v59, %v3670_v35 }
 0x317   : > { %2602 = vst [vmem:[%s3677_s1 + $0xd10] sm:$0xff] %v2042_v57  ;;  %2601 = vst [vmem:[%s3677_s1 + $0xd08] sm:$0xff] %v1211_v58  ;;  %v1214_v60 = vpop.f32.mrb[210].mxu0 }
 0x318   : > { %2603 = vst [vmem:[%s3677_s1 + $0xd18] sm:$0xff] %v2044_v0  ;;  %v1215_v61 = vadd.f32 %v1214_v60, %v3661_v31  ;;  %v2047_v62 = vpop.f32.mrb[210].mxu1  ;;  %v1216_v63 = vpop.f32.mrb[211].mxu0 }
 0x319   : > { %v2048_v1 = vadd.f32 %v2047_v62, %v3664_v32  ;;  %v1217_v2 = vadd.f32 %v1216_v63, %v3666_v33  ;;  %v2049_v3 = vpop.f32.mrb[211].mxu1 }
 0x31a   : > { %2604 = vst [vmem:[%s3677_s1 + $0xd20] sm:$0xff] %v1215_v61  ;;  %v2050_v4 = vadd.f32 %v2049_v3, %v3670_v35 }
 0x31b   : > { %2606 = vst [vmem:[%s3677_s1 + $0xd30] sm:$0xff] %v2048_v1  ;;  %2605 = vst [vmem:[%s3677_s1 + $0xd28] sm:$0xff] %v1217_v2  ;;  %v1220_v5 = vpop.f32.mrb[212].mxu0 }
 0x31c   : > { %2607 = vst [vmem:[%s3677_s1 + $0xd38] sm:$0xff] %v2050_v4  ;;  %v1221_v6 = vadd.f32 %v1220_v5, %v3661_v31  ;;  %v2053_v7 = vpop.f32.mrb[212].mxu1  ;;  %v1222_v8 = vpop.f32.mrb[213].mxu0 }
 0x31d   : > { %v2054_v9 = vadd.f32 %v2053_v7, %v3664_v32  ;;  %v1223_v10 = vadd.f32 %v1222_v8, %v3666_v33  ;;  %v2055_v11 = vpop.f32.mrb[213].mxu1 }
 0x31e   : > { %2608 = vst [vmem:[%s3677_s1 + $0xd40] sm:$0xff] %v1221_v6  ;;  %v2056_v12 = vadd.f32 %v2055_v11, %v3670_v35 }
 0x31f   : > { %2610 = vst [vmem:[%s3677_s1 + $0xd50] sm:$0xff] %v2054_v9  ;;  %2609 = vst [vmem:[%s3677_s1 + $0xd48] sm:$0xff] %v1223_v10  ;;  %v1226_v13 = vpop.f32.mrb[214].mxu0 }
 0x320   : > { %2611 = vst [vmem:[%s3677_s1 + $0xd58] sm:$0xff] %v2056_v12  ;;  %v1227_v14 = vadd.f32 %v1226_v13, %v3661_v31  ;;  %v2059_v15 = vpop.f32.mrb[214].mxu1  ;;  %v1228_v16 = vpop.f32.mrb[215].mxu0 }
 0x321   : > { %v2060_v17 = vadd.f32 %v2059_v15, %v3664_v32  ;;  %v1229_v18 = vadd.f32 %v1228_v16, %v3666_v33  ;;  %v2061_v19 = vpop.f32.mrb[215].mxu1 }
 0x322   : > { %2612 = vst [vmem:[%s3677_s1 + $0xd60] sm:$0xff] %v1227_v14  ;;  %v2062_v20 = vadd.f32 %v2061_v19, %v3670_v35 }
 0x323   : > { %2614 = vst [vmem:[%s3677_s1 + $0xd70] sm:$0xff] %v2060_v17  ;;  %2613 = vst [vmem:[%s3677_s1 + $0xd68] sm:$0xff] %v1229_v18  ;;  %v1232_v21 = vpop.f32.mrb[216].mxu0 }
 0x324   : > { %2615 = vst [vmem:[%s3677_s1 + $0xd78] sm:$0xff] %v2062_v20  ;;  %v1233_v22 = vadd.f32 %v1232_v21, %v3661_v31  ;;  %v2065_v23 = vpop.f32.mrb[216].mxu1  ;;  %v1234_v24 = vpop.f32.mrb[217].mxu0 }
 0x325   : > { %v2066_v25 = vadd.f32 %v2065_v23, %v3664_v32  ;;  %v1235_v26 = vadd.f32 %v1234_v24, %v3666_v33  ;;  %v2067_v27 = vpop.f32.mrb[217].mxu1 }
 0x326   : > { %2616 = vst [vmem:[%s3677_s1 + $0xd80] sm:$0xff] %v1233_v22  ;;  %v2068_v28 = vadd.f32 %v2067_v27, %v3670_v35 }
 0x327   : > { %2618 = vst [vmem:[%s3677_s1 + $0xd90] sm:$0xff] %v2066_v25  ;;  %2617 = vst [vmem:[%s3677_s1 + $0xd88] sm:$0xff] %v1235_v26  ;;  %v1238_v29 = vpop.f32.mrb[218].mxu0 }
 0x328   : > { %2619 = vst [vmem:[%s3677_s1 + $0xd98] sm:$0xff] %v2068_v28  ;;  %v1239_v30 = vadd.f32 %v1238_v29, %v3661_v31  ;;  %v2071_v34 = vpop.f32.mrb[218].mxu1  ;;  %v1240_v36 = vpop.f32.mrb[219].mxu0 }
 0x329   : > { %v2072_v37 = vadd.f32 %v2071_v34, %v3664_v32  ;;  %v1241_v38 = vadd.f32 %v1240_v36, %v3666_v33  ;;  %v2073_v39 = vpop.f32.mrb[219].mxu1 }
 0x32a   : > { %2620 = vst [vmem:[%s3677_s1 + $0xda0] sm:$0xff] %v1239_v30  ;;  %v2074_v40 = vadd.f32 %v2073_v39, %v3670_v35 }
 0x32b   : > { %2622 = vst [vmem:[%s3677_s1 + $0xdb0] sm:$0xff] %v2072_v37  ;;  %2621 = vst [vmem:[%s3677_s1 + $0xda8] sm:$0xff] %v1241_v38  ;;  %v1244_v41 = vpop.f32.mrb[220].mxu0 }
 0x32c   : > { %2623 = vst [vmem:[%s3677_s1 + $0xdb8] sm:$0xff] %v2074_v40  ;;  %v1245_v42 = vadd.f32 %v1244_v41, %v3661_v31  ;;  %v2077_v43 = vpop.f32.mrb[220].mxu1  ;;  %v1246_v44 = vpop.f32.mrb[221].mxu0 }
 0x32d   : > { %v2078_v45 = vadd.f32 %v2077_v43, %v3664_v32  ;;  %v1247_v46 = vadd.f32 %v1246_v44, %v3666_v33  ;;  %v2079_v47 = vpop.f32.mrb[221].mxu1 }
 0x32e   : > { %2624 = vst [vmem:[%s3677_s1 + $0xdc0] sm:$0xff] %v1245_v42  ;;  %v2080_v48 = vadd.f32 %v2079_v47, %v3670_v35 }
 0x32f   : > { %2626 = vst [vmem:[%s3677_s1 + $0xdd0] sm:$0xff] %v2078_v45  ;;  %2625 = vst [vmem:[%s3677_s1 + $0xdc8] sm:$0xff] %v1247_v46  ;;  %v1250_v49 = vpop.f32.mrb[222].mxu0 }
 0x330   : > { %2627 = vst [vmem:[%s3677_s1 + $0xdd8] sm:$0xff] %v2080_v48  ;;  %v1251_v50 = vadd.f32 %v1250_v49, %v3661_v31  ;;  %v2083_v51 = vpop.f32.mrb[222].mxu1  ;;  %v1252_v52 = vpop.f32.mrb[223].mxu0 }
 0x331   : > { %v2084_v53 = vadd.f32 %v2083_v51, %v3664_v32  ;;  %v1253_v54 = vadd.f32 %v1252_v52, %v3666_v33  ;;  %v2085_v55 = vpop.f32.mrb[223].mxu1 }
 0x332   : > { %2628 = vst [vmem:[%s3677_s1 + $0xde0] sm:$0xff] %v1251_v50  ;;  %v2086_v56 = vadd.f32 %v2085_v55, %v3670_v35 }
 0x333   : > { %2630 = vst [vmem:[%s3677_s1 + $0xdf0] sm:$0xff] %v2084_v53  ;;  %2629 = vst [vmem:[%s3677_s1 + $0xde8] sm:$0xff] %v1253_v54  ;;  %v1256_v57 = vpop.f32.mrb[224].mxu0 }
 0x334   : > { %2631 = vst [vmem:[%s3677_s1 + $0xdf8] sm:$0xff] %v2086_v56  ;;  %v1257_v58 = vadd.f32 %v1256_v57, %v3661_v31  ;;  %v2089_v59 = vpop.f32.mrb[224].mxu1  ;;  %v1258_v0 = vpop.f32.mrb[225].mxu0 }
 0x335   : > { %v2090_v60 = vadd.f32 %v2089_v59, %v3664_v32  ;;  %v1259_v61 = vadd.f32 %v1258_v0, %v3666_v33  ;;  %v2091_v62 = vpop.f32.mrb[225].mxu1 }
 0x336   : > { %2632 = vst [vmem:[%s3677_s1 + $0xe00] sm:$0xff] %v1257_v58  ;;  %v2092_v63 = vadd.f32 %v2091_v62, %v3670_v35 }
 0x337   : > { %2634 = vst [vmem:[%s3677_s1 + $0xe10] sm:$0xff] %v2090_v60  ;;  %2633 = vst [vmem:[%s3677_s1 + $0xe08] sm:$0xff] %v1259_v61  ;;  %v1262_v1 = vpop.f32.mrb[226].mxu0 }
 0x338   : > { %2635 = vst [vmem:[%s3677_s1 + $0xe18] sm:$0xff] %v2092_v63  ;;  %v1263_v2 = vadd.f32 %v1262_v1, %v3661_v31  ;;  %v2095_v3 = vpop.f32.mrb[226].mxu1  ;;  %v1264_v4 = vpop.f32.mrb[227].mxu0 }
 0x339   : > { %v2096_v5 = vadd.f32 %v2095_v3, %v3664_v32  ;;  %v1265_v6 = vadd.f32 %v1264_v4, %v3666_v33  ;;  %v2097_v7 = vpop.f32.mrb[227].mxu1 }
 0x33a   : > { %2636 = vst [vmem:[%s3677_s1 + $0xe20] sm:$0xff] %v1263_v2  ;;  %v2098_v8 = vadd.f32 %v2097_v7, %v3670_v35 }
 0x33b   : > { %2638 = vst [vmem:[%s3677_s1 + $0xe30] sm:$0xff] %v2096_v5  ;;  %2637 = vst [vmem:[%s3677_s1 + $0xe28] sm:$0xff] %v1265_v6  ;;  %v1268_v9 = vpop.f32.mrb[228].mxu0 }
 0x33c   : > { %2639 = vst [vmem:[%s3677_s1 + $0xe38] sm:$0xff] %v2098_v8  ;;  %v1269_v10 = vadd.f32 %v1268_v9, %v3661_v31  ;;  %v2101_v11 = vpop.f32.mrb[228].mxu1  ;;  %v1270_v12 = vpop.f32.mrb[229].mxu0 }
 0x33d   : > { %v2102_v13 = vadd.f32 %v2101_v11, %v3664_v32  ;;  %v1271_v14 = vadd.f32 %v1270_v12, %v3666_v33  ;;  %v2103_v15 = vpop.f32.mrb[229].mxu1 }
 0x33e   : > { %2640 = vst [vmem:[%s3677_s1 + $0xe40] sm:$0xff] %v1269_v10  ;;  %v2104_v16 = vadd.f32 %v2103_v15, %v3670_v35 }
 0x33f   : > { %2642 = vst [vmem:[%s3677_s1 + $0xe50] sm:$0xff] %v2102_v13  ;;  %2641 = vst [vmem:[%s3677_s1 + $0xe48] sm:$0xff] %v1271_v14  ;;  %v1274_v17 = vpop.f32.mrb[230].mxu0 }
 0x340   : > { %2643 = vst [vmem:[%s3677_s1 + $0xe58] sm:$0xff] %v2104_v16  ;;  %v1275_v18 = vadd.f32 %v1274_v17, %v3661_v31  ;;  %v2107_v19 = vpop.f32.mrb[230].mxu1  ;;  %v1276_v20 = vpop.f32.mrb[231].mxu0 }
 0x341   : > { %v2108_v21 = vadd.f32 %v2107_v19, %v3664_v32  ;;  %v1277_v22 = vadd.f32 %v1276_v20, %v3666_v33  ;;  %v2109_v23 = vpop.f32.mrb[231].mxu1 }
 0x342   : > { %2644 = vst [vmem:[%s3677_s1 + $0xe60] sm:$0xff] %v1275_v18  ;;  %v2110_v24 = vadd.f32 %v2109_v23, %v3670_v35 }
 0x343   : > { %2646 = vst [vmem:[%s3677_s1 + $0xe70] sm:$0xff] %v2108_v21  ;;  %2645 = vst [vmem:[%s3677_s1 + $0xe68] sm:$0xff] %v1277_v22  ;;  %v1280_v25 = vpop.f32.mrb[232].mxu0 }
 0x344   : > { %2647 = vst [vmem:[%s3677_s1 + $0xe78] sm:$0xff] %v2110_v24  ;;  %v1281_v26 = vadd.f32 %v1280_v25, %v3661_v31  ;;  %v2113_v27 = vpop.f32.mrb[232].mxu1  ;;  %v1282_v28 = vpop.f32.mrb[233].mxu0 }
 0x345   : > { %v2114_v29 = vadd.f32 %v2113_v27, %v3664_v32  ;;  %v1283_v30 = vadd.f32 %v1282_v28, %v3666_v33  ;;  %v2115_v34 = vpop.f32.mrb[233].mxu1 }
 0x346   : > { %2648 = vst [vmem:[%s3677_s1 + $0xe80] sm:$0xff] %v1281_v26  ;;  %v2116_v36 = vadd.f32 %v2115_v34, %v3670_v35 }
 0x347   : > { %2650 = vst [vmem:[%s3677_s1 + $0xe90] sm:$0xff] %v2114_v29  ;;  %2649 = vst [vmem:[%s3677_s1 + $0xe88] sm:$0xff] %v1283_v30  ;;  %v1286_v37 = vpop.f32.mrb[234].mxu0 }
 0x348   : > { %2651 = vst [vmem:[%s3677_s1 + $0xe98] sm:$0xff] %v2116_v36  ;;  %v1287_v38 = vadd.f32 %v1286_v37, %v3661_v31  ;;  %v2119_v39 = vpop.f32.mrb[234].mxu1  ;;  %v1288_v40 = vpop.f32.mrb[235].mxu0 }
 0x349   : > { %v2120_v41 = vadd.f32 %v2119_v39, %v3664_v32  ;;  %v1289_v42 = vadd.f32 %v1288_v40, %v3666_v33  ;;  %v2121_v43 = vpop.f32.mrb[235].mxu1 }
 0x34a   : > { %2652 = vst [vmem:[%s3677_s1 + $0xea0] sm:$0xff] %v1287_v38  ;;  %v2122_v44 = vadd.f32 %v2121_v43, %v3670_v35 }
 0x34b   : > { %2654 = vst [vmem:[%s3677_s1 + $0xeb0] sm:$0xff] %v2120_v41  ;;  %2653 = vst [vmem:[%s3677_s1 + $0xea8] sm:$0xff] %v1289_v42  ;;  %v1292_v45 = vpop.f32.mrb[236].mxu0 }
 0x34c   : > { %2655 = vst [vmem:[%s3677_s1 + $0xeb8] sm:$0xff] %v2122_v44  ;;  %v1293_v46 = vadd.f32 %v1292_v45, %v3661_v31  ;;  %v2125_v47 = vpop.f32.mrb[236].mxu1  ;;  %v1294_v48 = vpop.f32.mrb[237].mxu0 }
 0x34d   : > { %v2126_v49 = vadd.f32 %v2125_v47, %v3664_v32  ;;  %v1295_v50 = vadd.f32 %v1294_v48, %v3666_v33  ;;  %v2127_v51 = vpop.f32.mrb[237].mxu1 }
 0x34e   : > { %2656 = vst [vmem:[%s3677_s1 + $0xec0] sm:$0xff] %v1293_v46  ;;  %v2128_v52 = vadd.f32 %v2127_v51, %v3670_v35 }
 0x34f   : > { %2658 = vst [vmem:[%s3677_s1 + $0xed0] sm:$0xff] %v2126_v49  ;;  %2657 = vst [vmem:[%s3677_s1 + $0xec8] sm:$0xff] %v1295_v50  ;;  %v1298_v53 = vpop.f32.mrb[238].mxu0 }
 0x350   : > { %2659 = vst [vmem:[%s3677_s1 + $0xed8] sm:$0xff] %v2128_v52  ;;  %v1299_v54 = vadd.f32 %v1298_v53, %v3661_v31  ;;  %v2131_v55 = vpop.f32.mrb[238].mxu1  ;;  %v1300_v56 = vpop.f32.mrb[239].mxu0 }
 0x351   : > { %v2132_v57 = vadd.f32 %v2131_v55, %v3664_v32  ;;  %v1301_v58 = vadd.f32 %v1300_v56, %v3666_v33  ;;  %v2133_v59 = vpop.f32.mrb[239].mxu1 }
 0x352   : > { %2660 = vst [vmem:[%s3677_s1 + $0xee0] sm:$0xff] %v1299_v54  ;;  %v2134_v0 = vadd.f32 %v2133_v59, %v3670_v35 }
 0x353   : > { %2662 = vst [vmem:[%s3677_s1 + $0xef0] sm:$0xff] %v2132_v57  ;;  %2661 = vst [vmem:[%s3677_s1 + $0xee8] sm:$0xff] %v1301_v58  ;;  %v1304_v60 = vpop.f32.mrb[240].mxu0 }
 0x354   : > { %2663 = vst [vmem:[%s3677_s1 + $0xef8] sm:$0xff] %v2134_v0  ;;  %v1305_v61 = vadd.f32 %v1304_v60, %v3661_v31  ;;  %v2137_v62 = vpop.f32.mrb[240].mxu1  ;;  %v1306_v63 = vpop.f32.mrb[241].mxu0 }
 0x355   : > { %v2138_v1 = vadd.f32 %v2137_v62, %v3664_v32  ;;  %v1307_v2 = vadd.f32 %v1306_v63, %v3666_v33  ;;  %v2139_v3 = vpop.f32.mrb[241].mxu1 }
 0x356   : > { %2664 = vst [vmem:[%s3677_s1 + $0xf00] sm:$0xff] %v1305_v61  ;;  %v2140_v4 = vadd.f32 %v2139_v3, %v3670_v35 }
 0x357   : > { %2666 = vst [vmem:[%s3677_s1 + $0xf10] sm:$0xff] %v2138_v1  ;;  %2665 = vst [vmem:[%s3677_s1 + $0xf08] sm:$0xff] %v1307_v2  ;;  %v1310_v5 = vpop.f32.mrb[242].mxu0 }
 0x358   : > { %2667 = vst [vmem:[%s3677_s1 + $0xf18] sm:$0xff] %v2140_v4  ;;  %v1311_v6 = vadd.f32 %v1310_v5, %v3661_v31  ;;  %v2143_v7 = vpop.f32.mrb[242].mxu1  ;;  %v1312_v8 = vpop.f32.mrb[243].mxu0 }
 0x359   : > { %v2144_v9 = vadd.f32 %v2143_v7, %v3664_v32  ;;  %v1313_v10 = vadd.f32 %v1312_v8, %v3666_v33  ;;  %v2145_v11 = vpop.f32.mrb[243].mxu1 }
 0x35a   : > { %2668 = vst [vmem:[%s3677_s1 + $0xf20] sm:$0xff] %v1311_v6  ;;  %v2146_v12 = vadd.f32 %v2145_v11, %v3670_v35 }
 0x35b   : > { %2670 = vst [vmem:[%s3677_s1 + $0xf30] sm:$0xff] %v2144_v9  ;;  %2669 = vst [vmem:[%s3677_s1 + $0xf28] sm:$0xff] %v1313_v10  ;;  %v1316_v13 = vpop.f32.mrb[244].mxu0 }
 0x35c   : > { %2671 = vst [vmem:[%s3677_s1 + $0xf38] sm:$0xff] %v2146_v12  ;;  %v1317_v14 = vadd.f32 %v1316_v13, %v3661_v31  ;;  %v2149_v15 = vpop.f32.mrb[244].mxu1  ;;  %v1318_v16 = vpop.f32.mrb[245].mxu0 }
 0x35d   : > { %v2150_v17 = vadd.f32 %v2149_v15, %v3664_v32  ;;  %v1319_v18 = vadd.f32 %v1318_v16, %v3666_v33  ;;  %v2151_v19 = vpop.f32.mrb[245].mxu1 }
 0x35e   : > { %2672 = vst [vmem:[%s3677_s1 + $0xf40] sm:$0xff] %v1317_v14  ;;  %v2152_v20 = vadd.f32 %v2151_v19, %v3670_v35 }
 0x35f   : > { %2674 = vst [vmem:[%s3677_s1 + $0xf50] sm:$0xff] %v2150_v17  ;;  %2673 = vst [vmem:[%s3677_s1 + $0xf48] sm:$0xff] %v1319_v18  ;;  %v1322_v21 = vpop.f32.mrb[246].mxu0 }
 0x360   : > { %2675 = vst [vmem:[%s3677_s1 + $0xf58] sm:$0xff] %v2152_v20  ;;  %v1323_v22 = vadd.f32 %v1322_v21, %v3661_v31  ;;  %v2155_v23 = vpop.f32.mrb[246].mxu1  ;;  %v1324_v24 = vpop.f32.mrb[247].mxu0 }
 0x361   : > { %v2156_v25 = vadd.f32 %v2155_v23, %v3664_v32  ;;  %v1325_v26 = vadd.f32 %v1324_v24, %v3666_v33  ;;  %v2157_v27 = vpop.f32.mrb[247].mxu1 }
 0x362   : > { %2676 = vst [vmem:[%s3677_s1 + $0xf60] sm:$0xff] %v1323_v22  ;;  %v2158_v28 = vadd.f32 %v2157_v27, %v3670_v35 }
 0x363   : > { %2678 = vst [vmem:[%s3677_s1 + $0xf70] sm:$0xff] %v2156_v25  ;;  %2677 = vst [vmem:[%s3677_s1 + $0xf68] sm:$0xff] %v1325_v26  ;;  %v1328_v29 = vpop.f32.mrb[248].mxu0 }
 0x364   : > { %2679 = vst [vmem:[%s3677_s1 + $0xf78] sm:$0xff] %v2158_v28  ;;  %v1329_v30 = vadd.f32 %v1328_v29, %v3661_v31  ;;  %v2161_v34 = vpop.f32.mrb[248].mxu1  ;;  %v1330_v36 = vpop.f32.mrb[249].mxu0 }
 0x365   : > { %v2162_v37 = vadd.f32 %v2161_v34, %v3664_v32  ;;  %v1331_v38 = vadd.f32 %v1330_v36, %v3666_v33  ;;  %v2163_v39 = vpop.f32.mrb[249].mxu1 }
 0x366   : > { %2680 = vst [vmem:[%s3677_s1 + $0xf80] sm:$0xff] %v1329_v30  ;;  %v2164_v40 = vadd.f32 %v2163_v39, %v3670_v35 }
 0x367   : > { %2682 = vst [vmem:[%s3677_s1 + $0xf90] sm:$0xff] %v2162_v37  ;;  %2681 = vst [vmem:[%s3677_s1 + $0xf88] sm:$0xff] %v1331_v38  ;;  %v1334_v41 = vpop.f32.mrb[250].mxu0 }
 0x368   : > { %2683 = vst [vmem:[%s3677_s1 + $0xf98] sm:$0xff] %v2164_v40  ;;  %v1335_v42 = vadd.f32 %v1334_v41, %v3661_v31  ;;  %v2167_v43 = vpop.f32.mrb[250].mxu1  ;;  %v1336_v44 = vpop.f32.mrb[251].mxu0 }
 0x369   : > { %v2168_v45 = vadd.f32 %v2167_v43, %v3664_v32  ;;  %v1337_v46 = vadd.f32 %v1336_v44, %v3666_v33  ;;  %v2169_v47 = vpop.f32.mrb[251].mxu1 }
 0x36a   : > { %2684 = vst [vmem:[%s3677_s1 + $0xfa0] sm:$0xff] %v1335_v42  ;;  %v2170_v48 = vadd.f32 %v2169_v47, %v3670_v35 }
 0x36b   : > { %2686 = vst [vmem:[%s3677_s1 + $0xfb0] sm:$0xff] %v2168_v45  ;;  %2685 = vst [vmem:[%s3677_s1 + $0xfa8] sm:$0xff] %v1337_v46  ;;  %v1340_v49 = vpop.f32.mrb[252].mxu0 }
 0x36c   : > { %2687 = vst [vmem:[%s3677_s1 + $0xfb8] sm:$0xff] %v2170_v48  ;;  %v1341_v50 = vadd.f32 %v1340_v49, %v3661_v31  ;;  %v2173_v51 = vpop.f32.mrb[252].mxu1  ;;  %v1342_v52 = vpop.f32.mrb[253].mxu0 }
 0x36d   : > { %v2174_v53 = vadd.f32 %v2173_v51, %v3664_v32  ;;  %v1343_v54 = vadd.f32 %v1342_v52, %v3666_v33  ;;  %v2175_v55 = vpop.f32.mrb[253].mxu1 }
 0x36e   : > { %2688 = vst [vmem:[%s3677_s1 + $0xfc0] sm:$0xff] %v1341_v50  ;;  %v2176_v56 = vadd.f32 %v2175_v55, %v3670_v35 }
 0x36f   : > { %2690 = vst [vmem:[%s3677_s1 + $0xfd0] sm:$0xff] %v2174_v53  ;;  %2689 = vst [vmem:[%s3677_s1 + $0xfc8] sm:$0xff] %v1343_v54  ;;  %v1346_v57 = vpop.f32.mrb[254].mxu0 }
 0x370   : > { %2691 = vst [vmem:[%s3677_s1 + $0xfd8] sm:$0xff] %v2176_v56  ;;  %v1347_v58 = vadd.f32 %v1346_v57, %v3661_v31  ;;  %v2179_v59 = vpop.f32.mrb[254].mxu1  ;;  %v1348_v0 = vpop.f32.mrb[255].mxu0 }
 0x371   : > { %v2180_v60 = vadd.f32 %v2179_v59, %v3664_v32  ;;  %v1349_v61 = vadd.f32 %v1348_v0, %v3666_v33  ;;  %v2181_v62 = vpop.f32.mrb[255].mxu1 }
 0x372   : > { %2692 = vst [vmem:[%s3677_s1 + $0xfe0] sm:$0xff] %v1347_v58  ;;  %v2182_v31 = vadd.f32 %v2181_v62, %v3670_v35 }
 0x373   : > { %2694 = vst [vmem:[%s3677_s1 + $0xff0] sm:$0xff] %v2180_v60  ;;  %2693 = vst [vmem:[%s3677_s1 + $0xfe8] sm:$0xff] %v1349_v61 }
 0x374   : > { %2695 = vst [vmem:[%s3677_s1 + $0xff8] sm:$0xff] %v2182_v31 }
 0x375   : > { %3129 = shalt.err (!%p3126_p12)
}
 0x376   : > { %s3130_s19 = scalar_lea.hbm %s4920_s10, 65536  ;;  %s3134_s4 = scalar_lea.hbm %s4978_s3, 262144 }
 0x377   : > { %p3131_p7 = scmp.ne.s32.totalorder %s4920_s10, %s3130_s19  ;;  %p3135_p4 = scmp.lt.u32.totalorder %s4920_s10, %s4978_s3 }
 0x378   : > { %p3136_p0 = scmp.lt.u32.totalorder %s3134_s4, %s3130_s19  ;;  %p3138_p1 = scmp.lt.u32.totalorder %s3130_s19, %s4920_s10 }
 0x379   : > { %p3132_p11 = pnand %p3131_p7, %p4998_p5 }
 0x37a   : > { %p3137_p13 = por %p3136_p0, %p3135_p4 }
 0x37b   : > { %p3133_p2 = pneg %p3132_p11 }
 0x37c   : > { %p3139_p3 = por %p3138_p1, %p3137_p13 }
 0x37e   : > { %p3140_p6 = pnand %p3139_p3, %p3133_p2 }
 0x380   : > { %3143 = shalt.err (!%p3140_p6)
}
 0x381   : > { %s3213_s18 = smov 512   ;;  %s3214_s24 = smov 32  }
 0x382   : > { %2953 = dma.vmem_to_hbm [thread:$0]  (%p4998_p5), %s4922_s9, 65536, %s4920_s10, %s2697_s29, %s3213_s18, %s3213_s18, %s3214_s24  }
 0x383 PF: > { %p2970_p8 = scmp.ge.s32.totalorder %s3202_s17, 2  ;;  %s2730_s5 = sand.u32 1, %s3182_s12  }
 0x384   : > { %p4999_p9 = scmp.ne.s32.totalorder %s4989_s27, 0  ;;  %s2731_s1 = scalar_lea.sflag [#allocation4], %s2730_s5 }
 0x386   : > { %p2966_p10 = pnand %p2970_p8, %p4999_p9 }
 0x388   : > { %3177 = dma.done.wait (!%p2966_p10), %s2731_s1, 65536  }
 0x389   : > { %3179 = vsyncadd (!%p2966_p10), %s2731_s1, 4294901760  ;;  %s22_s17 = sadd.s32 1, %s3202_s17   ;;  %s5000_s25 = sld [smem:[#allocation12_spill]] }
 0x38a   : > { %p19_p12 = scmp.ge.s32.totalorder %s22_s17, 6   ;;  %s5001_s12 = smov %s3186_s13 }
 0x38b   : > { %s5002_s13 = smov %s3190_s14  ;;  %s5003_s14 = smov %s3295_s26 }
 0x38c   : > { %s5004_s15 = smov %s3198_s16  ;;  %21 = sbr.rel (!%p19_p12) target bundleno = 11 (0xb), region = 101 }
 0x38f   : > { %s5005_s16 = smov %s5000_s25 }
 0x393   :  { %2736 = vsyncpa [#allocation3], 1 }
 0x394   :  { %2738 = vsyncpa [#allocation3 + $0x1], 1 }
 0x395   :  { %2739 = vsyncpa [#allocation6], 1 }
 0x396   :  { %2741 = vsyncpa [#allocation6 + $0x1], 1 }
 0x397   :  { %2742 = vsyncpa [#allocation4], 1 }
 0x398   :  { %2744 = vsyncpa [#allocation4 + $0x1], 1 }

</bundles_post_ra>
